<compile_context>
chip_gen: v7x
topology: tpu7x:2x2x1
jax: 0.10.0
libtpu: 0.0.40
codegen_flags: <defaults>
</compile_context>

<pallas_src>
import jax
import jax.numpy as jnp
from jax import lax
from jax.experimental import pallas as pl
from jax.experimental.pallas import tpu as pltpu

MAX_LENGTH = 10
SOS_token = 0


def attn_decoder_kernel(enc_out_ref, enc_hid_ref, w_gi_ref, w_hout_ref,
                        b_hout_ref, ua_ref, bu_ref, va_ref,
                        dec_out_ref, dec_hid_ref, attn_ref):
    B, S, H = enc_out_ref.shape
    V = w_gi_ref.shape[0] - H          # w_gi is (V+H, 3H)
    H3 = 3 * H

    # ---- Loop-invariant loads / precompute (hoisted out of the decode loop) ----
    # TODO(synk): at H>=128 / realistic V, read these at use sites (or stream
    # emb_gi/wout tiles from HBM via pl.ANY + DMA) instead of pinning vregs
    # across all 10 unrolled steps; fine at H=32, V=16.
    keys = enc_out_ref[...]                        # (B, S, H)
    w_gi = w_gi_ref[...]                           # (V+H, 3H) = [emb_gi ; W_ih_ctx]
    w_hout = w_hout_ref[...]                       # (H, V+4H) = [W_out | W_hh | W_a]
    b_hout = b_hout_ref[...]                       # (1, V+4H) = [b_out | b_hh | b_a]
    va_row = va_ref[...].reshape(1, 1, H)          # (1, 1, H)

    # Ua(encoder_outputs) is loop-invariant: (B*S, H) @ (H, H) + b -> (B, S, H)
    ua_keys = (jnp.dot(keys.reshape(B * S, H), ua_ref[...],
                       preferred_element_type=jnp.float32)
               + bu_ref[...]).reshape(B, S, H)

    iota_v = lax.broadcasted_iota(jnp.int32, (B, V), 1)
    onehot = (iota_v == SOS_token).astype(jnp.float32)    # SOS one-hot
    h = enc_hid_ref[...]                                  # (B, H)

    # Prologue: step-0 GRU hidden gates + attention query from encoder_hidden.
    # (Single fused matmul; the V "logits" lanes are discarded.)
    hw = (jnp.dot(h, w_hout, preferred_element_type=jnp.float32)
          + b_hout)[:, V:]                                # (B, 4H) = [gh | Wa·h]

    logp_steps = []
    attn_steps = []

    # ---- Greedy decode, fully unrolled (MAX_LENGTH is a small static const) ----
    for i in range(MAX_LENGTH):
        gh = hw[:, :H3]                                   # (B, 3H) GRU hidden gates
        wa_q = hw[:, H3:]                                 # (B, H)  attention query

        # Bahdanau attention (query = incoming hidden, pre-GRU update).
        e = jnp.tanh(wa_q[:, None, :] + ua_keys)          # (B, S, H)
        scores = jnp.sum(e * va_row, axis=-1)             # (B, S); bva dropped
        scores = scores - jnp.max(scores, axis=-1, keepdims=True)
        p = jnp.exp(scores)
        s = jnp.sum(p, axis=-1, keepdims=True)
        # EUP-seeded reciprocal + one Newton step: off the VALU-division path,
        # still well inside the 5e-4 reference tolerance.
        inv = pl.reciprocal(s, approx=True)
        inv = inv * (2.0 - s * inv)
        w = p * inv                                       # (B, S) attention weights

        # TODO(synk): benchmark against a VPU broadcast-mul + XLU sublane reduce
        # over S (keeps the MXU chain one op shorter); needs a bundle dump to
        # decide at these sizes.
        context = jnp.einsum('bqs,bsh->bqh', w[:, None, :], keys,
                             preferred_element_type=jnp.float32)[:, 0, :]  # (B, H)

        # GRU input gates in ONE matmul: [onehot | context] @ [emb_gi ; W_ih_ctx].
        # TODO(synk): for realistic vocab sizes replace the one-hot path with an
        # SMEM-index row gather of emb_gi and stream emb_gi/wout from HBM.
        gi = jnp.dot(jnp.concatenate([onehot, context], axis=-1), w_gi,
                     preferred_element_type=jnp.float32)  # (B, 3H)

        r = jax.nn.sigmoid(gi[:, :H] + gh[:, :H])
        z = jax.nn.sigmoid(gi[:, H:2 * H] + gh[:, H:2 * H])
        n = jnp.tanh(gi[:, 2 * H:] + r * gh[:, 2 * H:])
        h = (1.0 - z) * n + z * h                         # (B, H)

        # One fused matmul: output logits AND the next step's hidden gates/query.
        fused = jnp.dot(h, w_hout, preferred_element_type=jnp.float32) + b_hout
        logits = fused[:, :V]                             # (B, V)
        hw = fused[:, V:]                                 # (B, 4H) for step i+1

        m = jnp.max(logits, axis=-1, keepdims=True)
        lse = jnp.log(jnp.sum(jnp.exp(logits - m), axis=-1, keepdims=True)) + m
        logp_steps.append(logits - lse)
        attn_steps.append(w)

        # Greedy next token (torch .topk(1): first occurrence on ties).
        idx = jnp.min(jnp.where(logits == m, iota_v, V), axis=-1, keepdims=True)
        onehot = (iota_v == idx).astype(jnp.float32)

    # Lane-dense stores: one wide store per output instead of 20 masked ones.
    dec_out_ref[...] = jnp.concatenate(logp_steps, axis=-1)   # (B, T*V)
    attn_ref[...] = jnp.concatenate(attn_steps, axis=-1)      # (B, T*S)
    dec_hid_ref[...] = h


@jax.jit
def attn_decoder_forward(encoder_outputs, encoder_hidden, p):
    """encoder_outputs: (B, S, H) f32, encoder_hidden: (1, B, H) f32."""
    B, S, H = encoder_outputs.shape
    V = p["emb"].shape[0]

    # One-time parameter fusion (loop-invariant, done in XLA outside the kernel):
    #   emb_gi : embedding table pre-projected through the GRU input weights
    #            (+ b_ih folded in; one-hot rows sum to 1, so the bias survives).
    #   w_gi   : [emb_gi ; W_ih_ctx] so both gi terms come from one matmul.
    #   w_hout : [W_out | W_hh | W_a] so the output projection and the NEXT
    #            step's GRU hidden gates + attention query share one h @ W.
    emb_gi = p["emb"] @ p["wih"][:H, :] + p["bih"]              # (V, 3H)
    w_gi = jnp.concatenate([emb_gi, p["wih"][H:, :]], axis=0)   # (V+H, 3H)
    w_h = jnp.concatenate([p["whh"], p["wa"]], axis=1)          # (H, 4H)
    b_h = jnp.concatenate([p["bhh"], p["ba"]], axis=1)          # (1, 4H)
    w_hout = jnp.concatenate([p["wout"], w_h], axis=1)          # (H, V+4H)
    b_hout = jnp.concatenate([p["bout"], b_h], axis=1)          # (1, V+4H)
    # bva is intentionally NOT passed: a uniform scalar shift before softmax is a
    # no-op (shift invariance), so dropping it changes nothing.

    vmem = pl.BlockSpec(memory_space=pltpu.MemorySpace.VMEM)
    args = (encoder_outputs, encoder_hidden[0], w_gi, w_hout, b_hout,
            p["ua"], p["bu"], p["va"])

    # TODO(synk): for larger batches add a batch grid with
    # dimension_semantics=("parallel",) so v7x's second TensorCore takes half the
    # batch; at B=2 with a serial decode it would only add serialization on
    # single-TC v5e/v6e.
    # TODO(synk): at realistic H/V (esp. v7x's 64 MiB VMEM) keep emb_gi/wout in
    # HBM (pl.ANY), DMA-gather token rows and tile the output matmul over V with
    # pl.Buffered(2-3); size vmem_limit_bytes from the actual buffers.
    dec_out, dec_hid, attn = pl.pallas_call(
        attn_decoder_kernel,
        out_shape=(
            jax.ShapeDtypeStruct((B, MAX_LENGTH * V), jnp.float32),  # log-probs
            jax.ShapeDtypeStruct((B, H), jnp.float32),               # final hidden
            jax.ShapeDtypeStruct((B, MAX_LENGTH * S), jnp.float32),  # attention
        ),
        in_specs=[vmem] * len(args),
        out_specs=(vmem, vmem, vmem),
        compiler_params=pltpu.CompilerParams(vmem_limit_bytes=32 * 1024 * 1024),
    )(*args)

    # Contiguous reshapes only (no transposes): PyTorch conventions
    # (B, T, V), (1, B, H), (B, T, S).
    return (dec_out.reshape(B, MAX_LENGTH, V),
            dec_hid[None, :, :],
            attn.reshape(B, MAX_LENGTH, S))


def reference_forward(encoder_outputs, encoder_hidden, p):
    """Pure-JAX mirror of the PyTorch forward (greedy decoding, eval mode)."""
    B, S, H = encoder_outputs.shape
    h = encoder_hidden[0]
    token = jnp.full((B,), SOS_token, jnp.int32)
    ua_keys = (encoder_outputs.reshape(B * S, H) @ p["ua"] + p["bu"]).reshape(B, S, H)
    outs, attns = [], []
    for _ in range(MAX_LENGTH):
        embedded = p["emb"][token]
        wa_q = h @ p["wa"] + p["ba"]
        e = jnp.tanh(wa_q[:, None, :] + ua_keys)
        scores = jnp.sum(e * p["va"].reshape(1, 1, H), axis=-1) + p["bva"][0, 0]
        w = jax.nn.softmax(scores, axis=-1)
        context = jnp.sum(w[:, :, None] * encoder_outputs, axis=1)
        gi = embedded @ p["wih"][:H] + context @ p["wih"][H:] + p["bih"]
        gh = h @ p["whh"] + p["bhh"]
        r = jax.nn.sigmoid(gi[:, :H] + gh[:, :H])
        z = jax.nn.sigmoid(gi[:, H:2 * H] + gh[:, H:2 * H])
        n = jnp.tanh(gi[:, 2 * H:] + r * gh[:, 2 * H:])
        h = (1.0 - z) * n + z * h
        logits = h @ p["wout"] + p["bout"]
        outs.append(jax.nn.log_softmax(logits, axis=-1))
        attns.append(w)
        token = jnp.argmax(logits, axis=-1).astype(jnp.int32)
    return jnp.stack(outs, axis=1), h[None], jnp.stack(attns, axis=1)


def make_params(key, hidden_size, output_size):
    H, V = hidden_size, output_size
    ks = jax.random.split(key, 13)

    def init(k, shape, scale=0.2):
        return jax.random.normal(k, shape, jnp.float32) * scale

    return dict(
        emb=init(ks[0], (V, H)),
        wa=init(ks[1], (H, H)),  ba=init(ks[2], (1, H)),
        ua=init(ks[3], (H, H)),  bu=init(ks[4], (1, H)),
        va=init(ks[5], (1, H)),  bva=init(ks[6], (1, 1)),
        wih=init(ks[7], (2 * H, 3 * H)), bih=init(ks[8], (1, 3 * H)),
        whh=init(ks[9], (H, 3 * H)),     bhh=init(ks[10], (1, 3 * H)),
        wout=init(ks[11], (H, V)),       bout=init(ks[12], (1, V)),
    )


if __name__ == "__main__":
    B, S, H, V = 2, 8, 32, 16   # batch, encoder seq len, hidden_size, output_size

    root = jax.random.PRNGKey(0)
    k_params, k_enc, k_hid = jax.random.split(root, 3)

    params = make_params(k_params, H, V)
    encoder_outputs = jax.random.normal(k_enc, (B, S, H), jnp.float32)
    encoder_hidden = jax.random.normal(k_hid, (1, B, H), jnp.float32)

    dec_out, dec_hid, attn = attn_decoder_forward(encoder_outputs, encoder_hidden, params)
    jax.block_until_ready((dec_out, dec_hid, attn))

    ref_out, ref_hid, ref_attn = reference_forward(encoder_outputs, encoder_hidden, params)
    assert dec_out.shape == (B, MAX_LENGTH, V)
    assert dec_hid.shape == (1, B, H)
    assert attn.shape == (B, MAX_LENGTH, S)
    assert jnp.allclose(dec_out, ref_out, atol=5e-4, rtol=5e-4)
    assert jnp.allclose(dec_hid, ref_hid, atol=5e-4, rtol=5e-4)
    assert jnp.allclose(attn, ref_attn, atol=5e-4, rtol=5e-4)

    print("KERNEL_OK")
</pallas_src>

<mosaic_0001>
module attributes {stable_mosaic.version = 11 : i64} {
  func.func @attn_decoder_kernel(%arg0: memref<2x8x32xf32, #tpu.memory_space<vmem>>, %arg1: memref<2x32xf32, #tpu.memory_space<vmem>>, %arg2: memref<48x96xf32, #tpu.memory_space<vmem>>, %arg3: memref<32x144xf32, #tpu.memory_space<vmem>>, %arg4: memref<1x144xf32, #tpu.memory_space<vmem>>, %arg5: memref<32x32xf32, #tpu.memory_space<vmem>>, %arg6: memref<1x32xf32, #tpu.memory_space<vmem>>, %arg7: memref<1x32xf32, #tpu.memory_space<vmem>>, %arg8: memref<2x160xf32, #tpu.memory_space<vmem>>, %arg9: memref<2x32xf32, #tpu.memory_space<vmem>>, %arg10: memref<2x80xf32, #tpu.memory_space<vmem>>) attributes {dimension_semantics = [], scalar_prefetch = 0 : i64, scratch_operands = 0 : i64, tpu.core_type = #tpu.core_type<tc>} {
    %c0 = arith.constant 0 : index
    %c0_0 = arith.constant 0 : index
    %c0_1 = arith.constant 0 : index
    %0 = vector.load %arg0[%c0, %c0_0, %c0_1] : memref<2x8x32xf32, #tpu.memory_space<vmem>>, vector<2x8x32xf32>
    %c0_2 = arith.constant 0 : index
    %c0_3 = arith.constant 0 : index
    %1 = vector.load %arg2[%c0_2, %c0_3] : memref<48x96xf32, #tpu.memory_space<vmem>>, vector<48x96xf32>
    %c0_4 = arith.constant 0 : index
    %c0_5 = arith.constant 0 : index
    %2 = vector.load %arg3[%c0_4, %c0_5] : memref<32x144xf32, #tpu.memory_space<vmem>>, vector<32x144xf32>
    %c0_6 = arith.constant 0 : index
    %c0_7 = arith.constant 0 : index
    %3 = vector.load %arg4[%c0_6, %c0_7] : memref<1x144xf32, #tpu.memory_space<vmem>>, vector<1x144xf32>
    %c0_8 = arith.constant 0 : index
    %c0_9 = arith.constant 0 : index
    %4 = vector.load %arg7[%c0_8, %c0_9] : memref<1x32xf32, #tpu.memory_space<vmem>>, vector<1x32xf32>
    %5 = vector.shape_cast %4 : vector<1x32xf32> to vector<1x1x32xf32>
    %6 = vector.shape_cast %0 : vector<2x8x32xf32> to vector<16x32xf32>
    %c0_10 = arith.constant 0 : index
    %c0_11 = arith.constant 0 : index
    %7 = vector.load %arg5[%c0_10, %c0_11] : memref<32x32xf32, #tpu.memory_space<vmem>>, vector<32x32xf32>
    %cst = arith.constant dense<0.000000e+00> : vector<16x32xf32>
    %8 = tpu.matmul %6, %7, %cst {dimension_numbers = #tpu.dot_dimension_numbers<[1], [0], [0], [1], [0, 0, 1, 1], [], []>} : vector<16x32xf32>, vector<32x32xf32>, vector<16x32xf32> -> vector<16x32xf32>
    %c0_12 = arith.constant 0 : index
    %c0_13 = arith.constant 0 : index
    %9 = vector.load %arg6[%c0_12, %c0_13] : memref<1x32xf32, #tpu.memory_space<vmem>>, vector<1x32xf32>
    %10 = vector.broadcast %9 : vector<1x32xf32> to vector<16x32xf32>
    %11 = arith.addf %8, %10 : vector<16x32xf32>
    %12 = vector.shape_cast %11 : vector<16x32xf32> to vector<2x8x32xf32>
    %13 = tpu.iota {dimensions = array<i32: 1>} : vector<2x16xi32>
    %c0_i32 = arith.constant 0 : i32
    %14 = vector.broadcast %c0_i32 : i32 to vector<2x16xi32>
    %15 = arith.cmpi eq, %13, %14 : vector<2x16xi32>
    %16 = arith.extui %15 : vector<2x16xi1> to vector<2x16xi32>
    %17 = arith.sitofp %16 : vector<2x16xi32> to vector<2x16xf32>
    %c0_14 = arith.constant 0 : index
    %c0_15 = arith.constant 0 : index
    %18 = vector.load %arg1[%c0_14, %c0_15] : memref<2x32xf32, #tpu.memory_space<vmem>>, vector<2x32xf32>
    %cst_16 = arith.constant dense<0.000000e+00> : vector<2x144xf32>
    %19 = tpu.matmul %18, %2, %cst_16 {dimension_numbers = #tpu.dot_dimension_numbers<[1], [0], [0], [1], [0, 0, 1, 1], [], []>} : vector<2x32xf32>, vector<32x144xf32>, vector<2x144xf32> -> vector<2x144xf32>
    %20 = vector.broadcast %3 : vector<1x144xf32> to vector<2x144xf32>
    %21 = arith.addf %19, %20 : vector<2x144xf32>
    %22 = vector.extract_strided_slice %21 {offsets = [0, 16], sizes = [2, 128], strides = [1, 1]} : vector<2x144xf32> to vector<2x128xf32>
    %23 = vector.extract_strided_slice %22 {offsets = [0, 0], sizes = [2, 96], strides = [1, 1]} : vector<2x128xf32> to vector<2x96xf32>
    %24 = vector.extract_strided_slice %22 {offsets = [0, 96], sizes = [2, 32], strides = [1, 1]} : vector<2x128xf32> to vector<2x32xf32>
    %25 = vector.shape_cast %24 : vector<2x32xf32> to vector<2x1x32xf32>
    %26 = vector.broadcast %25 : vector<2x1x32xf32> to vector<2x8x32xf32>
    %27 = arith.addf %26, %12 : vector<2x8x32xf32>
    %28 = math.tanh %27 : vector<2x8x32xf32>
    %29 = vector.broadcast %5 : vector<1x1x32xf32> to vector<2x8x32xf32>
    %30 = arith.mulf %28, %29 : vector<2x8x32xf32>
    %cst_17 = arith.constant dense<0.000000e+00> : vector<2x8xf32>
    %31 = vector.multi_reduction <add>, %30, %cst_17 [2] : vector<2x8x32xf32> to vector<2x8xf32>
    %cst_18 = arith.constant dense<0xFF800000> : vector<2xf32>
    %32 = vector.multi_reduction <maximumf>, %31, %cst_18 [1] : vector<2x8xf32> to vector<2xf32>
    %33 = vector.shape_cast %32 : vector<2xf32> to vector<2x1xf32>
    %34 = vector.broadcast %33 : vector<2x1xf32> to vector<2x8xf32>
    %35 = arith.subf %31, %34 : vector<2x8xf32>
    %36 = math.exp %35 : vector<2x8xf32>
    %cst_19 = arith.constant dense<0.000000e+00> : vector<2xf32>
    %37 = vector.multi_reduction <add>, %36, %cst_19 [1] : vector<2x8xf32> to vector<2xf32>
    %38 = vector.shape_cast %37 : vector<2xf32> to vector<2x1xf32>
    %39 = tpu.reciprocal %38 {approx = true} : vector<2x1xf32> -> vector<2x1xf32>
    %40 = arith.mulf %38, %39 : vector<2x1xf32>
    %cst_20 = arith.constant 2.000000e+00 : f32
    %41 = vector.broadcast %cst_20 : f32 to vector<2x1xf32>
    %42 = arith.subf %41, %40 : vector<2x1xf32>
    %43 = arith.mulf %39, %42 : vector<2x1xf32>
    %44 = vector.broadcast %43 : vector<2x1xf32> to vector<2x8xf32>
    %45 = arith.mulf %36, %44 : vector<2x8xf32>
    %46 = vector.shape_cast %45 : vector<2x8xf32> to vector<2x1x8xf32>
    "tpu.trace_start"() <{level = 10 : i32, message = "bqs,bsh->bqh"}> : () -> ()
    %cst_21 = arith.constant dense<0.000000e+00> : vector<2x1x32xf32>
    %47 = tpu.matmul %46, %0, %cst_21 {dimension_numbers = #tpu.dot_dimension_numbers<[2], [1], [1], [2], [0, 0, 0, 1, 1, 2], [0], [0]>} : vector<2x1x8xf32>, vector<2x8x32xf32>, vector<2x1x32xf32> -> vector<2x1x32xf32>
    "tpu.trace_stop"() : () -> ()
    %48 = vector.shape_cast %47 : vector<2x1x32xf32> to vector<2x32xf32>
    %49 = tpu.concatenate %17, %48 in 1 : vector<2x16xf32>, vector<2x32xf32> -> vector<2x48xf32>
    %cst_22 = arith.constant dense<0.000000e+00> : vector<2x96xf32>
    %50 = tpu.matmul %49, %1, %cst_22 {dimension_numbers = #tpu.dot_dimension_numbers<[1], [0], [0], [1], [0, 0, 1, 1], [], []>} : vector<2x48xf32>, vector<48x96xf32>, vector<2x96xf32> -> vector<2x96xf32>
    %51 = vector.extract_strided_slice %50 {offsets = [0, 0], sizes = [2, 32], strides = [1, 1]} : vector<2x96xf32> to vector<2x32xf32>
    %52 = vector.extract_strided_slice %23 {offsets = [0, 0], sizes = [2, 32], strides = [1, 1]} : vector<2x96xf32> to vector<2x32xf32>
    %53 = arith.addf %51, %52 : vector<2x32xf32>
    %54 = arith.negf %53 : vector<2x32xf32>
    %55 = math.exp %54 : vector<2x32xf32>
    %cst_23 = arith.constant 1.000000e+00 : f32
    %56 = vector.broadcast %cst_23 : f32 to vector<2x32xf32>
    %57 = arith.addf %56, %55 : vector<2x32xf32>
    %58 = arith.divf %56, %57 : vector<2x32xf32>
    %59 = vector.extract_strided_slice %50 {offsets = [0, 32], sizes = [2, 32], strides = [1, 1]} : vector<2x96xf32> to vector<2x32xf32>
    %60 = vector.extract_strided_slice %23 {offsets = [0, 32], sizes = [2, 32], strides = [1, 1]} : vector<2x96xf32> to vector<2x32xf32>
    %61 = arith.addf %59, %60 : vector<2x32xf32>
    %62 = arith.negf %61 : vector<2x32xf32>
    %63 = math.exp %62 : vector<2x32xf32>
    %cst_24 = arith.constant 1.000000e+00 : f32
    %64 = vector.broadcast %cst_24 : f32 to vector<2x32xf32>
    %65 = arith.addf %64, %63 : vector<2x32xf32>
    %66 = arith.divf %64, %65 : vector<2x32xf32>
    %67 = vector.extract_strided_slice %50 {offsets = [0, 64], sizes = [2, 32], strides = [1, 1]} : vector<2x96xf32> to vector<2x32xf32>
    %68 = vector.extract_strided_slice %23 {offsets = [0, 64], sizes = [2, 32], strides = [1, 1]} : vector<2x96xf32> to vector<2x32xf32>
    %69 = arith.mulf %58, %68 : vector<2x32xf32>
    %70 = arith.addf %67, %69 : vector<2x32xf32>
    %71 = math.tanh %70 : vector<2x32xf32>
    %cst_25 = arith.constant 1.000000e+00 : f32
    %72 = vector.broadcast %cst_25 : f32 to vector<2x32xf32>
    %73 = arith.subf %72, %66 : vector<2x32xf32>
    %74 = arith.mulf %73, %71 : vector<2x32xf32>
    %75 = arith.mulf %66, %18 : vector<2x32xf32>
    %76 = arith.addf %74, %75 : vector<2x32xf32>
    %cst_26 = arith.constant dense<0.000000e+00> : vector<2x144xf32>
    %77 = tpu.matmul %76, %2, %cst_26 {dimension_numbers = #tpu.dot_dimension_numbers<[1], [0], [0], [1], [0, 0, 1, 1], [], []>} : vector<2x32xf32>, vector<32x144xf32>, vector<2x144xf32> -> vector<2x144xf32>
    %78 = vector.broadcast %3 : vector<1x144xf32> to vector<2x144xf32>
    %79 = arith.addf %77, %78 : vector<2x144xf32>
    %80 = vector.extract_strided_slice %79 {offsets = [0, 0], sizes = [2, 16], strides = [1, 1]} : vector<2x144xf32> to vector<2x16xf32>
    %81 = vector.extract_strided_slice %79 {offsets = [0, 16], sizes = [2, 128], strides = [1, 1]} : vector<2x144xf32> to vector<2x128xf32>
    %cst_27 = arith.constant dense<0xFF800000> : vector<2xf32>
    %82 = vector.multi_reduction <maximumf>, %80, %cst_27 [1] : vector<2x16xf32> to vector<2xf32>
    %83 = vector.shape_cast %82 : vector<2xf32> to vector<2x1xf32>
    %84 = vector.broadcast %83 : vector<2x1xf32> to vector<2x16xf32>
    %85 = arith.subf %80, %84 : vector<2x16xf32>
    %86 = math.exp %85 : vector<2x16xf32>
    %cst_28 = arith.constant dense<0.000000e+00> : vector<2xf32>
    %87 = vector.multi_reduction <add>, %86, %cst_28 [1] : vector<2x16xf32> to vector<2xf32>
    %88 = vector.shape_cast %87 : vector<2xf32> to vector<2x1xf32>
    %89 = math.log %88 : vector<2x1xf32>
    %90 = arith.addf %89, %83 : vector<2x1xf32>
    %91 = vector.broadcast %90 : vector<2x1xf32> to vector<2x16xf32>
    %92 = arith.subf %80, %91 : vector<2x16xf32>
    %93 = vector.broadcast %83 : vector<2x1xf32> to vector<2x16xf32>
    %94 = arith.cmpf oeq, %80, %93 : vector<2x16xf32>
    %c16_i32 = arith.constant 16 : i32
    %95 = vector.broadcast %c16_i32 : i32 to vector<2x16xi32>
    %96 = arith.select %94, %13, %95 : vector<2x16xi1>, vector<2x16xi32>
    %cst_29 = arith.constant dense<2147483647> : vector<2xi32>
    %97 = vector.multi_reduction <minsi>, %96, %cst_29 [1] : vector<2x16xi32> to vector<2xi32>
    %98 = vector.shape_cast %97 : vector<2xi32> to vector<2x1xi32>
    %99 = vector.broadcast %98 : vector<2x1xi32> to vector<2x16xi32>
    %100 = arith.cmpi eq, %13, %99 : vector<2x16xi32>
    %101 = arith.extui %100 : vector<2x16xi1> to vector<2x16xi32>
    %102 = arith.sitofp %101 : vector<2x16xi32> to vector<2x16xf32>
    %103 = vector.extract_strided_slice %81 {offsets = [0, 0], sizes = [2, 96], strides = [1, 1]} : vector<2x128xf32> to vector<2x96xf32>
    %104 = vector.extract_strided_slice %81 {offsets = [0, 96], sizes = [2, 32], strides = [1, 1]} : vector<2x128xf32> to vector<2x32xf32>
    %105 = vector.shape_cast %104 : vector<2x32xf32> to vector<2x1x32xf32>
    %106 = vector.broadcast %105 : vector<2x1x32xf32> to vector<2x8x32xf32>
    %107 = arith.addf %106, %12 : vector<2x8x32xf32>
    %108 = math.tanh %107 : vector<2x8x32xf32>
    %109 = vector.broadcast %5 : vector<1x1x32xf32> to vector<2x8x32xf32>
    %110 = arith.mulf %108, %109 : vector<2x8x32xf32>
    %cst_30 = arith.constant dense<0.000000e+00> : vector<2x8xf32>
    %111 = vector.multi_reduction <add>, %110, %cst_30 [2] : vector<2x8x32xf32> to vector<2x8xf32>
    %cst_31 = arith.constant dense<0xFF800000> : vector<2xf32>
    %112 = vector.multi_reduction <maximumf>, %111, %cst_31 [1] : vector<2x8xf32> to vector<2xf32>
    %113 = vector.shape_cast %112 : vector<2xf32> to vector<2x1xf32>
    %114 = vector.broadcast %113 : vector<2x1xf32> to vector<2x8xf32>
    %115 = arith.subf %111, %114 : vector<2x8xf32>
    %116 = math.exp %115 : vector<2x8xf32>
    %cst_32 = arith.constant dense<0.000000e+00> : vector<2xf32>
    %117 = vector.multi_reduction <add>, %116, %cst_32 [1] : vector<2x8xf32> to vector<2xf32>
    %118 = vector.shape_cast %117 : vector<2xf32> to vector<2x1xf32>
    %119 = tpu.reciprocal %118 {approx = true} : vector<2x1xf32> -> vector<2x1xf32>
    %120 = arith.mulf %118, %119 : vector<2x1xf32>
    %cst_33 = arith.constant 2.000000e+00 : f32
    %121 = vector.broadcast %cst_33 : f32 to vector<2x1xf32>
    %122 = arith.subf %121, %120 : vector<2x1xf32>
    %123 = arith.mulf %119, %122 : vector<2x1xf32>
    %124 = vector.broadcast %123 : vector<2x1xf32> to vector<2x8xf32>
    %125 = arith.mulf %116, %124 : vector<2x8xf32>
    %126 = vector.shape_cast %125 : vector<2x8xf32> to vector<2x1x8xf32>
    "tpu.trace_start"() <{level = 10 : i32, message = "bqs,bsh->bqh"}> : () -> ()
    %cst_34 = arith.constant dense<0.000000e+00> : vector<2x1x32xf32>
    %127 = tpu.matmul %126, %0, %cst_34 {dimension_numbers = #tpu.dot_dimension_numbers<[2], [1], [1], [2], [0, 0, 0, 1, 1, 2], [0], [0]>} : vector<2x1x8xf32>, vector<2x8x32xf32>, vector<2x1x32xf32> -> vector<2x1x32xf32>
    "tpu.trace_stop"() : () -> ()
    %128 = vector.shape_cast %127 : vector<2x1x32xf32> to vector<2x32xf32>
    %129 = tpu.concatenate %102, %128 in 1 : vector<2x16xf32>, vector<2x32xf32> -> vector<2x48xf32>
    %cst_35 = arith.constant dense<0.000000e+00> : vector<2x96xf32>
    %130 = tpu.matmul %129, %1, %cst_35 {dimension_numbers = #tpu.dot_dimension_numbers<[1], [0], [0], [1], [0, 0, 1, 1], [], []>} : vector<2x48xf32>, vector<48x96xf32>, vector<2x96xf32> -> vector<2x96xf32>
    %131 = vector.extract_strided_slice %130 {offsets = [0, 0], sizes = [2, 32], strides = [1, 1]} : vector<2x96xf32> to vector<2x32xf32>
    %132 = vector.extract_strided_slice %103 {offsets = [0, 0], sizes = [2, 32], strides = [1, 1]} : vector<2x96xf32> to vector<2x32xf32>
    %133 = arith.addf %131, %132 : vector<2x32xf32>
    %134 = arith.negf %133 : vector<2x32xf32>
    %135 = math.exp %134 : vector<2x32xf32>
    %cst_36 = arith.constant 1.000000e+00 : f32
    %136 = vector.broadcast %cst_36 : f32 to vector<2x32xf32>
    %137 = arith.addf %136, %135 : vector<2x32xf32>
    %138 = arith.divf %136, %137 : vector<2x32xf32>
    %139 = vector.extract_strided_slice %130 {offsets = [0, 32], sizes = [2, 32], strides = [1, 1]} : vector<2x96xf32> to vector<2x32xf32>
    %140 = vector.extract_strided_slice %103 {offsets = [0, 32], sizes = [2, 32], strides = [1, 1]} : vector<2x96xf32> to vector<2x32xf32>
    %141 = arith.addf %139, %140 : vector<2x32xf32>
    %142 = arith.negf %141 : vector<2x32xf32>
    %143 = math.exp %142 : vector<2x32xf32>
    %cst_37 = arith.constant 1.000000e+00 : f32
    %144 = vector.broadcast %cst_37 : f32 to vector<2x32xf32>
    %145 = arith.addf %144, %143 : vector<2x32xf32>
    %146 = arith.divf %144, %145 : vector<2x32xf32>
    %147 = vector.extract_strided_slice %130 {offsets = [0, 64], sizes = [2, 32], strides = [1, 1]} : vector<2x96xf32> to vector<2x32xf32>
    %148 = vector.extract_strided_slice %103 {offsets = [0, 64], sizes = [2, 32], strides = [1, 1]} : vector<2x96xf32> to vector<2x32xf32>
    %149 = arith.mulf %138, %148 : vector<2x32xf32>
    %150 = arith.addf %147, %149 : vector<2x32xf32>
    %151 = math.tanh %150 : vector<2x32xf32>
    %cst_38 = arith.constant 1.000000e+00 : f32
    %152 = vector.broadcast %cst_38 : f32 to vector<2x32xf32>
    %153 = arith.subf %152, %146 : vector<2x32xf32>
    %154 = arith.mulf %153, %151 : vector<2x32xf32>
    %155 = arith.mulf %146, %76 : vector<2x32xf32>
    %156 = arith.addf %154, %155 : vector<2x32xf32>
    %cst_39 = arith.constant dense<0.000000e+00> : vector<2x144xf32>
    %157 = tpu.matmul %156, %2, %cst_39 {dimension_numbers = #tpu.dot_dimension_numbers<[1], [0], [0], [1], [0, 0, 1, 1], [], []>} : vector<2x32xf32>, vector<32x144xf32>, vector<2x144xf32> -> vector<2x144xf32>
    %158 = vector.broadcast %3 : vector<1x144xf32> to vector<2x144xf32>
    %159 = arith.addf %157, %158 : vector<2x144xf32>
    %160 = vector.extract_strided_slice %159 {offsets = [0, 0], sizes = [2, 16], strides = [1, 1]} : vector<2x144xf32> to vector<2x16xf32>
    %161 = vector.extract_strided_slice %159 {offsets = [0, 16], sizes = [2, 128], strides = [1, 1]} : vector<2x144xf32> to vector<2x128xf32>
    %cst_40 = arith.constant dense<0xFF800000> : vector<2xf32>
    %162 = vector.multi_reduction <maximumf>, %160, %cst_40 [1] : vector<2x16xf32> to vector<2xf32>
    %163 = vector.shape_cast %162 : vector<2xf32> to vector<2x1xf32>
    %164 = vector.broadcast %163 : vector<2x1xf32> to vector<2x16xf32>
    %165 = arith.subf %160, %164 : vector<2x16xf32>
    %166 = math.exp %165 : vector<2x16xf32>
    %cst_41 = arith.constant dense<0.000000e+00> : vector<2xf32>
    %167 = vector.multi_reduction <add>, %166, %cst_41 [1] : vector<2x16xf32> to vector<2xf32>
    %168 = vector.shape_cast %167 : vector<2xf32> to vector<2x1xf32>
    %169 = math.log %168 : vector<2x1xf32>
    %170 = arith.addf %169, %163 : vector<2x1xf32>
    %171 = vector.broadcast %170 : vector<2x1xf32> to vector<2x16xf32>
    %172 = arith.subf %160, %171 : vector<2x16xf32>
    %173 = vector.broadcast %163 : vector<2x1xf32> to vector<2x16xf32>
    %174 = arith.cmpf oeq, %160, %173 : vector<2x16xf32>
    %c16_i32_42 = arith.constant 16 : i32
    %175 = vector.broadcast %c16_i32_42 : i32 to vector<2x16xi32>
    %176 = arith.select %174, %13, %175 : vector<2x16xi1>, vector<2x16xi32>
    %cst_43 = arith.constant dense<2147483647> : vector<2xi32>
    %177 = vector.multi_reduction <minsi>, %176, %cst_43 [1] : vector<2x16xi32> to vector<2xi32>
    %178 = vector.shape_cast %177 : vector<2xi32> to vector<2x1xi32>
    %179 = vector.broadcast %178 : vector<2x1xi32> to vector<2x16xi32>
    %180 = arith.cmpi eq, %13, %179 : vector<2x16xi32>
    %181 = arith.extui %180 : vector<2x16xi1> to vector<2x16xi32>
    %182 = arith.sitofp %181 : vector<2x16xi32> to vector<2x16xf32>
    %183 = vector.extract_strided_slice %161 {offsets = [0, 0], sizes = [2, 96], strides = [1, 1]} : vector<2x128xf32> to vector<2x96xf32>
    %184 = vector.extract_strided_slice %161 {offsets = [0, 96], sizes = [2, 32], strides = [1, 1]} : vector<2x128xf32> to vector<2x32xf32>
    %185 = vector.shape_cast %184 : vector<2x32xf32> to vector<2x1x32xf32>
    %186 = vector.broadcast %185 : vector<2x1x32xf32> to vector<2x8x32xf32>
    %187 = arith.addf %186, %12 : vector<2x8x32xf32>
    %188 = math.tanh %187 : vector<2x8x32xf32>
    %189 = vector.broadcast %5 : vector<1x1x32xf32> to vector<2x8x32xf32>
    %190 = arith.mulf %188, %189 : vector<2x8x32xf32>
    %cst_44 = arith.constant dense<0.000000e+00> : vector<2x8xf32>
    %191 = vector.multi_reduction <add>, %190, %cst_44 [2] : vector<2x8x32xf32> to vector<2x8xf32>
    %cst_45 = arith.constant dense<0xFF800000> : vector<2xf32>
    %192 = vector.multi_reduction <maximumf>, %191, %cst_45 [1] : vector<2x8xf32> to vector<2xf32>
    %193 = vector.shape_cast %192 : vector<2xf32> to vector<2x1xf32>
    %194 = vector.broadcast %193 : vector<2x1xf32> to vector<2x8xf32>
    %195 = arith.subf %191, %194 : vector<2x8xf32>
    %196 = math.exp %195 : vector<2x8xf32>
    %cst_46 = arith.constant dense<0.000000e+00> : vector<2xf32>
    %197 = vector.multi_reduction <add>, %196, %cst_46 [1] : vector<2x8xf32> to vector<2xf32>
    %198 = vector.shape_cast %197 : vector<2xf32> to vector<2x1xf32>
    %199 = tpu.reciprocal %198 {approx = true} : vector<2x1xf32> -> vector<2x1xf32>
    %200 = arith.mulf %198, %199 : vector<2x1xf32>
    %cst_47 = arith.constant 2.000000e+00 : f32
    %201 = vector.broadcast %cst_47 : f32 to vector<2x1xf32>
    %202 = arith.subf %201, %200 : vector<2x1xf32>
    %203 = arith.mulf %199, %202 : vector<2x1xf32>
    %204 = vector.broadcast %203 : vector<2x1xf32> to vector<2x8xf32>
    %205 = arith.mulf %196, %204 : vector<2x8xf32>
    %206 = vector.shape_cast %205 : vector<2x8xf32> to vector<2x1x8xf32>
    "tpu.trace_start"() <{level = 10 : i32, message = "bqs,bsh->bqh"}> : () -> ()
    %cst_48 = arith.constant dense<0.000000e+00> : vector<2x1x32xf32>
    %207 = tpu.matmul %206, %0, %cst_48 {dimension_numbers = #tpu.dot_dimension_numbers<[2], [1], [1], [2], [0, 0, 0, 1, 1, 2], [0], [0]>} : vector<2x1x8xf32>, vector<2x8x32xf32>, vector<2x1x32xf32> -> vector<2x1x32xf32>
    "tpu.trace_stop"() : () -> ()
    %208 = vector.shape_cast %207 : vector<2x1x32xf32> to vector<2x32xf32>
    %209 = tpu.concatenate %182, %208 in 1 : vector<2x16xf32>, vector<2x32xf32> -> vector<2x48xf32>
    %cst_49 = arith.constant dense<0.000000e+00> : vector<2x96xf32>
    %210 = tpu.matmul %209, %1, %cst_49 {dimension_numbers = #tpu.dot_dimension_numbers<[1], [0], [0], [1], [0, 0, 1, 1], [], []>} : vector<2x48xf32>, vector<48x96xf32>, vector<2x96xf32> -> vector<2x96xf32>
    %211 = vector.extract_strided_slice %210 {offsets = [0, 0], sizes = [2, 32], strides = [1, 1]} : vector<2x96xf32> to vector<2x32xf32>
    %212 = vector.extract_strided_slice %183 {offsets = [0, 0], sizes = [2, 32], strides = [1, 1]} : vector<2x96xf32> to vector<2x32xf32>
    %213 = arith.addf %211, %212 : vector<2x32xf32>
    %214 = arith.negf %213 : vector<2x32xf32>
    %215 = math.exp %214 : vector<2x32xf32>
    %cst_50 = arith.constant 1.000000e+00 : f32
    %216 = vector.broadcast %cst_50 : f32 to vector<2x32xf32>
    %217 = arith.addf %216, %215 : vector<2x32xf32>
    %218 = arith.divf %216, %217 : vector<2x32xf32>
    %219 = vector.extract_strided_slice %210 {offsets = [0, 32], sizes = [2, 32], strides = [1, 1]} : vector<2x96xf32> to vector<2x32xf32>
    %220 = vector.extract_strided_slice %183 {offsets = [0, 32], sizes = [2, 32], strides = [1, 1]} : vector<2x96xf32> to vector<2x32xf32>
    %221 = arith.addf %219, %220 : vector<2x32xf32>
    %222 = arith.negf %221 : vector<2x32xf32>
    %223 = math.exp %222 : vector<2x32xf32>
    %cst_51 = arith.constant 1.000000e+00 : f32
    %224 = vector.broadcast %cst_51 : f32 to vector<2x32xf32>
    %225 = arith.addf %224, %223 : vector<2x32xf32>
    %226 = arith.divf %224, %225 : vector<2x32xf32>
    %227 = vector.extract_strided_slice %210 {offsets = [0, 64], sizes = [2, 32], strides = [1, 1]} : vector<2x96xf32> to vector<2x32xf32>
    %228 = vector.extract_strided_slice %183 {offsets = [0, 64], sizes = [2, 32], strides = [1, 1]} : vector<2x96xf32> to vector<2x32xf32>
    %229 = arith.mulf %218, %228 : vector<2x32xf32>
    %230 = arith.addf %227, %229 : vector<2x32xf32>
    %231 = math.tanh %230 : vector<2x32xf32>
    %cst_52 = arith.constant 1.000000e+00 : f32
    %232 = vector.broadcast %cst_52 : f32 to vector<2x32xf32>
    %233 = arith.subf %232, %226 : vector<2x32xf32>
    %234 = arith.mulf %233, %231 : vector<2x32xf32>
    %235 = arith.mulf %226, %156 : vector<2x32xf32>
    %236 = arith.addf %234, %235 : vector<2x32xf32>
    %cst_53 = arith.constant dense<0.000000e+00> : vector<2x144xf32>
    %237 = tpu.matmul %236, %2, %cst_53 {dimension_numbers = #tpu.dot_dimension_numbers<[1], [0], [0], [1], [0, 0, 1, 1], [], []>} : vector<2x32xf32>, vector<32x144xf32>, vector<2x144xf32> -> vector<2x144xf32>
    %238 = vector.broadcast %3 : vector<1x144xf32> to vector<2x144xf32>
    %239 = arith.addf %237, %238 : vector<2x144xf32>
    %240 = vector.extract_strided_slice %239 {offsets = [0, 0], sizes = [2, 16], strides = [1, 1]} : vector<2x144xf32> to vector<2x16xf32>
    %241 = vector.extract_strided_slice %239 {offsets = [0, 16], sizes = [2, 128], strides = [1, 1]} : vector<2x144xf32> to vector<2x128xf32>
    %cst_54 = arith.constant dense<0xFF800000> : vector<2xf32>
    %242 = vector.multi_reduction <maximumf>, %240, %cst_54 [1] : vector<2x16xf32> to vector<2xf32>
    %243 = vector.shape_cast %242 : vector<2xf32> to vector<2x1xf32>
    %244 = vector.broadcast %243 : vector<2x1xf32> to vector<2x16xf32>
    %245 = arith.subf %240, %244 : vector<2x16xf32>
    %246 = math.exp %245 : vector<2x16xf32>
    %cst_55 = arith.constant dense<0.000000e+00> : vector<2xf32>
    %247 = vector.multi_reduction <add>, %246, %cst_55 [1] : vector<2x16xf32> to vector<2xf32>
    %248 = vector.shape_cast %247 : vector<2xf32> to vector<2x1xf32>
    %249 = math.log %248 : vector<2x1xf32>
    %250 = arith.addf %249, %243 : vector<2x1xf32>
    %251 = vector.broadcast %250 : vector<2x1xf32> to vector<2x16xf32>
    %252 = arith.subf %240, %251 : vector<2x16xf32>
    %253 = vector.broadcast %243 : vector<2x1xf32> to vector<2x16xf32>
    %254 = arith.cmpf oeq, %240, %253 : vector<2x16xf32>
    %c16_i32_56 = arith.constant 16 : i32
    %255 = vector.broadcast %c16_i32_56 : i32 to vector<2x16xi32>
    %256 = arith.select %254, %13, %255 : vector<2x16xi1>, vector<2x16xi32>
    %cst_57 = arith.constant dense<2147483647> : vector<2xi32>
    %257 = vector.multi_reduction <minsi>, %256, %cst_57 [1] : vector<2x16xi32> to vector<2xi32>
    %258 = vector.shape_cast %257 : vector<2xi32> to vector<2x1xi32>
    %259 = vector.broadcast %258 : vector<2x1xi32> to vector<2x16xi32>
    %260 = arith.cmpi eq, %13, %259 : vector<2x16xi32>
    %261 = arith.extui %260 : vector<2x16xi1> to vector<2x16xi32>
    %262 = arith.sitofp %261 : vector<2x16xi32> to vector<2x16xf32>
    %263 = vector.extract_strided_slice %241 {offsets = [0, 0], sizes = [2, 96], strides = [1, 1]} : vector<2x128xf32> to vector<2x96xf32>
    %264 = vector.extract_strided_slice %241 {offsets = [0, 96], sizes = [2, 32], strides = [1, 1]} : vector<2x128xf32> to vector<2x32xf32>
    %265 = vector.shape_cast %264 : vector<2x32xf32> to vector<2x1x32xf32>
    %266 = vector.broadcast %265 : vector<2x1x32xf32> to vector<2x8x32xf32>
    %267 = arith.addf %266, %12 : vector<2x8x32xf32>
    %268 = math.tanh %267 : vector<2x8x32xf32>
    %269 = vector.broadcast %5 : vector<1x1x32xf32> to vector<2x8x32xf32>
    %270 = arith.mulf %268, %269 : vector<2x8x32xf32>
    %cst_58 = arith.constant dense<0.000000e+00> : vector<2x8xf32>
    %271 = vector.multi_reduction <add>, %270, %cst_58 [2] : vector<2x8x32xf32> to vector<2x8xf32>
    %cst_59 = arith.constant dense<0xFF800000> : vector<2xf32>
    %272 = vector.multi_reduction <maximumf>, %271, %cst_59 [1] : vector<2x8xf32> to vector<2xf32>
    %273 = vector.shape_cast %272 : vector<2xf32> to vector<2x1xf32>
    %274 = vector.broadcast %273 : vector<2x1xf32> to vector<2x8xf32>
    %275 = arith.subf %271, %274 : vector<2x8xf32>
    %276 = math.exp %275 : vector<2x8xf32>
    %cst_60 = arith.constant dense<0.000000e+00> : vector<2xf32>
    %277 = vector.multi_reduction <add>, %276, %cst_60 [1] : vector<2x8xf32> to vector<2xf32>
    %278 = vector.shape_cast %277 : vector<2xf32> to vector<2x1xf32>
    %279 = tpu.reciprocal %278 {approx = true} : vector<2x1xf32> -> vector<2x1xf32>
    %280 = arith.mulf %278, %279 : vector<2x1xf32>
    %cst_61 = arith.constant 2.000000e+00 : f32
    %281 = vector.broadcast %cst_61 : f32 to vector<2x1xf32>
    %282 = arith.subf %281, %280 : vector<2x1xf32>
    %283 = arith.mulf %279, %282 : vector<2x1xf32>
    %284 = vector.broadcast %283 : vector<2x1xf32> to vector<2x8xf32>
    %285 = arith.mulf %276, %284 : vector<2x8xf32>
    %286 = vector.shape_cast %285 : vector<2x8xf32> to vector<2x1x8xf32>
    "tpu.trace_start"() <{level = 10 : i32, message = "bqs,bsh->bqh"}> : () -> ()
    %cst_62 = arith.constant dense<0.000000e+00> : vector<2x1x32xf32>
    %287 = tpu.matmul %286, %0, %cst_62 {dimension_numbers = #tpu.dot_dimension_numbers<[2], [1], [1], [2], [0, 0, 0, 1, 1, 2], [0], [0]>} : vector<2x1x8xf32>, vector<2x8x32xf32>, vector<2x1x32xf32> -> vector<2x1x32xf32>
    "tpu.trace_stop"() : () -> ()
    %288 = vector.shape_cast %287 : vector<2x1x32xf32> to vector<2x32xf32>
    %289 = tpu.concatenate %262, %288 in 1 : vector<2x16xf32>, vector<2x32xf32> -> vector<2x48xf32>
    %cst_63 = arith.constant dense<0.000000e+00> : vector<2x96xf32>
    %290 = tpu.matmul %289, %1, %cst_63 {dimension_numbers = #tpu.dot_dimension_numbers<[1], [0], [0], [1], [0, 0, 1, 1], [], []>} : vector<2x48xf32>, vector<48x96xf32>, vector<2x96xf32> -> vector<2x96xf32>
    %291 = vector.extract_strided_slice %290 {offsets = [0, 0], sizes = [2, 32], strides = [1, 1]} : vector<2x96xf32> to vector<2x32xf32>
    %292 = vector.extract_strided_slice %263 {offsets = [0, 0], sizes = [2, 32], strides = [1, 1]} : vector<2x96xf32> to vector<2x32xf32>
    %293 = arith.addf %291, %292 : vector<2x32xf32>
    %294 = arith.negf %293 : vector<2x32xf32>
    %295 = math.exp %294 : vector<2x32xf32>
    %cst_64 = arith.constant 1.000000e+00 : f32
    %296 = vector.broadcast %cst_64 : f32 to vector<2x32xf32>
    %297 = arith.addf %296, %295 : vector<2x32xf32>
    %298 = arith.divf %296, %297 : vector<2x32xf32>
    %299 = vector.extract_strided_slice %290 {offsets = [0, 32], sizes = [2, 32], strides = [1, 1]} : vector<2x96xf32> to vector<2x32xf32>
    %300 = vector.extract_strided_slice %263 {offsets = [0, 32], sizes = [2, 32], strides = [1, 1]} : vector<2x96xf32> to vector<2x32xf32>
    %301 = arith.addf %299, %300 : vector<2x32xf32>
    %302 = arith.negf %301 : vector<2x32xf32>
    %303 = math.exp %302 : vector<2x32xf32>
    %cst_65 = arith.constant 1.000000e+00 : f32
    %304 = vector.broadcast %cst_65 : f32 to vector<2x32xf32>
    %305 = arith.addf %304, %303 : vector<2x32xf32>
    %306 = arith.divf %304, %305 : vector<2x32xf32>
    %307 = vector.extract_strided_slice %290 {offsets = [0, 64], sizes = [2, 32], strides = [1, 1]} : vector<2x96xf32> to vector<2x32xf32>
    %308 = vector.extract_strided_slice %263 {offsets = [0, 64], sizes = [2, 32], strides = [1, 1]} : vector<2x96xf32> to vector<2x32xf32>
    %309 = arith.mulf %298, %308 : vector<2x32xf32>
    %310 = arith.addf %307, %309 : vector<2x32xf32>
    %311 = math.tanh %310 : vector<2x32xf32>
    %cst_66 = arith.constant 1.000000e+00 : f32
    %312 = vector.broadcast %cst_66 : f32 to vector<2x32xf32>
    %313 = arith.subf %312, %306 : vector<2x32xf32>
    %314 = arith.mulf %313, %311 : vector<2x32xf32>
    %315 = arith.mulf %306, %236 : vector<2x32xf32>
    %316 = arith.addf %314, %315 : vector<2x32xf32>
    %cst_67 = arith.constant dense<0.000000e+00> : vector<2x144xf32>
    %317 = tpu.matmul %316, %2, %cst_67 {dimension_numbers = #tpu.dot_dimension_numbers<[1], [0], [0], [1], [0, 0, 1, 1], [], []>} : vector<2x32xf32>, vector<32x144xf32>, vector<2x144xf32> -> vector<2x144xf32>
    %318 = vector.broadcast %3 : vector<1x144xf32> to vector<2x144xf32>
    %319 = arith.addf %317, %318 : vector<2x144xf32>
    %320 = vector.extract_strided_slice %319 {offsets = [0, 0], sizes = [2, 16], strides = [1, 1]} : vector<2x144xf32> to vector<2x16xf32>
    %321 = vector.extract_strided_slice %319 {offsets = [0, 16], sizes = [2, 128], strides = [1, 1]} : vector<2x144xf32> to vector<2x128xf32>
    %cst_68 = arith.constant dense<0xFF800000> : vector<2xf32>
    %322 = vector.multi_reduction <maximumf>, %320, %cst_68 [1] : vector<2x16xf32> to vector<2xf32>
    %323 = vector.shape_cast %322 : vector<2xf32> to vector<2x1xf32>
    %324 = vector.broadcast %323 : vector<2x1xf32> to vector<2x16xf32>
    %325 = arith.subf %320, %324 : vector<2x16xf32>
    %326 = math.exp %325 : vector<2x16xf32>
    %cst_69 = arith.constant dense<0.000000e+00> : vector<2xf32>
    %327 = vector.multi_reduction <add>, %326, %cst_69 [1] : vector<2x16xf32> to vector<2xf32>
    %328 = vector.shape_cast %327 : vector<2xf32> to vector<2x1xf32>
    %329 = math.log %328 : vector<2x1xf32>
    %330 = arith.addf %329, %323 : vector<2x1xf32>
    %331 = vector.broadcast %330 : vector<2x1xf32> to vector<2x16xf32>
    %332 = arith.subf %320, %331 : vector<2x16xf32>
    %333 = vector.broadcast %323 : vector<2x1xf32> to vector<2x16xf32>
    %334 = arith.cmpf oeq, %320, %333 : vector<2x16xf32>
    %c16_i32_70 = arith.constant 16 : i32
    %335 = vector.broadcast %c16_i32_70 : i32 to vector<2x16xi32>
    %336 = arith.select %334, %13, %335 : vector<2x16xi1>, vector<2x16xi32>
    %cst_71 = arith.constant dense<2147483647> : vector<2xi32>
    %337 = vector.multi_reduction <minsi>, %336, %cst_71 [1] : vector<2x16xi32> to vector<2xi32>
    %338 = vector.shape_cast %337 : vector<2xi32> to vector<2x1xi32>
    %339 = vector.broadcast %338 : vector<2x1xi32> to vector<2x16xi32>
    %340 = arith.cmpi eq, %13, %339 : vector<2x16xi32>
    %341 = arith.extui %340 : vector<2x16xi1> to vector<2x16xi32>
    %342 = arith.sitofp %341 : vector<2x16xi32> to vector<2x16xf32>
    %343 = vector.extract_strided_slice %321 {offsets = [0, 0], sizes = [2, 96], strides = [1, 1]} : vector<2x128xf32> to vector<2x96xf32>
    %344 = vector.extract_strided_slice %321 {offsets = [0, 96], sizes = [2, 32], strides = [1, 1]} : vector<2x128xf32> to vector<2x32xf32>
    %345 = vector.shape_cast %344 : vector<2x32xf32> to vector<2x1x32xf32>
    %346 = vector.broadcast %345 : vector<2x1x32xf32> to vector<2x8x32xf32>
    %347 = arith.addf %346, %12 : vector<2x8x32xf32>
    %348 = math.tanh %347 : vector<2x8x32xf32>
    %349 = vector.broadcast %5 : vector<1x1x32xf32> to vector<2x8x32xf32>
    %350 = arith.mulf %348, %349 : vector<2x8x32xf32>
    %cst_72 = arith.constant dense<0.000000e+00> : vector<2x8xf32>
    %351 = vector.multi_reduction <add>, %350, %cst_72 [2] : vector<2x8x32xf32> to vector<2x8xf32>
    %cst_73 = arith.constant dense<0xFF800000> : vector<2xf32>
    %352 = vector.multi_reduction <maximumf>, %351, %cst_73 [1] : vector<2x8xf32> to vector<2xf32>
    %353 = vector.shape_cast %352 : vector<2xf32> to vector<2x1xf32>
    %354 = vector.broadcast %353 : vector<2x1xf32> to vector<2x8xf32>
    %355 = arith.subf %351, %354 : vector<2x8xf32>
    %356 = math.exp %355 : vector<2x8xf32>
    %cst_74 = arith.constant dense<0.000000e+00> : vector<2xf32>
    %357 = vector.multi_reduction <add>, %356, %cst_74 [1] : vector<2x8xf32> to vector<2xf32>
    %358 = vector.shape_cast %357 : vector<2xf32> to vector<2x1xf32>
    %359 = tpu.reciprocal %358 {approx = true} : vector<2x1xf32> -> vector<2x1xf32>
    %360 = arith.mulf %358, %359 : vector<2x1xf32>
    %cst_75 = arith.constant 2.000000e+00 : f32
    %361 = vector.broadcast %cst_75 : f32 to vector<2x1xf32>
    %362 = arith.subf %361, %360 : vector<2x1xf32>
    %363 = arith.mulf %359, %362 : vector<2x1xf32>
    %364 = vector.broadcast %363 : vector<2x1xf32> to vector<2x8xf32>
    %365 = arith.mulf %356, %364 : vector<2x8xf32>
    %366 = vector.shape_cast %365 : vector<2x8xf32> to vector<2x1x8xf32>
    "tpu.trace_start"() <{level = 10 : i32, message = "bqs,bsh->bqh"}> : () -> ()
    %cst_76 = arith.constant dense<0.000000e+00> : vector<2x1x32xf32>
    %367 = tpu.matmul %366, %0, %cst_76 {dimension_numbers = #tpu.dot_dimension_numbers<[2], [1], [1], [2], [0, 0, 0, 1, 1, 2], [0], [0]>} : vector<2x1x8xf32>, vector<2x8x32xf32>, vector<2x1x32xf32> -> vector<2x1x32xf32>
    "tpu.trace_stop"() : () -> ()
    %368 = vector.shape_cast %367 : vector<2x1x32xf32> to vector<2x32xf32>
    %369 = tpu.concatenate %342, %368 in 1 : vector<2x16xf32>, vector<2x32xf32> -> vector<2x48xf32>
    %cst_77 = arith.constant dense<0.000000e+00> : vector<2x96xf32>
    %370 = tpu.matmul %369, %1, %cst_77 {dimension_numbers = #tpu.dot_dimension_numbers<[1], [0], [0], [1], [0, 0, 1, 1], [], []>} : vector<2x48xf32>, vector<48x96xf32>, vector<2x96xf32> -> vector<2x96xf32>
    %371 = vector.extract_strided_slice %370 {offsets = [0, 0], sizes = [2, 32], strides = [1, 1]} : vector<2x96xf32> to vector<2x32xf32>
    %372 = vector.extract_strided_slice %343 {offsets = [0, 0], sizes = [2, 32], strides = [1, 1]} : vector<2x96xf32> to vector<2x32xf32>
    %373 = arith.addf %371, %372 : vector<2x32xf32>
    %374 = arith.negf %373 : vector<2x32xf32>
    %375 = math.exp %374 : vector<2x32xf32>
    %cst_78 = arith.constant 1.000000e+00 : f32
    %376 = vector.broadcast %cst_78 : f32 to vector<2x32xf32>
    %377 = arith.addf %376, %375 : vector<2x32xf32>
    %378 = arith.divf %376, %377 : vector<2x32xf32>
    %379 = vector.extract_strided_slice %370 {offsets = [0, 32], sizes = [2, 32], strides = [1, 1]} : vector<2x96xf32> to vector<2x32xf32>
    %380 = vector.extract_strided_slice %343 {offsets = [0, 32], sizes = [2, 32], strides = [1, 1]} : vector<2x96xf32> to vector<2x32xf32>
    %381 = arith.addf %379, %380 : vector<2x32xf32>
    %382 = arith.negf %381 : vector<2x32xf32>
    %383 = math.exp %382 : vector<2x32xf32>
    %cst_79 = arith.constant 1.000000e+00 : f32
    %384 = vector.broadcast %cst_79 : f32 to vector<2x32xf32>
    %385 = arith.addf %384, %383 : vector<2x32xf32>
    %386 = arith.divf %384, %385 : vector<2x32xf32>
    %387 = vector.extract_strided_slice %370 {offsets = [0, 64], sizes = [2, 32], strides = [1, 1]} : vector<2x96xf32> to vector<2x32xf32>
    %388 = vector.extract_strided_slice %343 {offsets = [0, 64], sizes = [2, 32], strides = [1, 1]} : vector<2x96xf32> to vector<2x32xf32>
    %389 = arith.mulf %378, %388 : vector<2x32xf32>
    %390 = arith.addf %387, %389 : vector<2x32xf32>
    %391 = math.tanh %390 : vector<2x32xf32>
    %cst_80 = arith.constant 1.000000e+00 : f32
    %392 = vector.broadcast %cst_80 : f32 to vector<2x32xf32>
    %393 = arith.subf %392, %386 : vector<2x32xf32>
    %394 = arith.mulf %393, %391 : vector<2x32xf32>
    %395 = arith.mulf %386, %316 : vector<2x32xf32>
    %396 = arith.addf %394, %395 : vector<2x32xf32>
    %cst_81 = arith.constant dense<0.000000e+00> : vector<2x144xf32>
    %397 = tpu.matmul %396, %2, %cst_81 {dimension_numbers = #tpu.dot_dimension_numbers<[1], [0], [0], [1], [0, 0, 1, 1], [], []>} : vector<2x32xf32>, vector<32x144xf32>, vector<2x144xf32> -> vector<2x144xf32>
    %398 = vector.broadcast %3 : vector<1x144xf32> to vector<2x144xf32>
    %399 = arith.addf %397, %398 : vector<2x144xf32>
    %400 = vector.extract_strided_slice %399 {offsets = [0, 0], sizes = [2, 16], strides = [1, 1]} : vector<2x144xf32> to vector<2x16xf32>
    %401 = vector.extract_strided_slice %399 {offsets = [0, 16], sizes = [2, 128], strides = [1, 1]} : vector<2x144xf32> to vector<2x128xf32>
    %cst_82 = arith.constant dense<0xFF800000> : vector<2xf32>
    %402 = vector.multi_reduction <maximumf>, %400, %cst_82 [1] : vector<2x16xf32> to vector<2xf32>
    %403 = vector.shape_cast %402 : vector<2xf32> to vector<2x1xf32>
    %404 = vector.broadcast %403 : vector<2x1xf32> to vector<2x16xf32>
    %405 = arith.subf %400, %404 : vector<2x16xf32>
    %406 = math.exp %405 : vector<2x16xf32>
    %cst_83 = arith.constant dense<0.000000e+00> : vector<2xf32>
    %407 = vector.multi_reduction <add>, %406, %cst_83 [1] : vector<2x16xf32> to vector<2xf32>
    %408 = vector.shape_cast %407 : vector<2xf32> to vector<2x1xf32>
    %409 = math.log %408 : vector<2x1xf32>
    %410 = arith.addf %409, %403 : vector<2x1xf32>
    %411 = vector.broadcast %410 : vector<2x1xf32> to vector<2x16xf32>
    %412 = arith.subf %400, %411 : vector<2x16xf32>
    %413 = vector.broadcast %403 : vector<2x1xf32> to vector<2x16xf32>
    %414 = arith.cmpf oeq, %400, %413 : vector<2x16xf32>
    %c16_i32_84 = arith.constant 16 : i32
    %415 = vector.broadcast %c16_i32_84 : i32 to vector<2x16xi32>
    %416 = arith.select %414, %13, %415 : vector<2x16xi1>, vector<2x16xi32>
    %cst_85 = arith.constant dense<2147483647> : vector<2xi32>
    %417 = vector.multi_reduction <minsi>, %416, %cst_85 [1] : vector<2x16xi32> to vector<2xi32>
    %418 = vector.shape_cast %417 : vector<2xi32> to vector<2x1xi32>
    %419 = vector.broadcast %418 : vector<2x1xi32> to vector<2x16xi32>
    %420 = arith.cmpi eq, %13, %419 : vector<2x16xi32>
    %421 = arith.extui %420 : vector<2x16xi1> to vector<2x16xi32>
    %422 = arith.sitofp %421 : vector<2x16xi32> to vector<2x16xf32>
    %423 = vector.extract_strided_slice %401 {offsets = [0, 0], sizes = [2, 96], strides = [1, 1]} : vector<2x128xf32> to vector<2x96xf32>
    %424 = vector.extract_strided_slice %401 {offsets = [0, 96], sizes = [2, 32], strides = [1, 1]} : vector<2x128xf32> to vector<2x32xf32>
    %425 = vector.shape_cast %424 : vector<2x32xf32> to vector<2x1x32xf32>
    %426 = vector.broadcast %425 : vector<2x1x32xf32> to vector<2x8x32xf32>
    %427 = arith.addf %426, %12 : vector<2x8x32xf32>
    %428 = math.tanh %427 : vector<2x8x32xf32>
    %429 = vector.broadcast %5 : vector<1x1x32xf32> to vector<2x8x32xf32>
    %430 = arith.mulf %428, %429 : vector<2x8x32xf32>
    %cst_86 = arith.constant dense<0.000000e+00> : vector<2x8xf32>
    %431 = vector.multi_reduction <add>, %430, %cst_86 [2] : vector<2x8x32xf32> to vector<2x8xf32>
    %cst_87 = arith.constant dense<0xFF800000> : vector<2xf32>
    %432 = vector.multi_reduction <maximumf>, %431, %cst_87 [1] : vector<2x8xf32> to vector<2xf32>
    %433 = vector.shape_cast %432 : vector<2xf32> to vector<2x1xf32>
    %434 = vector.broadcast %433 : vector<2x1xf32> to vector<2x8xf32>
    %435 = arith.subf %431, %434 : vector<2x8xf32>
    %436 = math.exp %435 : vector<2x8xf32>
    %cst_88 = arith.constant dense<0.000000e+00> : vector<2xf32>
    %437 = vector.multi_reduction <add>, %436, %cst_88 [1] : vector<2x8xf32> to vector<2xf32>
    %438 = vector.shape_cast %437 : vector<2xf32> to vector<2x1xf32>
    %439 = tpu.reciprocal %438 {approx = true} : vector<2x1xf32> -> vector<2x1xf32>
    %440 = arith.mulf %438, %439 : vector<2x1xf32>
    %cst_89 = arith.constant 2.000000e+00 : f32
    %441 = vector.broadcast %cst_89 : f32 to vector<2x1xf32>
    %442 = arith.subf %441, %440 : vector<2x1xf32>
    %443 = arith.mulf %439, %442 : vector<2x1xf32>
    %444 = vector.broadcast %443 : vector<2x1xf32> to vector<2x8xf32>
    %445 = arith.mulf %436, %444 : vector<2x8xf32>
    %446 = vector.shape_cast %445 : vector<2x8xf32> to vector<2x1x8xf32>
    "tpu.trace_start"() <{level = 10 : i32, message = "bqs,bsh->bqh"}> : () -> ()
    %cst_90 = arith.constant dense<0.000000e+00> : vector<2x1x32xf32>
    %447 = tpu.matmul %446, %0, %cst_90 {dimension_numbers = #tpu.dot_dimension_numbers<[2], [1], [1], [2], [0, 0, 0, 1, 1, 2], [0], [0]>} : vector<2x1x8xf32>, vector<2x8x32xf32>, vector<2x1x32xf32> -> vector<2x1x32xf32>
    "tpu.trace_stop"() : () -> ()
    %448 = vector.shape_cast %447 : vector<2x1x32xf32> to vector<2x32xf32>
    %449 = tpu.concatenate %422, %448 in 1 : vector<2x16xf32>, vector<2x32xf32> -> vector<2x48xf32>
    %cst_91 = arith.constant dense<0.000000e+00> : vector<2x96xf32>
    %450 = tpu.matmul %449, %1, %cst_91 {dimension_numbers = #tpu.dot_dimension_numbers<[1], [0], [0], [1], [0, 0, 1, 1], [], []>} : vector<2x48xf32>, vector<48x96xf32>, vector<2x96xf32> -> vector<2x96xf32>
    %451 = vector.extract_strided_slice %450 {offsets = [0, 0], sizes = [2, 32], strides = [1, 1]} : vector<2x96xf32> to vector<2x32xf32>
    %452 = vector.extract_strided_slice %423 {offsets = [0, 0], sizes = [2, 32], strides = [1, 1]} : vector<2x96xf32> to vector<2x32xf32>
    %453 = arith.addf %451, %452 : vector<2x32xf32>
    %454 = arith.negf %453 : vector<2x32xf32>
    %455 = math.exp %454 : vector<2x32xf32>
    %cst_92 = arith.constant 1.000000e+00 : f32
    %456 = vector.broadcast %cst_92 : f32 to vector<2x32xf32>
    %457 = arith.addf %456, %455 : vector<2x32xf32>
    %458 = arith.divf %456, %457 : vector<2x32xf32>
    %459 = vector.extract_strided_slice %450 {offsets = [0, 32], sizes = [2, 32], strides = [1, 1]} : vector<2x96xf32> to vector<2x32xf32>
    %460 = vector.extract_strided_slice %423 {offsets = [0, 32], sizes = [2, 32], strides = [1, 1]} : vector<2x96xf32> to vector<2x32xf32>
    %461 = arith.addf %459, %460 : vector<2x32xf32>
    %462 = arith.negf %461 : vector<2x32xf32>
    %463 = math.exp %462 : vector<2x32xf32>
    %cst_93 = arith.constant 1.000000e+00 : f32
    %464 = vector.broadcast %cst_93 : f32 to vector<2x32xf32>
    %465 = arith.addf %464, %463 : vector<2x32xf32>
    %466 = arith.divf %464, %465 : vector<2x32xf32>
    %467 = vector.extract_strided_slice %450 {offsets = [0, 64], sizes = [2, 32], strides = [1, 1]} : vector<2x96xf32> to vector<2x32xf32>
    %468 = vector.extract_strided_slice %423 {offsets = [0, 64], sizes = [2, 32], strides = [1, 1]} : vector<2x96xf32> to vector<2x32xf32>
    %469 = arith.mulf %458, %468 : vector<2x32xf32>
    %470 = arith.addf %467, %469 : vector<2x32xf32>
    %471 = math.tanh %470 : vector<2x32xf32>
    %cst_94 = arith.constant 1.000000e+00 : f32
    %472 = vector.broadcast %cst_94 : f32 to vector<2x32xf32>
    %473 = arith.subf %472, %466 : vector<2x32xf32>
    %474 = arith.mulf %473, %471 : vector<2x32xf32>
    %475 = arith.mulf %466, %396 : vector<2x32xf32>
    %476 = arith.addf %474, %475 : vector<2x32xf32>
    %cst_95 = arith.constant dense<0.000000e+00> : vector<2x144xf32>
    %477 = tpu.matmul %476, %2, %cst_95 {dimension_numbers = #tpu.dot_dimension_numbers<[1], [0], [0], [1], [0, 0, 1, 1], [], []>} : vector<2x32xf32>, vector<32x144xf32>, vector<2x144xf32> -> vector<2x144xf32>
    %478 = vector.broadcast %3 : vector<1x144xf32> to vector<2x144xf32>
    %479 = arith.addf %477, %478 : vector<2x144xf32>
    %480 = vector.extract_strided_slice %479 {offsets = [0, 0], sizes = [2, 16], strides = [1, 1]} : vector<2x144xf32> to vector<2x16xf32>
    %481 = vector.extract_strided_slice %479 {offsets = [0, 16], sizes = [2, 128], strides = [1, 1]} : vector<2x144xf32> to vector<2x128xf32>
    %cst_96 = arith.constant dense<0xFF800000> : vector<2xf32>
    %482 = vector.multi_reduction <maximumf>, %480, %cst_96 [1] : vector<2x16xf32> to vector<2xf32>
    %483 = vector.shape_cast %482 : vector<2xf32> to vector<2x1xf32>
    %484 = vector.broadcast %483 : vector<2x1xf32> to vector<2x16xf32>
    %485 = arith.subf %480, %484 : vector<2x16xf32>
    %486 = math.exp %485 : vector<2x16xf32>
    %cst_97 = arith.constant dense<0.000000e+00> : vector<2xf32>
    %487 = vector.multi_reduction <add>, %486, %cst_97 [1] : vector<2x16xf32> to vector<2xf32>
    %488 = vector.shape_cast %487 : vector<2xf32> to vector<2x1xf32>
    %489 = math.log %488 : vector<2x1xf32>
    %490 = arith.addf %489, %483 : vector<2x1xf32>
    %491 = vector.broadcast %490 : vector<2x1xf32> to vector<2x16xf32>
    %492 = arith.subf %480, %491 : vector<2x16xf32>
    %493 = vector.broadcast %483 : vector<2x1xf32> to vector<2x16xf32>
    %494 = arith.cmpf oeq, %480, %493 : vector<2x16xf32>
    %c16_i32_98 = arith.constant 16 : i32
    %495 = vector.broadcast %c16_i32_98 : i32 to vector<2x16xi32>
    %496 = arith.select %494, %13, %495 : vector<2x16xi1>, vector<2x16xi32>
    %cst_99 = arith.constant dense<2147483647> : vector<2xi32>
    %497 = vector.multi_reduction <minsi>, %496, %cst_99 [1] : vector<2x16xi32> to vector<2xi32>
    %498 = vector.shape_cast %497 : vector<2xi32> to vector<2x1xi32>
    %499 = vector.broadcast %498 : vector<2x1xi32> to vector<2x16xi32>
    %500 = arith.cmpi eq, %13, %499 : vector<2x16xi32>
    %501 = arith.extui %500 : vector<2x16xi1> to vector<2x16xi32>
    %502 = arith.sitofp %501 : vector<2x16xi32> to vector<2x16xf32>
    %503 = vector.extract_strided_slice %481 {offsets = [0, 0], sizes = [2, 96], strides = [1, 1]} : vector<2x128xf32> to vector<2x96xf32>
    %504 = vector.extract_strided_slice %481 {offsets = [0, 96], sizes = [2, 32], strides = [1, 1]} : vector<2x128xf32> to vector<2x32xf32>
    %505 = vector.shape_cast %504 : vector<2x32xf32> to vector<2x1x32xf32>
    %506 = vector.broadcast %505 : vector<2x1x32xf32> to vector<2x8x32xf32>
    %507 = arith.addf %506, %12 : vector<2x8x32xf32>
    %508 = math.tanh %507 : vector<2x8x32xf32>
    %509 = vector.broadcast %5 : vector<1x1x32xf32> to vector<2x8x32xf32>
    %510 = arith.mulf %508, %509 : vector<2x8x32xf32>
    %cst_100 = arith.constant dense<0.000000e+00> : vector<2x8xf32>
    %511 = vector.multi_reduction <add>, %510, %cst_100 [2] : vector<2x8x32xf32> to vector<2x8xf32>
    %cst_101 = arith.constant dense<0xFF800000> : vector<2xf32>
    %512 = vector.multi_reduction <maximumf>, %511, %cst_101 [1] : vector<2x8xf32> to vector<2xf32>
    %513 = vector.shape_cast %512 : vector<2xf32> to vector<2x1xf32>
    %514 = vector.broadcast %513 : vector<2x1xf32> to vector<2x8xf32>
    %515 = arith.subf %511, %514 : vector<2x8xf32>
    %516 = math.exp %515 : vector<2x8xf32>
    %cst_102 = arith.constant dense<0.000000e+00> : vector<2xf32>
    %517 = vector.multi_reduction <add>, %516, %cst_102 [1] : vector<2x8xf32> to vector<2xf32>
    %518 = vector.shape_cast %517 : vector<2xf32> to vector<2x1xf32>
    %519 = tpu.reciprocal %518 {approx = true} : vector<2x1xf32> -> vector<2x1xf32>
    %520 = arith.mulf %518, %519 : vector<2x1xf32>
    %cst_103 = arith.constant 2.000000e+00 : f32
    %521 = vector.broadcast %cst_103 : f32 to vector<2x1xf32>
    %522 = arith.subf %521, %520 : vector<2x1xf32>
    %523 = arith.mulf %519, %522 : vector<2x1xf32>
    %524 = vector.broadcast %523 : vector<2x1xf32> to vector<2x8xf32>
    %525 = arith.mulf %516, %524 : vector<2x8xf32>
    %526 = vector.shape_cast %525 : vector<2x8xf32> to vector<2x1x8xf32>
    "tpu.trace_start"() <{level = 10 : i32, message = "bqs,bsh->bqh"}> : () -> ()
    %cst_104 = arith.constant dense<0.000000e+00> : vector<2x1x32xf32>
    %527 = tpu.matmul %526, %0, %cst_104 {dimension_numbers = #tpu.dot_dimension_numbers<[2], [1], [1], [2], [0, 0, 0, 1, 1, 2], [0], [0]>} : vector<2x1x8xf32>, vector<2x8x32xf32>, vector<2x1x32xf32> -> vector<2x1x32xf32>
    "tpu.trace_stop"() : () -> ()
    %528 = vector.shape_cast %527 : vector<2x1x32xf32> to vector<2x32xf32>
    %529 = tpu.concatenate %502, %528 in 1 : vector<2x16xf32>, vector<2x32xf32> -> vector<2x48xf32>
    %cst_105 = arith.constant dense<0.000000e+00> : vector<2x96xf32>
    %530 = tpu.matmul %529, %1, %cst_105 {dimension_numbers = #tpu.dot_dimension_numbers<[1], [0], [0], [1], [0, 0, 1, 1], [], []>} : vector<2x48xf32>, vector<48x96xf32>, vector<2x96xf32> -> vector<2x96xf32>
    %531 = vector.extract_strided_slice %530 {offsets = [0, 0], sizes = [2, 32], strides = [1, 1]} : vector<2x96xf32> to vector<2x32xf32>
    %532 = vector.extract_strided_slice %503 {offsets = [0, 0], sizes = [2, 32], strides = [1, 1]} : vector<2x96xf32> to vector<2x32xf32>
    %533 = arith.addf %531, %532 : vector<2x32xf32>
    %534 = arith.negf %533 : vector<2x32xf32>
    %535 = math.exp %534 : vector<2x32xf32>
    %cst_106 = arith.constant 1.000000e+00 : f32
    %536 = vector.broadcast %cst_106 : f32 to vector<2x32xf32>
    %537 = arith.addf %536, %535 : vector<2x32xf32>
    %538 = arith.divf %536, %537 : vector<2x32xf32>
    %539 = vector.extract_strided_slice %530 {offsets = [0, 32], sizes = [2, 32], strides = [1, 1]} : vector<2x96xf32> to vector<2x32xf32>
    %540 = vector.extract_strided_slice %503 {offsets = [0, 32], sizes = [2, 32], strides = [1, 1]} : vector<2x96xf32> to vector<2x32xf32>
    %541 = arith.addf %539, %540 : vector<2x32xf32>
    %542 = arith.negf %541 : vector<2x32xf32>
    %543 = math.exp %542 : vector<2x32xf32>
    %cst_107 = arith.constant 1.000000e+00 : f32
    %544 = vector.broadcast %cst_107 : f32 to vector<2x32xf32>
    %545 = arith.addf %544, %543 : vector<2x32xf32>
    %546 = arith.divf %544, %545 : vector<2x32xf32>
    %547 = vector.extract_strided_slice %530 {offsets = [0, 64], sizes = [2, 32], strides = [1, 1]} : vector<2x96xf32> to vector<2x32xf32>
    %548 = vector.extract_strided_slice %503 {offsets = [0, 64], sizes = [2, 32], strides = [1, 1]} : vector<2x96xf32> to vector<2x32xf32>
    %549 = arith.mulf %538, %548 : vector<2x32xf32>
    %550 = arith.addf %547, %549 : vector<2x32xf32>
    %551 = math.tanh %550 : vector<2x32xf32>
    %cst_108 = arith.constant 1.000000e+00 : f32
    %552 = vector.broadcast %cst_108 : f32 to vector<2x32xf32>
    %553 = arith.subf %552, %546 : vector<2x32xf32>
    %554 = arith.mulf %553, %551 : vector<2x32xf32>
    %555 = arith.mulf %546, %476 : vector<2x32xf32>
    %556 = arith.addf %554, %555 : vector<2x32xf32>
    %cst_109 = arith.constant dense<0.000000e+00> : vector<2x144xf32>
    %557 = tpu.matmul %556, %2, %cst_109 {dimension_numbers = #tpu.dot_dimension_numbers<[1], [0], [0], [1], [0, 0, 1, 1], [], []>} : vector<2x32xf32>, vector<32x144xf32>, vector<2x144xf32> -> vector<2x144xf32>
    %558 = vector.broadcast %3 : vector<1x144xf32> to vector<2x144xf32>
    %559 = arith.addf %557, %558 : vector<2x144xf32>
    %560 = vector.extract_strided_slice %559 {offsets = [0, 0], sizes = [2, 16], strides = [1, 1]} : vector<2x144xf32> to vector<2x16xf32>
    %561 = vector.extract_strided_slice %559 {offsets = [0, 16], sizes = [2, 128], strides = [1, 1]} : vector<2x144xf32> to vector<2x128xf32>
    %cst_110 = arith.constant dense<0xFF800000> : vector<2xf32>
    %562 = vector.multi_reduction <maximumf>, %560, %cst_110 [1] : vector<2x16xf32> to vector<2xf32>
    %563 = vector.shape_cast %562 : vector<2xf32> to vector<2x1xf32>
    %564 = vector.broadcast %563 : vector<2x1xf32> to vector<2x16xf32>
    %565 = arith.subf %560, %564 : vector<2x16xf32>
    %566 = math.exp %565 : vector<2x16xf32>
    %cst_111 = arith.constant dense<0.000000e+00> : vector<2xf32>
    %567 = vector.multi_reduction <add>, %566, %cst_111 [1] : vector<2x16xf32> to vector<2xf32>
    %568 = vector.shape_cast %567 : vector<2xf32> to vector<2x1xf32>
    %569 = math.log %568 : vector<2x1xf32>
    %570 = arith.addf %569, %563 : vector<2x1xf32>
    %571 = vector.broadcast %570 : vector<2x1xf32> to vector<2x16xf32>
    %572 = arith.subf %560, %571 : vector<2x16xf32>
    %573 = vector.broadcast %563 : vector<2x1xf32> to vector<2x16xf32>
    %574 = arith.cmpf oeq, %560, %573 : vector<2x16xf32>
    %c16_i32_112 = arith.constant 16 : i32
    %575 = vector.broadcast %c16_i32_112 : i32 to vector<2x16xi32>
    %576 = arith.select %574, %13, %575 : vector<2x16xi1>, vector<2x16xi32>
    %cst_113 = arith.constant dense<2147483647> : vector<2xi32>
    %577 = vector.multi_reduction <minsi>, %576, %cst_113 [1] : vector<2x16xi32> to vector<2xi32>
    %578 = vector.shape_cast %577 : vector<2xi32> to vector<2x1xi32>
    %579 = vector.broadcast %578 : vector<2x1xi32> to vector<2x16xi32>
    %580 = arith.cmpi eq, %13, %579 : vector<2x16xi32>
    %581 = arith.extui %580 : vector<2x16xi1> to vector<2x16xi32>
    %582 = arith.sitofp %581 : vector<2x16xi32> to vector<2x16xf32>
    %583 = vector.extract_strided_slice %561 {offsets = [0, 0], sizes = [2, 96], strides = [1, 1]} : vector<2x128xf32> to vector<2x96xf32>
    %584 = vector.extract_strided_slice %561 {offsets = [0, 96], sizes = [2, 32], strides = [1, 1]} : vector<2x128xf32> to vector<2x32xf32>
    %585 = vector.shape_cast %584 : vector<2x32xf32> to vector<2x1x32xf32>
    %586 = vector.broadcast %585 : vector<2x1x32xf32> to vector<2x8x32xf32>
    %587 = arith.addf %586, %12 : vector<2x8x32xf32>
    %588 = math.tanh %587 : vector<2x8x32xf32>
    %589 = vector.broadcast %5 : vector<1x1x32xf32> to vector<2x8x32xf32>
    %590 = arith.mulf %588, %589 : vector<2x8x32xf32>
    %cst_114 = arith.constant dense<0.000000e+00> : vector<2x8xf32>
    %591 = vector.multi_reduction <add>, %590, %cst_114 [2] : vector<2x8x32xf32> to vector<2x8xf32>
    %cst_115 = arith.constant dense<0xFF800000> : vector<2xf32>
    %592 = vector.multi_reduction <maximumf>, %591, %cst_115 [1] : vector<2x8xf32> to vector<2xf32>
    %593 = vector.shape_cast %592 : vector<2xf32> to vector<2x1xf32>
    %594 = vector.broadcast %593 : vector<2x1xf32> to vector<2x8xf32>
    %595 = arith.subf %591, %594 : vector<2x8xf32>
    %596 = math.exp %595 : vector<2x8xf32>
    %cst_116 = arith.constant dense<0.000000e+00> : vector<2xf32>
    %597 = vector.multi_reduction <add>, %596, %cst_116 [1] : vector<2x8xf32> to vector<2xf32>
    %598 = vector.shape_cast %597 : vector<2xf32> to vector<2x1xf32>
    %599 = tpu.reciprocal %598 {approx = true} : vector<2x1xf32> -> vector<2x1xf32>
    %600 = arith.mulf %598, %599 : vector<2x1xf32>
    %cst_117 = arith.constant 2.000000e+00 : f32
    %601 = vector.broadcast %cst_117 : f32 to vector<2x1xf32>
    %602 = arith.subf %601, %600 : vector<2x1xf32>
    %603 = arith.mulf %599, %602 : vector<2x1xf32>
    %604 = vector.broadcast %603 : vector<2x1xf32> to vector<2x8xf32>
    %605 = arith.mulf %596, %604 : vector<2x8xf32>
    %606 = vector.shape_cast %605 : vector<2x8xf32> to vector<2x1x8xf32>
    "tpu.trace_start"() <{level = 10 : i32, message = "bqs,bsh->bqh"}> : () -> ()
    %cst_118 = arith.constant dense<0.000000e+00> : vector<2x1x32xf32>
    %607 = tpu.matmul %606, %0, %cst_118 {dimension_numbers = #tpu.dot_dimension_numbers<[2], [1], [1], [2], [0, 0, 0, 1, 1, 2], [0], [0]>} : vector<2x1x8xf32>, vector<2x8x32xf32>, vector<2x1x32xf32> -> vector<2x1x32xf32>
    "tpu.trace_stop"() : () -> ()
    %608 = vector.shape_cast %607 : vector<2x1x32xf32> to vector<2x32xf32>
    %609 = tpu.concatenate %582, %608 in 1 : vector<2x16xf32>, vector<2x32xf32> -> vector<2x48xf32>
    %cst_119 = arith.constant dense<0.000000e+00> : vector<2x96xf32>
    %610 = tpu.matmul %609, %1, %cst_119 {dimension_numbers = #tpu.dot_dimension_numbers<[1], [0], [0], [1], [0, 0, 1, 1], [], []>} : vector<2x48xf32>, vector<48x96xf32>, vector<2x96xf32> -> vector<2x96xf32>
    %611 = vector.extract_strided_slice %610 {offsets = [0, 0], sizes = [2, 32], strides = [1, 1]} : vector<2x96xf32> to vector<2x32xf32>
    %612 = vector.extract_strided_slice %583 {offsets = [0, 0], sizes = [2, 32], strides = [1, 1]} : vector<2x96xf32> to vector<2x32xf32>
    %613 = arith.addf %611, %612 : vector<2x32xf32>
    %614 = arith.negf %613 : vector<2x32xf32>
    %615 = math.exp %614 : vector<2x32xf32>
    %cst_120 = arith.constant 1.000000e+00 : f32
    %616 = vector.broadcast %cst_120 : f32 to vector<2x32xf32>
    %617 = arith.addf %616, %615 : vector<2x32xf32>
    %618 = arith.divf %616, %617 : vector<2x32xf32>
    %619 = vector.extract_strided_slice %610 {offsets = [0, 32], sizes = [2, 32], strides = [1, 1]} : vector<2x96xf32> to vector<2x32xf32>
    %620 = vector.extract_strided_slice %583 {offsets = [0, 32], sizes = [2, 32], strides = [1, 1]} : vector<2x96xf32> to vector<2x32xf32>
    %621 = arith.addf %619, %620 : vector<2x32xf32>
    %622 = arith.negf %621 : vector<2x32xf32>
    %623 = math.exp %622 : vector<2x32xf32>
    %cst_121 = arith.constant 1.000000e+00 : f32
    %624 = vector.broadcast %cst_121 : f32 to vector<2x32xf32>
    %625 = arith.addf %624, %623 : vector<2x32xf32>
    %626 = arith.divf %624, %625 : vector<2x32xf32>
    %627 = vector.extract_strided_slice %610 {offsets = [0, 64], sizes = [2, 32], strides = [1, 1]} : vector<2x96xf32> to vector<2x32xf32>
    %628 = vector.extract_strided_slice %583 {offsets = [0, 64], sizes = [2, 32], strides = [1, 1]} : vector<2x96xf32> to vector<2x32xf32>
    %629 = arith.mulf %618, %628 : vector<2x32xf32>
    %630 = arith.addf %627, %629 : vector<2x32xf32>
    %631 = math.tanh %630 : vector<2x32xf32>
    %cst_122 = arith.constant 1.000000e+00 : f32
    %632 = vector.broadcast %cst_122 : f32 to vector<2x32xf32>
    %633 = arith.subf %632, %626 : vector<2x32xf32>
    %634 = arith.mulf %633, %631 : vector<2x32xf32>
    %635 = arith.mulf %626, %556 : vector<2x32xf32>
    %636 = arith.addf %634, %635 : vector<2x32xf32>
    %cst_123 = arith.constant dense<0.000000e+00> : vector<2x144xf32>
    %637 = tpu.matmul %636, %2, %cst_123 {dimension_numbers = #tpu.dot_dimension_numbers<[1], [0], [0], [1], [0, 0, 1, 1], [], []>} : vector<2x32xf32>, vector<32x144xf32>, vector<2x144xf32> -> vector<2x144xf32>
    %638 = vector.broadcast %3 : vector<1x144xf32> to vector<2x144xf32>
    %639 = arith.addf %637, %638 : vector<2x144xf32>
    %640 = vector.extract_strided_slice %639 {offsets = [0, 0], sizes = [2, 16], strides = [1, 1]} : vector<2x144xf32> to vector<2x16xf32>
    %641 = vector.extract_strided_slice %639 {offsets = [0, 16], sizes = [2, 128], strides = [1, 1]} : vector<2x144xf32> to vector<2x128xf32>
    %cst_124 = arith.constant dense<0xFF800000> : vector<2xf32>
    %642 = vector.multi_reduction <maximumf>, %640, %cst_124 [1] : vector<2x16xf32> to vector<2xf32>
    %643 = vector.shape_cast %642 : vector<2xf32> to vector<2x1xf32>
    %644 = vector.broadcast %643 : vector<2x1xf32> to vector<2x16xf32>
    %645 = arith.subf %640, %644 : vector<2x16xf32>
    %646 = math.exp %645 : vector<2x16xf32>
    %cst_125 = arith.constant dense<0.000000e+00> : vector<2xf32>
    %647 = vector.multi_reduction <add>, %646, %cst_125 [1] : vector<2x16xf32> to vector<2xf32>
    %648 = vector.shape_cast %647 : vector<2xf32> to vector<2x1xf32>
    %649 = math.log %648 : vector<2x1xf32>
    %650 = arith.addf %649, %643 : vector<2x1xf32>
    %651 = vector.broadcast %650 : vector<2x1xf32> to vector<2x16xf32>
    %652 = arith.subf %640, %651 : vector<2x16xf32>
    %653 = vector.broadcast %643 : vector<2x1xf32> to vector<2x16xf32>
    %654 = arith.cmpf oeq, %640, %653 : vector<2x16xf32>
    %c16_i32_126 = arith.constant 16 : i32
    %655 = vector.broadcast %c16_i32_126 : i32 to vector<2x16xi32>
    %656 = arith.select %654, %13, %655 : vector<2x16xi1>, vector<2x16xi32>
    %cst_127 = arith.constant dense<2147483647> : vector<2xi32>
    %657 = vector.multi_reduction <minsi>, %656, %cst_127 [1] : vector<2x16xi32> to vector<2xi32>
    %658 = vector.shape_cast %657 : vector<2xi32> to vector<2x1xi32>
    %659 = vector.broadcast %658 : vector<2x1xi32> to vector<2x16xi32>
    %660 = arith.cmpi eq, %13, %659 : vector<2x16xi32>
    %661 = arith.extui %660 : vector<2x16xi1> to vector<2x16xi32>
    %662 = arith.sitofp %661 : vector<2x16xi32> to vector<2x16xf32>
    %663 = vector.extract_strided_slice %641 {offsets = [0, 0], sizes = [2, 96], strides = [1, 1]} : vector<2x128xf32> to vector<2x96xf32>
    %664 = vector.extract_strided_slice %641 {offsets = [0, 96], sizes = [2, 32], strides = [1, 1]} : vector<2x128xf32> to vector<2x32xf32>
    %665 = vector.shape_cast %664 : vector<2x32xf32> to vector<2x1x32xf32>
    %666 = vector.broadcast %665 : vector<2x1x32xf32> to vector<2x8x32xf32>
    %667 = arith.addf %666, %12 : vector<2x8x32xf32>
    %668 = math.tanh %667 : vector<2x8x32xf32>
    %669 = vector.broadcast %5 : vector<1x1x32xf32> to vector<2x8x32xf32>
    %670 = arith.mulf %668, %669 : vector<2x8x32xf32>
    %cst_128 = arith.constant dense<0.000000e+00> : vector<2x8xf32>
    %671 = vector.multi_reduction <add>, %670, %cst_128 [2] : vector<2x8x32xf32> to vector<2x8xf32>
    %cst_129 = arith.constant dense<0xFF800000> : vector<2xf32>
    %672 = vector.multi_reduction <maximumf>, %671, %cst_129 [1] : vector<2x8xf32> to vector<2xf32>
    %673 = vector.shape_cast %672 : vector<2xf32> to vector<2x1xf32>
    %674 = vector.broadcast %673 : vector<2x1xf32> to vector<2x8xf32>
    %675 = arith.subf %671, %674 : vector<2x8xf32>
    %676 = math.exp %675 : vector<2x8xf32>
    %cst_130 = arith.constant dense<0.000000e+00> : vector<2xf32>
    %677 = vector.multi_reduction <add>, %676, %cst_130 [1] : vector<2x8xf32> to vector<2xf32>
    %678 = vector.shape_cast %677 : vector<2xf32> to vector<2x1xf32>
    %679 = tpu.reciprocal %678 {approx = true} : vector<2x1xf32> -> vector<2x1xf32>
    %680 = arith.mulf %678, %679 : vector<2x1xf32>
    %cst_131 = arith.constant 2.000000e+00 : f32
    %681 = vector.broadcast %cst_131 : f32 to vector<2x1xf32>
    %682 = arith.subf %681, %680 : vector<2x1xf32>
    %683 = arith.mulf %679, %682 : vector<2x1xf32>
    %684 = vector.broadcast %683 : vector<2x1xf32> to vector<2x8xf32>
    %685 = arith.mulf %676, %684 : vector<2x8xf32>
    %686 = vector.shape_cast %685 : vector<2x8xf32> to vector<2x1x8xf32>
    "tpu.trace_start"() <{level = 10 : i32, message = "bqs,bsh->bqh"}> : () -> ()
    %cst_132 = arith.constant dense<0.000000e+00> : vector<2x1x32xf32>
    %687 = tpu.matmul %686, %0, %cst_132 {dimension_numbers = #tpu.dot_dimension_numbers<[2], [1], [1], [2], [0, 0, 0, 1, 1, 2], [0], [0]>} : vector<2x1x8xf32>, vector<2x8x32xf32>, vector<2x1x32xf32> -> vector<2x1x32xf32>
    "tpu.trace_stop"() : () -> ()
    %688 = vector.shape_cast %687 : vector<2x1x32xf32> to vector<2x32xf32>
    %689 = tpu.concatenate %662, %688 in 1 : vector<2x16xf32>, vector<2x32xf32> -> vector<2x48xf32>
    %cst_133 = arith.constant dense<0.000000e+00> : vector<2x96xf32>
    %690 = tpu.matmul %689, %1, %cst_133 {dimension_numbers = #tpu.dot_dimension_numbers<[1], [0], [0], [1], [0, 0, 1, 1], [], []>} : vector<2x48xf32>, vector<48x96xf32>, vector<2x96xf32> -> vector<2x96xf32>
    %691 = vector.extract_strided_slice %690 {offsets = [0, 0], sizes = [2, 32], strides = [1, 1]} : vector<2x96xf32> to vector<2x32xf32>
    %692 = vector.extract_strided_slice %663 {offsets = [0, 0], sizes = [2, 32], strides = [1, 1]} : vector<2x96xf32> to vector<2x32xf32>
    %693 = arith.addf %691, %692 : vector<2x32xf32>
    %694 = arith.negf %693 : vector<2x32xf32>
    %695 = math.exp %694 : vector<2x32xf32>
    %cst_134 = arith.constant 1.000000e+00 : f32
    %696 = vector.broadcast %cst_134 : f32 to vector<2x32xf32>
    %697 = arith.addf %696, %695 : vector<2x32xf32>
    %698 = arith.divf %696, %697 : vector<2x32xf32>
    %699 = vector.extract_strided_slice %690 {offsets = [0, 32], sizes = [2, 32], strides = [1, 1]} : vector<2x96xf32> to vector<2x32xf32>
    %700 = vector.extract_strided_slice %663 {offsets = [0, 32], sizes = [2, 32], strides = [1, 1]} : vector<2x96xf32> to vector<2x32xf32>
    %701 = arith.addf %699, %700 : vector<2x32xf32>
    %702 = arith.negf %701 : vector<2x32xf32>
    %703 = math.exp %702 : vector<2x32xf32>
    %cst_135 = arith.constant 1.000000e+00 : f32
    %704 = vector.broadcast %cst_135 : f32 to vector<2x32xf32>
    %705 = arith.addf %704, %703 : vector<2x32xf32>
    %706 = arith.divf %704, %705 : vector<2x32xf32>
    %707 = vector.extract_strided_slice %690 {offsets = [0, 64], sizes = [2, 32], strides = [1, 1]} : vector<2x96xf32> to vector<2x32xf32>
    %708 = vector.extract_strided_slice %663 {offsets = [0, 64], sizes = [2, 32], strides = [1, 1]} : vector<2x96xf32> to vector<2x32xf32>
    %709 = arith.mulf %698, %708 : vector<2x32xf32>
    %710 = arith.addf %707, %709 : vector<2x32xf32>
    %711 = math.tanh %710 : vector<2x32xf32>
    %cst_136 = arith.constant 1.000000e+00 : f32
    %712 = vector.broadcast %cst_136 : f32 to vector<2x32xf32>
    %713 = arith.subf %712, %706 : vector<2x32xf32>
    %714 = arith.mulf %713, %711 : vector<2x32xf32>
    %715 = arith.mulf %706, %636 : vector<2x32xf32>
    %716 = arith.addf %714, %715 : vector<2x32xf32>
    %cst_137 = arith.constant dense<0.000000e+00> : vector<2x144xf32>
    %717 = tpu.matmul %716, %2, %cst_137 {dimension_numbers = #tpu.dot_dimension_numbers<[1], [0], [0], [1], [0, 0, 1, 1], [], []>} : vector<2x32xf32>, vector<32x144xf32>, vector<2x144xf32> -> vector<2x144xf32>
    %718 = vector.broadcast %3 : vector<1x144xf32> to vector<2x144xf32>
    %719 = arith.addf %717, %718 : vector<2x144xf32>
    %720 = vector.extract_strided_slice %719 {offsets = [0, 0], sizes = [2, 16], strides = [1, 1]} : vector<2x144xf32> to vector<2x16xf32>
    %721 = vector.extract_strided_slice %719 {offsets = [0, 16], sizes = [2, 128], strides = [1, 1]} : vector<2x144xf32> to vector<2x128xf32>
    %cst_138 = arith.constant dense<0xFF800000> : vector<2xf32>
    %722 = vector.multi_reduction <maximumf>, %720, %cst_138 [1] : vector<2x16xf32> to vector<2xf32>
    %723 = vector.shape_cast %722 : vector<2xf32> to vector<2x1xf32>
    %724 = vector.broadcast %723 : vector<2x1xf32> to vector<2x16xf32>
    %725 = arith.subf %720, %724 : vector<2x16xf32>
    %726 = math.exp %725 : vector<2x16xf32>
    %cst_139 = arith.constant dense<0.000000e+00> : vector<2xf32>
    %727 = vector.multi_reduction <add>, %726, %cst_139 [1] : vector<2x16xf32> to vector<2xf32>
    %728 = vector.shape_cast %727 : vector<2xf32> to vector<2x1xf32>
    %729 = math.log %728 : vector<2x1xf32>
    %730 = arith.addf %729, %723 : vector<2x1xf32>
    %731 = vector.broadcast %730 : vector<2x1xf32> to vector<2x16xf32>
    %732 = arith.subf %720, %731 : vector<2x16xf32>
    %733 = vector.broadcast %723 : vector<2x1xf32> to vector<2x16xf32>
    %734 = arith.cmpf oeq, %720, %733 : vector<2x16xf32>
    %c16_i32_140 = arith.constant 16 : i32
    %735 = vector.broadcast %c16_i32_140 : i32 to vector<2x16xi32>
    %736 = arith.select %734, %13, %735 : vector<2x16xi1>, vector<2x16xi32>
    %cst_141 = arith.constant dense<2147483647> : vector<2xi32>
    %737 = vector.multi_reduction <minsi>, %736, %cst_141 [1] : vector<2x16xi32> to vector<2xi32>
    %738 = vector.shape_cast %737 : vector<2xi32> to vector<2x1xi32>
    %739 = vector.broadcast %738 : vector<2x1xi32> to vector<2x16xi32>
    %740 = arith.cmpi eq, %13, %739 : vector<2x16xi32>
    %741 = arith.extui %740 : vector<2x16xi1> to vector<2x16xi32>
    %742 = arith.sitofp %741 : vector<2x16xi32> to vector<2x16xf32>
    %743 = vector.extract_strided_slice %721 {offsets = [0, 0], sizes = [2, 96], strides = [1, 1]} : vector<2x128xf32> to vector<2x96xf32>
    %744 = vector.extract_strided_slice %721 {offsets = [0, 96], sizes = [2, 32], strides = [1, 1]} : vector<2x128xf32> to vector<2x32xf32>
    %745 = vector.shape_cast %744 : vector<2x32xf32> to vector<2x1x32xf32>
    %746 = vector.broadcast %745 : vector<2x1x32xf32> to vector<2x8x32xf32>
    %747 = arith.addf %746, %12 : vector<2x8x32xf32>
    %748 = math.tanh %747 : vector<2x8x32xf32>
    %749 = vector.broadcast %5 : vector<1x1x32xf32> to vector<2x8x32xf32>
    %750 = arith.mulf %748, %749 : vector<2x8x32xf32>
    %cst_142 = arith.constant dense<0.000000e+00> : vector<2x8xf32>
    %751 = vector.multi_reduction <add>, %750, %cst_142 [2] : vector<2x8x32xf32> to vector<2x8xf32>
    %cst_143 = arith.constant dense<0xFF800000> : vector<2xf32>
    %752 = vector.multi_reduction <maximumf>, %751, %cst_143 [1] : vector<2x8xf32> to vector<2xf32>
    %753 = vector.shape_cast %752 : vector<2xf32> to vector<2x1xf32>
    %754 = vector.broadcast %753 : vector<2x1xf32> to vector<2x8xf32>
    %755 = arith.subf %751, %754 : vector<2x8xf32>
    %756 = math.exp %755 : vector<2x8xf32>
    %cst_144 = arith.constant dense<0.000000e+00> : vector<2xf32>
    %757 = vector.multi_reduction <add>, %756, %cst_144 [1] : vector<2x8xf32> to vector<2xf32>
    %758 = vector.shape_cast %757 : vector<2xf32> to vector<2x1xf32>
    %759 = tpu.reciprocal %758 {approx = true} : vector<2x1xf32> -> vector<2x1xf32>
    %760 = arith.mulf %758, %759 : vector<2x1xf32>
    %cst_145 = arith.constant 2.000000e+00 : f32
    %761 = vector.broadcast %cst_145 : f32 to vector<2x1xf32>
    %762 = arith.subf %761, %760 : vector<2x1xf32>
    %763 = arith.mulf %759, %762 : vector<2x1xf32>
    %764 = vector.broadcast %763 : vector<2x1xf32> to vector<2x8xf32>
    %765 = arith.mulf %756, %764 : vector<2x8xf32>
    %766 = vector.shape_cast %765 : vector<2x8xf32> to vector<2x1x8xf32>
    "tpu.trace_start"() <{level = 10 : i32, message = "bqs,bsh->bqh"}> : () -> ()
    %cst_146 = arith.constant dense<0.000000e+00> : vector<2x1x32xf32>
    %767 = tpu.matmul %766, %0, %cst_146 {dimension_numbers = #tpu.dot_dimension_numbers<[2], [1], [1], [2], [0, 0, 0, 1, 1, 2], [0], [0]>} : vector<2x1x8xf32>, vector<2x8x32xf32>, vector<2x1x32xf32> -> vector<2x1x32xf32>
    "tpu.trace_stop"() : () -> ()
    %768 = vector.shape_cast %767 : vector<2x1x32xf32> to vector<2x32xf32>
    %769 = tpu.concatenate %742, %768 in 1 : vector<2x16xf32>, vector<2x32xf32> -> vector<2x48xf32>
    %cst_147 = arith.constant dense<0.000000e+00> : vector<2x96xf32>
    %770 = tpu.matmul %769, %1, %cst_147 {dimension_numbers = #tpu.dot_dimension_numbers<[1], [0], [0], [1], [0, 0, 1, 1], [], []>} : vector<2x48xf32>, vector<48x96xf32>, vector<2x96xf32> -> vector<2x96xf32>
    %771 = vector.extract_strided_slice %770 {offsets = [0, 0], sizes = [2, 32], strides = [1, 1]} : vector<2x96xf32> to vector<2x32xf32>
    %772 = vector.extract_strided_slice %743 {offsets = [0, 0], sizes = [2, 32], strides = [1, 1]} : vector<2x96xf32> to vector<2x32xf32>
    %773 = arith.addf %771, %772 : vector<2x32xf32>
    %774 = arith.negf %773 : vector<2x32xf32>
    %775 = math.exp %774 : vector<2x32xf32>
    %cst_148 = arith.constant 1.000000e+00 : f32
    %776 = vector.broadcast %cst_148 : f32 to vector<2x32xf32>
    %777 = arith.addf %776, %775 : vector<2x32xf32>
    %778 = arith.divf %776, %777 : vector<2x32xf32>
    %779 = vector.extract_strided_slice %770 {offsets = [0, 32], sizes = [2, 32], strides = [1, 1]} : vector<2x96xf32> to vector<2x32xf32>
    %780 = vector.extract_strided_slice %743 {offsets = [0, 32], sizes = [2, 32], strides = [1, 1]} : vector<2x96xf32> to vector<2x32xf32>
    %781 = arith.addf %779, %780 : vector<2x32xf32>
    %782 = arith.negf %781 : vector<2x32xf32>
    %783 = math.exp %782 : vector<2x32xf32>
    %cst_149 = arith.constant 1.000000e+00 : f32
    %784 = vector.broadcast %cst_149 : f32 to vector<2x32xf32>
    %785 = arith.addf %784, %783 : vector<2x32xf32>
    %786 = arith.divf %784, %785 : vector<2x32xf32>
    %787 = vector.extract_strided_slice %770 {offsets = [0, 64], sizes = [2, 32], strides = [1, 1]} : vector<2x96xf32> to vector<2x32xf32>
    %788 = vector.extract_strided_slice %743 {offsets = [0, 64], sizes = [2, 32], strides = [1, 1]} : vector<2x96xf32> to vector<2x32xf32>
    %789 = arith.mulf %778, %788 : vector<2x32xf32>
    %790 = arith.addf %787, %789 : vector<2x32xf32>
    %791 = math.tanh %790 : vector<2x32xf32>
    %cst_150 = arith.constant 1.000000e+00 : f32
    %792 = vector.broadcast %cst_150 : f32 to vector<2x32xf32>
    %793 = arith.subf %792, %786 : vector<2x32xf32>
    %794 = arith.mulf %793, %791 : vector<2x32xf32>
    %795 = arith.mulf %786, %716 : vector<2x32xf32>
    %796 = arith.addf %794, %795 : vector<2x32xf32>
    %cst_151 = arith.constant dense<0.000000e+00> : vector<2x144xf32>
    %797 = tpu.matmul %796, %2, %cst_151 {dimension_numbers = #tpu.dot_dimension_numbers<[1], [0], [0], [1], [0, 0, 1, 1], [], []>} : vector<2x32xf32>, vector<32x144xf32>, vector<2x144xf32> -> vector<2x144xf32>
    %798 = vector.broadcast %3 : vector<1x144xf32> to vector<2x144xf32>
    %799 = arith.addf %797, %798 : vector<2x144xf32>
    %800 = vector.extract_strided_slice %799 {offsets = [0, 0], sizes = [2, 16], strides = [1, 1]} : vector<2x144xf32> to vector<2x16xf32>
    %cst_152 = arith.constant dense<0xFF800000> : vector<2xf32>
    %801 = vector.multi_reduction <maximumf>, %800, %cst_152 [1] : vector<2x16xf32> to vector<2xf32>
    %802 = vector.shape_cast %801 : vector<2xf32> to vector<2x1xf32>
    %803 = vector.broadcast %802 : vector<2x1xf32> to vector<2x16xf32>
    %804 = arith.subf %800, %803 : vector<2x16xf32>
    %805 = math.exp %804 : vector<2x16xf32>
    %cst_153 = arith.constant dense<0.000000e+00> : vector<2xf32>
    %806 = vector.multi_reduction <add>, %805, %cst_153 [1] : vector<2x16xf32> to vector<2xf32>
    %807 = vector.shape_cast %806 : vector<2xf32> to vector<2x1xf32>
    %808 = math.log %807 : vector<2x1xf32>
    %809 = arith.addf %808, %802 : vector<2x1xf32>
    %810 = vector.broadcast %809 : vector<2x1xf32> to vector<2x16xf32>
    %811 = arith.subf %800, %810 : vector<2x16xf32>
    %812 = tpu.concatenate %92, %172, %252, %332, %412, %492, %572, %652, %732, %811 in 1 : vector<2x16xf32>, vector<2x16xf32>, vector<2x16xf32>, vector<2x16xf32>, vector<2x16xf32>, vector<2x16xf32>, vector<2x16xf32>, vector<2x16xf32>, vector<2x16xf32>, vector<2x16xf32> -> vector<2x160xf32>
    %c0_154 = arith.constant 0 : index
    %c0_155 = arith.constant 0 : index
    %813 = vector.load %arg8[%c0_154, %c0_155] : memref<2x160xf32, #tpu.memory_space<vmem>>, vector<2x160xf32>
    tpu.vector_store %arg8[%c0_154, %c0_155], %812 {strides = array<i32>} : memref<2x160xf32, #tpu.memory_space<vmem>>, vector<2x160xf32>,
    %814 = tpu.concatenate %45, %125, %205, %285, %365, %445, %525, %605, %685, %765 in 1 : vector<2x8xf32>, vector<2x8xf32>, vector<2x8xf32>, vector<2x8xf32>, vector<2x8xf32>, vector<2x8xf32>, vector<2x8xf32>, vector<2x8xf32>, vector<2x8xf32>, vector<2x8xf32> -> vector<2x80xf32>
    %c0_156 = arith.constant 0 : index
    %c0_157 = arith.constant 0 : index
    %815 = vector.load %arg10[%c0_156, %c0_157] : memref<2x80xf32, #tpu.memory_space<vmem>>, vector<2x80xf32>
    tpu.vector_store %arg10[%c0_156, %c0_157], %814 {strides = array<i32>} : memref<2x80xf32, #tpu.memory_space<vmem>>, vector<2x80xf32>,
    %c0_158 = arith.constant 0 : index
    %c0_159 = arith.constant 0 : index
    %816 = vector.load %arg9[%c0_158, %c0_159] : memref<2x32xf32, #tpu.memory_space<vmem>>, vector<2x32xf32>
    tpu.vector_store %arg9[%c0_158, %c0_159], %796 {strides = array<i32>} : memref<2x32xf32, #tpu.memory_space<vmem>>, vector<2x32xf32>,
    return
  }
}

</mosaic_0001>

<bundles_post_ra>
// kernel: attn_decoder_forward.1
= control target key start
LH: loop header
LB: loop body
LE: loop exit
PB: predicated region body
PF: predicated region fallthrough
CT: control target
= control target key end

     0   :  { %vm62_vm0 = vcmask 261120   ;;  %v6621_v6 = vmov 0.0   ;;  %s7918_s0 = inlined_call_operand.vmem [shape: f32[2,8,32], index: 0, kind: input, shape index: {}]   ;;  %s7919_s1 = inlined_call_operand.vmem [shape: f32[2,32], index: 1, kind: input, shape index: {}]   ;;  %s7920_s2 = inlined_call_operand.vmem [shape: f32[48,96], index: 2, kind: input, shape index: {}]   ;;  %s7921_s3 = inlined_call_operand.vmem [shape: f32[32,144], index: 3, kind: input, shape index: {}]   ;;  %s7922_s4 = inlined_call_operand.vmem [shape: f32[1,144], index: 4, kind: input, shape index: {}]   ;;  %s7923_s5 = inlined_call_operand.vmem [shape: f32[32,32], index: 5, kind: input, shape index: {}]   ;;  %s7924_s6 = inlined_call_operand.vmem [shape: f32[1,32], index: 6, kind: input, shape index: {}]   ;;  %s7925_s7 = inlined_call_operand.vmem [shape: f32[1,32], index: 7, kind: input, shape index: {}]   ;;  %s7926_s8 = inlined_call_operand.vmem [shape: f32[2,160], index: 8, kind: output, shape index: {0}]   ;;  %s7927_s9 = inlined_call_operand.hbm [shape: f32[2,32], index: 9, kind: output, shape index: {1}]   ;;  %s7928_s10 = inlined_call_operand.vmem [shape: f32[2,80], index: 10, kind: output, shape index: {2}]  }
   0x1   :  { %v51_v0 = vld [vmem:[%s7923_s5] sm:$0xff]  ;;  %v52_v1 = vld [vmem:[%s7923_s5 + $0x8] sm:$0xff]  ;;  %v53_v2 = vld [vmem:[%s7923_s5 + $0x10] sm:$0xff]  ;;  %228 = vmatprep.mubr.f32.mxu1 %v6621_v6 }
   0x2   :  { %v6151_v3 = vpack.c.bf16 %v52_v1, %v51_v0  ;;  %v54_v4 = vld [vmem:[%s7923_s5 + $0x18] sm:$0xff]  ;;  %v6705_v5 = vld [vmem:[%s7918_s0] sm:$0xff]  ;;  %v42_v8 = vld [vmem:[%s7921_s3 + $0x8] sm:$0xff] }
   0x3   :  { %v6155_v7 = vpack.c.bf16 %v54_v4, %v53_v2  ;;  %5898 = vmatprep.mubr.msk.f32.mxu0 %vm62_vm0, %v6705_v5  ;;  %v44_v9 = vld [vmem:[%s7921_s3 + $0x18] sm:$0xff]  ;;  %v41_v10 = vld [vmem:[%s7921_s3] sm:$0xff]  ;;  %v43_v12 = vld [vmem:[%s7921_s3 + $0x10] sm:$0xff] }
   0x4   :  { %6152 = vmatprep.subr.bf16.mxu0 %v6151_v3  ;;  %v6719_v11 = vpack.c.bf16 %v44_v9, %v42_v8  ;;  %v46_v13 = vld [vmem:[%s7921_s3 + $0x28] sm:$0xff]  ;;  %v48_v14 = vld [vmem:[%s7921_s3 + $0x38] sm:$0xff]  ;;  %v6730_v15 = vpack.c.bf16 %v43_v12, %v41_v10  ;;  %v45_v17 = vld [vmem:[%s7921_s3 + $0x20] sm:$0xff] }
   0x5   :  { %6154 = vmatpush3.bf16.msra.mxu0 %v6151_v3  ;;  %v6732_v16 = vpack.c.bf16 %v48_v14, %v46_v13  ;;  %v47_v18 = vld [vmem:[%s7921_s3 + $0x30] sm:$0xff] }
   0x6   :  { %6156 = vmatprep.subr.bf16.mxu0 %v6155_v7  ;;  %6160 = vmatprep.subr.bf16.mxu1 %v6719_v11 }
   0x7   :  { %16 = vsyncpa [#allocation3], 0  ;;  %6162 = vmatpush1.bf16.msra.mxu1 %v6730_v15  ;;  %v6742_v19 = vpack.c.bf16 %v47_v18, %v45_v17  ;;  %v6748_v20 = vld [vmem:[%s7918_s0 + $0x8] sm:$0xff]  ;;  %v6755_v21 = vld [vmem:[%s7919_s1] sm:$0x3]  ;;  %s6622_s1 = smov 112   ;;  %v144_v30 = vlaneseq }
   0x8   :  { %6164 = vmatprep.subr.bf16.mxu1 %v6732_v16  ;;  %v5714_v22 = vld [vmem:[%s7925_s7] ss:$0 sm:$0xff]  ;;  %v6623_v37 = vmov 1966171168   ;;  %vm320_vm1 = vcmask 130048   ;;  %vm341_vm2 = vcmask 1041409  }
   0x9   :  { %6158 = vmatpush3.bf16.msra.mxu0 %v6155_v7  ;;  %301 = vrot.lane.b32.xlu1 %v5714_v22, %s6622_s1  ;;  %v5709_v23 = vld [vmem:[%s7924_s6] ss:$0 sm:$0xff]  ;;  %v6774_v31 = vshrl.u32 %v144_v30, 7  ;;  %v239_v38 = vunpack.c.l.s4 %v6623_v37  ;;  %v6828_v14 = vand.u32 127, %v144_v30  ;;  %vm344_vm3 = vcmask 58368   ;;  %s6627_s25 = smov 48  }
   0xa   :  { %5901 = vmatprep.subr.mxu0 %v6621_v6  ;;  %v49_v34 = vld [vmem:[%s7922_s4] sm:$0x3]  ;;  %s6624_s4 = smov 16   ;;  %vm6626_vm4 = vmmov 0   ;;  %vm411_vm5 = vcmask 64512   ;;  %vm572_vm7 = vcmask 392192  }
   0xb   :  { %6166 = vmatpush1.bf16.msra.mxu1 %v6742_v19  ;;  %v6777_v32 = vsub.s32 0, %v6774_v31  ;;  %v6780_v33 = vsub.s32 1, %v6774_v31  ;;  %v240_v41 = vunpack.c.0.s8 %v239_v38  ;;  %v6832_v17 = vsub.s32 %v6828_v14, %v6774_v31  ;;  %s6630_s17 = smov 64   ;;  %s6631_s18 = smov 96  }
   0xc   :  { %5899 = vmatmul.mubr.msk.f32.vlgmr.msra.gmra.mrb[0].mxu0 %vm62_vm0, %v6748_v20  ;;  %5906 = vmatprep.subr.mxu1 %v6621_v6  ;;  %vm146_vm6 = vcmp.eq.s32.totalorder %v6828_v14, 0  ;;  %vm753_vm8 = vcmask 123904  }
   0xd   :  { %5902 = vmatpush3.msra.mxu0 %v6705_v5  ;;  %v6786_v35 = vrot.slane %v49_v34, %v6777_v32  ;;  %v6789_v36 = vrot.slane %v49_v34, %v6780_v33  ;;  %v6797_v43 = vsub.s32 %v240_v41, %v6774_v31  ;;  %5903 = vmatprep.mubr.msk.f32.mxu0 %vm6626_vm4, %v6621_v6 }
   0xe   :  { %5713 = vmatmul.mubr.msk.f32.vlgmr.msra.gmra.mrb[0].mxu1 %vm62_vm0, %v6755_v21 }
   0xf   :  { %5907 = vmatpush3.msra.mxu1 %v6748_v20  ;;  %5908 = vmatprep.mubr.msk.f32.mxu1 %vm6626_vm4, %v6621_v6 }
  0x10   :  { %6177 = vmatprep.subr.bf16.mxu1 %v6719_v11 }
  0x7b   :  { %v6814_v58 = vpop.permute.xlu1 %301 }
  0xdf   :  { %v5900_v24 = vpop.f32.mrb[0].mxu0 }
  0xe0   :  { %v135_v25 = vpop.f32.mrb[1].mxu0  ;;  %v141_v29 = vadd.f32 %v5900_v24, %v5709_v23 }
  0xe1   :  { %v136_v26 = vadd.f32 %v5709_v23, %v135_v25  ;;  %v230_v27 = vpop.f32.mrb[0].mxu1 }
  0xe2   :  { %v232_v28 = vpop.f32.mrb[1].mxu1  ;;  %v6792_v39 = vadd.f32 %v230_v27, %v6786_v35  ;;  %v6625_v27 = vmov 0  }
  0xe3   :  { %282 = vrot.lane.b32.xlu0 %v136_v26, %s6622_s1  ;;  %v233_v40 = vadd.f32 %v232_v28, %v6789_v36  ;;  %6351 = vset.pattern.permute.xlu1 %v6625_v27 }
  0xe4   :  { %6352 = vset.pattern.permute.xlu0 %v6625_v27 }
  0xe5   :  { %v237_v42 = vcombine.low %v6792_v39, %v233_v40 }
  0xe7   :  { %284 = vrot.lane.b32.xlu0 %v141_v29, %s6622_s1  ;;  %v244_v44 = vrot.slane %v237_v42, %v6797_v43 }
  0xe9   :  { %v252_v45 = vrot.slane %v244_v44, %v6797_v43  ;;  %v245_v46 = vcombine.high %v244_v44, %v244_v44 }
  0xeb   :  { %v263_v47 = vrot.slane %v252_v45, %v6777_v32  ;;  %v267_v48 = vrot.slane %v252_v45, %v6780_v33  ;;  %v259_v49 = vrot.slane %v245_v46, %v6797_v43 }
  0xed   :  { %v271_v53 = vrot.slane %v259_v49, %v6777_v32  ;;  %v275_v54 = vrot.slane %v259_v49, %v6780_v33 }
 0x155   :  { %v6804_v50 = vpop.permute.xlu0 %282 }
 0x156   :  { %v289_v51 = vadd.f32 %v6804_v50, %v267_v48  ;;  %v288_v52 = vadd.f32 %v6804_v50, %v263_v47 }
 0x158   :  { %6353 = vtanh.f32 %v289_v51 }
 0x159   :  { %v6810_v55 = vpop.permute.xlu0 %284  ;;  %6355 = vtanh.f32 %v288_v52 }
 0x15a   :  { %v291_v56 = vadd.f32 %v6810_v55, %v275_v54  ;;  %v290_v57 = vadd.f32 %v6810_v55, %v271_v53 }
 0x15c   :  { %6357 = vtanh.f32 %v291_v56 }
 0x15d   :  { %6359 = vtanh.f32 %v290_v57 }
 0x162   :  { %v6354_v59 = vpop.eup %6353 }
 0x163   :  { %v6356_v60 = vpop.eup %6355  ;;  %v305_v61 = vmul.f32 %v6354_v59, %v6814_v58 }
 0x164   :  { %v304_v62 = vmul.f32 %v6356_v60, %v6814_v58 }
 0x165   :  { %314 = vrot.lane.b32.xlu0 %v305_v61, %s6624_s4 }
 0x166   :  { %v6358_v63 = vpop.eup %6357  ;;  %312 = vrot.lane.b32.xlu1 %v304_v62, %s6624_s4 }
 0x167   :  { %v6360_v0 = vpop.eup %6359  ;;  %v307_v1 = vmul.f32 %v6358_v63, %v6814_v58 }
 0x168   :  { %v306_v2 = vmul.f32 %v6360_v0, %v6814_v58 }
 0x169   :  { %318 = vrot.lane.b32.xlu0 %v307_v1, %s6624_s4 }
 0x16a   :  { %316 = vrot.lane.b32.xlu1 %v306_v2, %s6624_s4 }
 0x1d7   :  { %v315_v3 = vpop.permute.xlu0 %314 }
 0x1d8   :  { %v313_v4 = vpop.permute.xlu1 %312 }
 0x1d9   :  { %v321_v7 = vsel %vm320_vm1, %v313_v4, %v315_v3  ;;  %v36_v3 = vld [vmem:[%s7920_s2 + $0x8] sm:$0xff]  ;;  %v37_v4 = vld [vmem:[%s7920_s2 + $0x10] sm:$0xff] }
 0x1da   :  { %v325_v8 = vsel %vm62_vm0, %v321_v7, 0.0  ;;  %v6628_v7 = vmov 0.0|0.0  }
 0x1db   :  { %326 = vadd.xlane.f32.xlu1 %v325_v8  ;;  %v319_v9 = vpop.permute.xlu0 %318  ;;  %6167 = vmatprep.subr.bf16.mxu0 %v6628_v7 }
 0x1dc   :  { %v317_v10 = vpop.permute.xlu1 %316 }
 0x1dd   :  { %v322_v12 = vsel %vm320_vm1, %v317_v10, %v319_v9  ;;  %v38_v9 = vld [vmem:[%s7920_s2 + $0x18] sm:$0xff] }
 0x1de   :  { %v328_v13 = vsel %vm62_vm0, %v322_v12, 0.0  ;;  %v6884_v10 = vpack.c.bf16 %v38_v9, %v37_v4  ;;  %v39_v12 = vld [vmem:[%s7920_s2 + $0x20] sm:$0xff] }
 0x1df   :  { %329 = vadd.xlane.f32.xlu0 %v328_v13  ;;  %v40_v13 = vld [vmem:[%s7920_s2 + $0x28] sm:$0xff] }
 0x268   :  { %v327_v18 = vpop.xlane.xlu1 %326 }
 0x269   :  { %v336_v23 = vrot.slane %v327_v18, %v6832_v17 }
 0x26c   :  { %v330_v22 = vpop.xlane.xlu0 %329 }
 0x26d   :  { %v340_v24 = vrot.slane %v330_v22, %v6832_v17 }
 0x26f   :  { %v342_v25 = vsel %vm341_vm2, %v340_v24, %v336_v23 }
 0x270   :  { %v345_v26 = vsel %vm344_vm3, %v342_v25, -inf }
 0x271   :  { %346 = vmax.xlane.f32.xlu0 %v345_v26 }
 0x2fe   :  { %v347_v28 = vpop.xlane.xlu0 %346 }
 0x2ff   :  { %v352_v29 = vrot.slane %v347_v28, %v6777_v32  ;;  %v356_v30 = vrot.slane %v347_v28, %v6780_v33  ;;  %v5712_v28 = vsel %vm146_vm6, 1.0, %v6621_v6 }
 0x301   :  { %v359_v34 = vsub.f32 %v327_v18, %v352_v29  ;;  %v360_v37 = vsub.f32 %v330_v22, %v356_v30  ;;  %v6894_v18 = vpack.c.bf16 %v40_v13, %v39_v12 }
 0x303   :  { %v361_v38 = vmul.f32 1.442695, %v359_v34  ;;  %v363_v40 = vmul.f32 1.442695, %v360_v37 }
 0x305   :  { %6361 = vpow2.f32 %v361_v38 }
 0x306   :  { %6363 = vpow2.f32 %v363_v40 }
 0x30f   :  { %v6362_v41 = vpop.eup %6361 }
 0x310   :  { %v6364_v42 = vpop.eup %6363  ;;  %368 = vperm.xlu1 %6351, %v6362_v41  }
 0x311   :  { %371 = vperm.xlu0 %6352, %v6364_v42  }
 0x38f   :  { %v369_v44 = vpop.permute.xlu1 %368 }
 0x390   :  { %v372_v45 = vpop.permute.xlu0 %371  ;;  %v376_v46 = vrot.slane %v369_v44, %v6832_v17 }
 0x391   :  { %v380_v47 = vrot.slane %v372_v45, %v6832_v17 }
 0x393   :  { %v381_v48 = vsel %vm341_vm2, %v380_v47, %v376_v46 }
 0x394   :  { %v383_v49 = vsel %vm344_vm3, %v381_v48, 0.0 }
 0x395   :  { %384 = vadd.xlane.f32.xlu1 %v383_v49 }
 0x422   :  { %v385_v51 = vpop.xlane.xlu1 %384 }
 0x423   :  { %6365 = vrcp.f32 %v385_v51 }
 0x42d   :  { %v6366_v52 = vpop.eup %6365 }
 0x42e   :  { %v387_v53 = vmul.f32 %v6366_v52, %v385_v51 }
 0x430   :  { %v388_v54 = vsub.f32 2.0, %v387_v53 }
 0x432   :  { %v389_v56 = vmul.f32 %v6366_v52, %v388_v54 }
 0x434   :  { %v398_v57 = vrot.slane %v389_v56, %v6780_v33  ;;  %v394_v60 = vrot.slane %v389_v56, %v6777_v32 }
 0x436   :  { %v402_v59 = vmul.f32 %v6364_v42, %v398_v57  ;;  %v401_v61 = vmul.f32 %v6362_v41, %v394_v60 }
 0x438   :  { %486 = vperm.xlu0 %6352, %v402_v59  }
 0x43c   :  { %405 = vperm.xlu0 %6352, %v401_v61  }
 0x440   :  { %646 = vrot.lane.b32.xlu0 %v6792_v39, %s6622_s1 }
 0x444   :  { %656 = vrot.lane.b32.xlu0 %v6792_v39, %s6627_s25  ;;  %v35_v39 = vld [vmem:[%s7920_s2] sm:$0xff]  ;;  %s6629_s2 = smov 32  }
 0x445   :  { %v6878_v8 = vpack.c.bf16 %v36_v3, %v35_v39 }
 0x4b7   :  { %v487_v62 = vpop.permute.xlu0 %486 }
 0x4b8   :  { %v491_v63 = vrot.slane %v487_v62, %v6832_v17 }
 0x4ba   :  { %5909 = vmatmul.mubr.msk.f32.vlgmr.msra.gmra.mrb[2].mxu1 %vm411_vm5, %v491_v63 }
 0x4bb   :  { %v406_v0 = vpop.permute.xlu0 %405  ;;  %6179 = vmatpush1.bf16.msra.mxu1 %v6730_v15  ;;  %746 = vmatprep.mubr.f32.mxu1 %v6621_v6 }
 0x4bc   :  { %v410_v1 = vrot.slane %v406_v0, %v6832_v17  ;;  %6181 = vmatprep.subr.bf16.mxu1 %v6732_v16 }
 0x4be   :  { %v6861_v2 = vsel %vm341_vm2, %v491_v63, %v410_v1  ;;  %5904 = vmatmul.mubr.msk.f32.vlgmr.msra.gmra.mrb[2].mxu0 %vm411_vm5, %v410_v1 }
 0x4bf   :  { %5923 = vmatprep.mubr.msk.f32.mxu0 %vm6626_vm4, %v6621_v6  ;;  %6183 = vmatpush1.bf16.msra.mxu1 %v6742_v19  ;;  %v647_v34 = vpop.permute.xlu0 %646 }
 0x4c0   :  { %5926 = vmatprep.subr.mxu1 %v6621_v6  ;;  %6169 = vmatpush3.bf16.msra.mxu0 %v6878_v8 }
 0x4c1   :  { %6170 = vmatprep.subr.bf16.mxu0 %v6628_v7 }
 0x4c3   :  { %v657_v45 = vpop.permute.xlu0 %656 }
 0x4c4   :  { %6172 = vmatpush3.bf16.msra.mxu0 %v6884_v10 }
 0x4c5   :  { %6173 = vmatprep.subr.bf16.mxu0 %v6628_v7 }
 0x4c8   :  { %6175 = vmatpush3.bf16.msra.mxu0 %v6894_v18 }
 0x4c9   :  { %5931 = vmatprep.subr.mxu0 %v6621_v6 }
 0x58d   :  { %v560_v22 = vpop.f32.mrb[2].mxu1 }
 0x58e   :  { %v5910_v23 = vpop.f32.mrb[3].mxu1  ;;  %v566_v24 = vrot.slane %v560_v22, 7 }
 0x591   :  { %v480_v25 = vpop.f32.mrb[2].mxu0 }
 0x592   :  { %v5905_v26 = vpop.f32.mrb[3].mxu0  ;;  %v567_v27 = vsel %vm341_vm2, %v566_v24, %v480_v25 }
 0x593   :  { %568 = vrot.lane.b32.xlu1 %v567_v27, %s6624_s4 }
 0x597   :  { %672 = vrot.lane.b32.xlu1 %v6755_v21, %s6629_s2 }
 0x605   :  { %v569_v29 = vpop.permute.xlu1 %568 }
 0x606   :  { %v571_v30 = vsel %vm320_vm1, %v5712_v28, %v569_v29 }
 0x607   :  { %5924 = vmatmul.mubr.msk.f32.vlgmr.msra.gmra.mrb[4].mxu0 %vm572_vm7, %v571_v30 }
 0x608   :  { %5932 = vmatpush3.msra.mxu0 %v6748_v20  ;;  %5933 = vmatprep.mubr.msk.f32.mxu0 %vm6626_vm4, %v6621_v6 }
 0x609   :  { %6194 = vmatprep.subr.bf16.mxu0 %v6719_v11  ;;  %v673_v51 = vpop.permute.xlu1 %672 }
 0x6da   :  { %v642_v37 = vpop.f32.mrb[4].mxu0 }
 0x6db   :  { %v649_v21 = vadd.f32 %v647_v34, %v642_v37  ;;  %v5925_v38 = vpop.f32.mrb[5].mxu0 }
 0x6dd   :  { %v5718_v40 = vmul.f32 -1.442695, %v649_v21 }
 0x6df   :  { %6367 = vpow2.f32 %v5718_v40 }
 0x6e9   :  { %v6368_v41 = vpop.eup %6367 }
 0x6ea   :  { %v653_v42 = vadd.f32 1.0, %v6368_v41 }
 0x6ec   :  { %6369 = vrcp.f32 %v653_v42 }
 0x6f6   :  { %v6370_v44 = vpop.eup %6369 }
 0x6f7   :  { %v659_v46 = vmul.f32 %v6370_v44, %v657_v45  ;;  %v666_v52 = vsub.f32 1.0, %v6370_v44  ;;  %v675_v54 = vmul.f32 %v6370_v44, %v673_v51 }
 0x6f9   :  { %661 = vrot.lane.b32.xlu0 %v659_v46, %s6630_s17 }
 0x76b   :  { %v662_v47 = vpop.permute.xlu0 %661 }
 0x76c   :  { %v664_v48 = vadd.f32 %v662_v47, %v642_v37 }
 0x76e   :  { %6371 = vtanh.f32 %v664_v48 }
 0x778   :  { %v6372_v49 = vpop.eup %6371 }
 0x779   :  { %668 = vrot.lane.b32.xlu0 %v6372_v49, %s6631_s18 }
 0x7eb   :  { %v669_v53 = vpop.permute.xlu0 %668 }
 0x7ec   :  { %v671_v56 = vmul.f32 %v669_v53, %v666_v52 }
 0x7ee   :  { %v6913_v57 = vadd.f32 %v675_v54, %v671_v56 }
 0x7f0   :  { %678 = vrot.lane.b32.xlu0 %v6913_v57, %s6631_s18 }
 0x862   :  { %v679_v59 = vpop.permute.xlu0 %678 }
 0x863   :  { %5719 = vmatmul.mubr.msk.f32.vlgmr.msra.gmra.mrb[4].mxu1 %vm62_vm0, %v679_v59 }
 0x864   :  { %5927 = vmatpush3.msra.mxu1 %v6705_v5  ;;  %5928 = vmatprep.mubr.msk.f32.mxu1 %vm6626_vm4, %v6621_v6 }
 0x865   :  { %6184 = vmatprep.subr.bf16.mxu1 %v6628_v7 }
 0x936   :  { %v748_v60 = vpop.f32.mrb[4].mxu1 }
 0x937   :  { %v6923_v61 = vadd.f32 %v748_v60, %v6786_v35  ;;  %v750_v62 = vpop.f32.mrb[5].mxu1 }
 0x938   :  { %v751_v63 = vadd.f32 %v750_v62, %v6789_v36 }
 0x93a   :  { %v789_v0 = vcombine.low %v6923_v61, %v751_v63 }
 0x93c   :  { %v796_v1 = vrot.slane %v789_v0, %v6797_v43 }
 0x93e   :  { %v797_v39 = vcombine.high %v796_v1, %v796_v1  ;;  %v804_v3 = vrot.slane %v796_v1, %v6797_v43 }
 0x940   :  { %v811_v4 = vrot.slane %v797_v39, %v6797_v43  ;;  %v815_v9 = vrot.slane %v804_v3, %v6777_v32  ;;  %v819_v12 = vrot.slane %v804_v3, %v6780_v33 }
 0x942   :  { %v823_v13 = vrot.slane %v811_v4, %v6777_v32  ;;  %v827_v22 = vrot.slane %v811_v4, %v6780_v33  ;;  %v832_v23 = vadd.f32 %v815_v9, %v6804_v50  ;;  %v833_v24 = vadd.f32 %v819_v12, %v6804_v50 }
 0x944   :  { %v834_v25 = vadd.f32 %v823_v13, %v6810_v55  ;;  %v835_v26 = vadd.f32 %v827_v22, %v6810_v55  ;;  %6373 = vtanh.f32 %v832_v23 }
 0x945   :  { %6375 = vtanh.f32 %v833_v24 }
 0x946   :  { %6377 = vtanh.f32 %v834_v25 }
 0x947   :  { %6379 = vtanh.f32 %v835_v26 }
 0x94e   :  { %v6374_v27 = vpop.eup %6373 }
 0x94f   :  { %v6376_v28 = vpop.eup %6375  ;;  %v840_v29 = vmul.f32 %v6374_v27, %v6814_v58 }
 0x950   :  { %v6378_v30 = vpop.eup %6377  ;;  %v841_v34 = vmul.f32 %v6376_v28, %v6814_v58 }
 0x951   :  { %v6380_v37 = vpop.eup %6379  ;;  %848 = vrot.lane.b32.xlu1 %v840_v29, %s6624_s4  ;;  %v842_v21 = vmul.f32 %v6378_v30, %v6814_v58 }
 0x952   :  { %850 = vrot.lane.b32.xlu0 %v841_v34, %s6624_s4  ;;  %v843_v38 = vmul.f32 %v6380_v37, %v6814_v58 }
 0x955   :  { %852 = vrot.lane.b32.xlu1 %v842_v21, %s6624_s4 }
 0x956   :  { %854 = vrot.lane.b32.xlu0 %v843_v38, %s6624_s4  ;;  %v754_v38 = vsel %vm753_vm8, %v6923_v61, -inf }
 0x9c3   :  { %v849_v40 = vpop.permute.xlu1 %848 }
 0x9c4   :  { %v851_v41 = vpop.permute.xlu0 %850 }
 0x9c5   :  { %v856_v42 = vsel %vm320_vm1, %v849_v40, %v851_v41 }
 0x9c6   :  { %v860_v44 = vsel %vm62_vm0, %v856_v42, 0.0 }
 0x9c7   :  { %861 = vadd.xlane.f32.xlu1 %v860_v44  ;;  %v853_v45 = vpop.permute.xlu1 %852 }
 0x9c8   :  { %v855_v46 = vpop.permute.xlu0 %854 }
 0x9c9   :  { %v857_v47 = vsel %vm320_vm1, %v853_v45, %v855_v46 }
 0x9ca   :  { %v863_v48 = vsel %vm62_vm0, %v857_v47, 0.0 }
 0x9cb   :  { %864 = vadd.xlane.f32.xlu0 %v863_v48 }
 0xa54   :  { %v862_v49 = vpop.xlane.xlu1 %861 }
 0xa55   :  { %v871_v52 = vrot.slane %v862_v49, %v6832_v17 }
 0xa58   :  { %v865_v51 = vpop.xlane.xlu0 %864 }
 0xa59   :  { %v875_v53 = vrot.slane %v865_v51, %v6832_v17 }
 0xa5b   :  { %v876_v54 = vsel %vm341_vm2, %v875_v53, %v871_v52 }
 0xa5c   :  { %v878_v56 = vsel %vm344_vm3, %v876_v54, -inf }
 0xa5d   :  { %879 = vmax.xlane.f32.xlu0 %v878_v56 }
 0xaea   :  { %v880_v59 = vpop.xlane.xlu0 %879 }
 0xaeb   :  { %v885_v60 = vrot.slane %v880_v59, %v6777_v32  ;;  %v889_v62 = vrot.slane %v880_v59, %v6780_v33 }
 0xaed   :  { %v892_v63 = vsub.f32 %v862_v49, %v885_v60  ;;  %v893_v0 = vsub.f32 %v865_v51, %v889_v62 }
 0xaef   :  { %v894_v1 = vmul.f32 1.442695, %v892_v63  ;;  %v896_v39 = vmul.f32 1.442695, %v893_v0 }
 0xaf1   :  { %6381 = vpow2.f32 %v894_v1 }
 0xaf2   :  { %6383 = vpow2.f32 %v896_v39 }
 0xafb   :  { %v6382_v3 = vpop.eup %6381 }
 0xafc   :  { %v6384_v4 = vpop.eup %6383  ;;  %901 = vperm.xlu0 %6352, %v6382_v3  }
 0xafd   :  { %904 = vperm.xlu1 %6351, %v6384_v4  }
 0xb7b   :  { %v902_v9 = vpop.permute.xlu0 %901 }
 0xb7c   :  { %v905_v12 = vpop.permute.xlu1 %904  ;;  %v909_v13 = vrot.slane %v902_v9, %v6832_v17 }
 0xb7d   :  { %v913_v22 = vrot.slane %v905_v12, %v6832_v17 }
 0xb7f   :  { %v914_v23 = vsel %vm341_vm2, %v913_v22, %v909_v13 }
 0xb80   :  { %v916_v24 = vsel %vm344_vm3, %v914_v23, 0.0 }
 0xb81   :  { %917 = vadd.xlane.f32.xlu1 %v916_v24 }
 0xc0e   :  { %v918_v25 = vpop.xlane.xlu1 %917 }
 0xc0f   :  { %6385 = vrcp.f32 %v918_v25 }
 0xc19   :  { %v6386_v26 = vpop.eup %6385 }
 0xc1a   :  { %v920_v27 = vmul.f32 %v6386_v26, %v918_v25 }
 0xc1c   :  { %v921_v28 = vsub.f32 2.0, %v920_v27 }
 0xc1e   :  { %v922_v29 = vmul.f32 %v6386_v26, %v921_v28 }
 0xc20   :  { %v931_v30 = vrot.slane %v922_v29, %v6780_v33  ;;  %v927_v37 = vrot.slane %v922_v29, %v6777_v32 }
 0xc22   :  { %v935_v34 = vmul.f32 %v6384_v4, %v931_v30  ;;  %v934_v21 = vmul.f32 %v6382_v3, %v927_v37 }
 0xc24   :  { %1018 = vperm.xlu0 %6352, %v935_v34  }
 0xc28   :  { %938 = vperm.xlu0 %6352, %v934_v21  }
 0xc47   :  { %755 = vmax.xlane.f32.xlu0 %v754_v38 }
 0xca3   :  { %v6964_v40 = vpop.permute.xlu0 %1018 }
 0xca4   :  { %v1023_v41 = vrot.slane %v6964_v40, %v6832_v17 }
 0xca6   :  { %5934 = vmatmul.mubr.msk.f32.vlgmr.msra.gmra.mrb[6].mxu0 %vm411_vm5, %v1023_v41 }
 0xca7   :  { %v6969_v42 = vpop.permute.xlu0 %938  ;;  %6196 = vmatpush1.bf16.msra.mxu0 %v6730_v15  ;;  %1274 = vmatprep.mubr.f32.mxu0 %v6621_v6 }
 0xca8   :  { %v943_v44 = vrot.slane %v6969_v42, %v6832_v17  ;;  %6198 = vmatprep.subr.bf16.mxu0 %v6732_v16 }
 0xcaa   :  { %5929 = vmatmul.mubr.msk.f32.vlgmr.msra.gmra.mrb[6].mxu1 %vm411_vm5, %v943_v44 }
 0xcab   :  { %6186 = vmatpush3.bf16.msra.mxu1 %v6878_v8  ;;  %5948 = vmatprep.mubr.msk.f32.mxu1 %vm6626_vm4, %v6621_v6 }
 0xcac   :  { %6187 = vmatprep.subr.bf16.mxu1 %v6628_v7  ;;  %6200 = vmatpush1.bf16.msra.mxu0 %v6742_v19 }
 0xcad   :  { %5951 = vmatprep.subr.mxu0 %v6621_v6 }
 0xcaf   :  { %6189 = vmatpush3.bf16.msra.mxu1 %v6884_v10 }
 0xcb0   :  { %6190 = vmatprep.subr.bf16.mxu1 %v6628_v7 }
 0xcb3   :  { %6192 = vmatpush3.bf16.msra.mxu1 %v6894_v18 }
 0xcb4   :  { %5956 = vmatprep.subr.mxu1 %v6621_v6 }
 0xcd4   :  { %v6987_v45 = vpop.xlane.xlu0 %755 }
 0xcd5   :  { %vm767_vm9 = vcmp.eq.f32.partialorder %v6923_v61, %v6987_v45 }
 0xcd6   :  { %v768_v46 = vsel %vm767_vm9, %v6828_v14, 16 }
 0xcd7   :  { %v769_v47 = vsel %vm753_vm8, %v768_v46, 2147483647 }
 0xcd8   :  { %v771_v48 = vshra.s32 %v769_v47, 16  ;;  %v770_v51 = vand.u32 65535, %v769_v47 }
 0xcda   :  { %v773_v49 = vcvt.s32.f32 %v771_v48  ;;  %v772_v53 = vcvt.s32.f32 %v770_v51 }
 0xcdc   :  { %774 = vmin.xlane.f32.xlu1 %v773_v49 }
 0xd69   :  { %v775_v52 = vpop.xlane.xlu1 %774 }
 0xd6a   :  { %vm776_vm10 = vcmp.eq.f32.partialorder %v773_v49, %v775_v52  ;;  %v781_v1 = vcvt.f32.s32 %v775_v52 }
 0xd6b   :  { %v777_v54 = vsel %vm776_vm10, %v772_v53, inf }
 0xd6c   :  { %778 = vmin.xlane.f32.xlu1 %v777_v54  ;;  %v782_v3 = vshll.u32 %v781_v1, 16 }
 0xd79   :  { %v1092_v56 = vpop.f32.mrb[6].mxu0 }
 0xd7a   :  { %v5935_v59 = vpop.f32.mrb[7].mxu0  ;;  %v1098_v60 = vrot.slane %v1092_v56, 7 }
 0xd7d   :  { %v1012_v62 = vpop.f32.mrb[6].mxu1  ;;  %1177 = vrot.lane.b32.xlu1 %v6923_v61, %s6622_s1 }
 0xd7e   :  { %v5930_v63 = vpop.f32.mrb[7].mxu1  ;;  %v1099_v0 = vsel %vm341_vm2, %v1098_v60, %v1012_v62 }
 0xd7f   :  { %1100 = vrot.lane.b32.xlu0 %v1099_v0, %s6624_s4 }
 0xd81   :  { %1187 = vrot.lane.b32.xlu1 %v6923_v61, %s6627_s25 }
 0xdf1   :  { %v1101_v12 = vpop.permute.xlu0 %1100 }
 0xdf9   :  { %v779_v39 = vpop.xlane.xlu1 %778 }
 0xdfa   :  { %v780_v4 = vcvt.f32.s32 %v779_v39 }
 0xdfc   :  { %v783_v9 = vadd.s32 %v782_v3, %v780_v4 }
 0xdfd   :  { %v1178_v23 = vpop.permute.xlu1 %1177 }
 0xdfe   :  { %vm784_vm11 = vcmp.eq.s32.totalorder %v6828_v14, %v783_v9 }
 0xdff   :  { %v5720_v13 = vsel %vm784_vm11, 1.0, %v6621_v6 }
 0xe00   :  { %v1103_v22 = vsel %vm320_vm1, %v5720_v13, %v1101_v12 }
 0xe01   :  { %5949 = vmatmul.mubr.msk.f32.vlgmr.msra.gmra.mrb[8].mxu1 %vm572_vm7, %v1103_v22  ;;  %v1188_v34 = vpop.permute.xlu1 %1187 }
 0xe02   :  { %5957 = vmatpush3.msra.mxu1 %v6748_v20  ;;  %5958 = vmatprep.mubr.msk.f32.mxu1 %vm6626_vm4, %v6621_v6 }
 0xe03   :  { %6211 = vmatprep.subr.bf16.mxu1 %v6719_v11 }
 0xed4   :  { %v1173_v24 = vpop.f32.mrb[8].mxu1 }
 0xed5   :  { %v1180_v25 = vadd.f32 %v1178_v23, %v1173_v24  ;;  %v5950_v26 = vpop.f32.mrb[9].mxu1 }
 0xed7   :  { %v5724_v27 = vmul.f32 -1.442695, %v1180_v25 }
 0xed9   :  { %6387 = vpow2.f32 %v5724_v27 }
 0xee3   :  { %v6388_v28 = vpop.eup %6387 }
 0xee4   :  { %v1184_v29 = vadd.f32 1.0, %v6388_v28 }
 0xee6   :  { %6389 = vrcp.f32 %v1184_v29 }
 0xef0   :  { %v6390_v30 = vpop.eup %6389 }
 0xef1   :  { %v1190_v37 = vmul.f32 %v6390_v30, %v1188_v34  ;;  %v1197_v41 = vsub.f32 1.0, %v6390_v30  ;;  %v1203_v46 = vmul.f32 %v6390_v30, %v6913_v57 }
 0xef3   :  { %1192 = vrot.lane.b32.xlu1 %v1190_v37, %s6630_s17 }
 0xf65   :  { %v1193_v20 = vpop.permute.xlu1 %1192 }
 0xf66   :  { %v1195_v21 = vadd.f32 %v1193_v20, %v1173_v24 }
 0xf68   :  { %6391 = vtanh.f32 %v1195_v21 }
 0xf72   :  { %v6392_v38 = vpop.eup %6391 }
 0xf73   :  { %1199 = vrot.lane.b32.xlu0 %v6392_v38, %s6631_s18 }
 0xfe5   :  { %v1200_v44 = vpop.permute.xlu0 %1199 }
 0xfe6   :  { %v1202_v47 = vmul.f32 %v1200_v44, %v1197_v41 }
 0xfe8   :  { %v7010_v48 = vadd.f32 %v1203_v46, %v1202_v47 }
 0xfea   :  { %1206 = vrot.lane.b32.xlu1 %v7010_v48, %s6631_s18 }
0x105c   :  { %v1207_v49 = vpop.permute.xlu1 %1206 }
0x105d   :  { %5725 = vmatmul.mubr.msk.f32.vlgmr.msra.gmra.mrb[8].mxu0 %vm62_vm0, %v1207_v49 }
0x105e   :  { %5952 = vmatpush3.msra.mxu0 %v6705_v5  ;;  %5953 = vmatprep.mubr.msk.f32.mxu0 %vm6626_vm4, %v6621_v6 }
0x105f   :  { %6201 = vmatprep.subr.bf16.mxu0 %v6628_v7 }
0x1130   :  { %v1276_v51 = vpop.f32.mrb[8].mxu0 }
0x1131   :  { %v7020_v52 = vadd.f32 %v1276_v51, %v6786_v35  ;;  %v1278_v57 = vpop.f32.mrb[9].mxu0 }
0x1132   :  { %v1279_v53 = vadd.f32 %v1278_v57, %v6789_v36 }
0x1134   :  { %v1316_v54 = vcombine.low %v7020_v52, %v1279_v53 }
0x1136   :  { %v1323_v56 = vrot.slane %v1316_v54, %v6797_v43 }
0x1138   :  { %v1324_v59 = vcombine.high %v1323_v56, %v1323_v56  ;;  %v1331_v60 = vrot.slane %v1323_v56, %v6797_v43 }
0x113a   :  { %v1338_v5 = vrot.slane %v1324_v59, %v6797_v43  ;;  %v1342_v62 = vrot.slane %v1331_v60, %v6777_v32  ;;  %v1346_v63 = vrot.slane %v1331_v60, %v6780_v33 }
0x113c   :  { %v1350_v0 = vrot.slane %v1338_v5, %v6777_v32  ;;  %v1354_v1 = vrot.slane %v1338_v5, %v6780_v33  ;;  %v1359_v39 = vadd.f32 %v1342_v62, %v6804_v50  ;;  %v1360_v3 = vadd.f32 %v1346_v63, %v6804_v50 }
0x113e   :  { %v1361_v4 = vadd.f32 %v1350_v0, %v6810_v55  ;;  %v1362_v9 = vadd.f32 %v1354_v1, %v6810_v55  ;;  %6393 = vtanh.f32 %v1359_v39 }
0x113f   :  { %6395 = vtanh.f32 %v1360_v3 }
0x1140   :  { %6397 = vtanh.f32 %v1361_v4 }
0x1141   :  { %6399 = vtanh.f32 %v1362_v9 }
0x1148   :  { %v6394_v12 = vpop.eup %6393 }
0x1149   :  { %v6396_v13 = vpop.eup %6395  ;;  %v1367_v22 = vmul.f32 %v6394_v12, %v6814_v58 }
0x114a   :  { %v6398_v23 = vpop.eup %6397  ;;  %v1368_v24 = vmul.f32 %v6396_v13, %v6814_v58 }
0x114b   :  { %v6400_v25 = vpop.eup %6399  ;;  %1375 = vrot.lane.b32.xlu0 %v1367_v22, %s6624_s4  ;;  %v1369_v26 = vmul.f32 %v6398_v23, %v6814_v58 }
0x114c   :  { %1377 = vrot.lane.b32.xlu1 %v1368_v24, %s6624_s4  ;;  %v1370_v27 = vmul.f32 %v6400_v25, %v6814_v58 }
0x114f   :  { %1379 = vrot.lane.b32.xlu0 %v1369_v26, %s6624_s4 }
0x1150   :  { %1381 = vrot.lane.b32.xlu1 %v1370_v27, %s6624_s4 }
0x11bd   :  { %v1376_v28 = vpop.permute.xlu0 %1375 }
0x11be   :  { %v1378_v29 = vpop.permute.xlu1 %1377 }
0x11bf   :  { %v1383_v30 = vsel %vm320_vm1, %v1376_v28, %v1378_v29  ;;  %v1281_v29 = vsel %vm753_vm8, %v7020_v52, -inf }
0x11c0   :  { %v1387_v34 = vsel %vm62_vm0, %v1383_v30, 0.0 }
0x11c1   :  { %1388 = vadd.xlane.f32.xlu0 %v1387_v34  ;;  %v1380_v37 = vpop.permute.xlu0 %1379 }
0x11c2   :  { %v1382_v20 = vpop.permute.xlu1 %1381 }
0x11c3   :  { %v1384_v21 = vsel %vm320_vm1, %v1380_v37, %v1382_v20 }
0x11c4   :  { %v1390_v38 = vsel %vm62_vm0, %v1384_v21, 0.0 }
0x11c5   :  { %1391 = vadd.xlane.f32.xlu1 %v1390_v38 }
0x124e   :  { %v1389_v41 = vpop.xlane.xlu0 %1388 }
0x124f   :  { %v1398_v46 = vrot.slane %v1389_v41, %v6832_v17 }
0x1252   :  { %v1392_v44 = vpop.xlane.xlu1 %1391 }
0x1253   :  { %v1402_v47 = vrot.slane %v1392_v44, %v6832_v17 }
0x1255   :  { %v1403_v49 = vsel %vm341_vm2, %v1402_v47, %v1398_v46 }
0x1256   :  { %v1405_v51 = vsel %vm344_vm3, %v1403_v49, -inf }
0x1257   :  { %1406 = vmax.xlane.f32.xlu0 %v1405_v51 }
0x12e4   :  { %v1407_v57 = vpop.xlane.xlu0 %1406 }
0x12e5   :  { %v1412_v53 = vrot.slane %v1407_v57, %v6777_v32  ;;  %v1416_v54 = vrot.slane %v1407_v57, %v6780_v33 }
0x12e7   :  { %v1419_v56 = vsub.f32 %v1389_v41, %v1412_v53  ;;  %v1420_v59 = vsub.f32 %v1392_v44, %v1416_v54 }
0x12e9   :  { %v1421_v60 = vmul.f32 1.442695, %v1419_v56  ;;  %v1423_v5 = vmul.f32 1.442695, %v1420_v59 }
0x12eb   :  { %6401 = vpow2.f32 %v1421_v60 }
0x12ec   :  { %6403 = vpow2.f32 %v1423_v5 }
0x12f5   :  { %v6402_v62 = vpop.eup %6401 }
0x12f6   :  { %v6404_v63 = vpop.eup %6403  ;;  %1428 = vperm.xlu0 %6352, %v6402_v62  }
0x12f7   :  { %1431 = vperm.xlu1 %6351, %v6404_v63  }
0x1375   :  { %v1429_v0 = vpop.permute.xlu0 %1428 }
0x1376   :  { %v1432_v1 = vpop.permute.xlu1 %1431  ;;  %v1436_v39 = vrot.slane %v1429_v0, %v6832_v17 }
0x1377   :  { %v1440_v3 = vrot.slane %v1432_v1, %v6832_v17 }
0x1379   :  { %v1441_v4 = vsel %vm341_vm2, %v1440_v3, %v1436_v39 }
0x137a   :  { %v1443_v9 = vsel %vm344_vm3, %v1441_v4, 0.0 }
0x137b   :  { %1444 = vadd.xlane.f32.xlu1 %v1443_v9 }
0x1408   :  { %v1445_v12 = vpop.xlane.xlu1 %1444 }
0x1409   :  { %6405 = vrcp.f32 %v1445_v12 }
0x1413   :  { %v6406_v13 = vpop.eup %6405 }
0x1414   :  { %v1447_v22 = vmul.f32 %v6406_v13, %v1445_v12  ;;  %v7103_v12 = vld [vmem:[%s7918_s0 + $0x8] sm:$0xff] }
0x1416   :  { %v1448_v23 = vsub.f32 2.0, %v1447_v22 }
0x1418   :  { %v1449_v24 = vmul.f32 %v6406_v13, %v1448_v23 }
0x141a   :  { %v1458_v25 = vrot.slane %v1449_v24, %v6780_v33  ;;  %v1454_v27 = vrot.slane %v1449_v24, %v6777_v32 }
0x141c   :  { %v1462_v26 = vmul.f32 %v6404_v63, %v1458_v25  ;;  %v1461_v28 = vmul.f32 %v6402_v62, %v1454_v27 }
0x141e   :  { %1545 = vperm.xlu0 %6352, %v1462_v26  }
0x1422   :  { %1465 = vperm.xlu0 %6352, %v1461_v28  }
0x1441   :  { %1282 = vmax.xlane.f32.xlu0 %v1281_v29 }
0x149d   :  { %v7061_v30 = vpop.permute.xlu0 %1545 }
0x149e   :  { %v1550_v34 = vrot.slane %v7061_v30, %v6832_v17 }
0x14a0   :  { %5959 = vmatmul.mubr.msk.f32.vlgmr.msra.gmra.mrb[10].mxu1 %vm411_vm5, %v1550_v34 }
0x14a1   :  { %v7066_v37 = vpop.permute.xlu0 %1465  ;;  %6213 = vmatpush1.bf16.msra.mxu1 %v6730_v15  ;;  %1801 = vmatprep.mubr.f32.mxu1 %v6621_v6 }
0x14a2   :  { %v1470_v20 = vrot.slane %v7066_v37, %v6832_v17  ;;  %6215 = vmatprep.subr.bf16.mxu1 %v6732_v16 }
0x14a4   :  { %5954 = vmatmul.mubr.msk.f32.vlgmr.msra.gmra.mrb[10].mxu0 %vm411_vm5, %v1470_v20 }
0x14a5   :  { %6203 = vmatpush3.bf16.msra.mxu0 %v6878_v8  ;;  %5973 = vmatprep.mubr.msk.f32.mxu0 %vm6626_vm4, %v6621_v6 }
0x14a6   :  { %6204 = vmatprep.subr.bf16.mxu0 %v6628_v7  ;;  %6217 = vmatpush1.bf16.msra.mxu1 %v6742_v19 }
0x14a7   :  { %5976 = vmatprep.subr.mxu1 %v6621_v6 }
0x14a9   :  { %6206 = vmatpush3.bf16.msra.mxu0 %v6884_v10 }
0x14aa   :  { %6207 = vmatprep.subr.bf16.mxu0 %v6628_v7 }
0x14ad   :  { %6209 = vmatpush3.bf16.msra.mxu0 %v6894_v18 }
0x14ae   :  { %5981 = vmatprep.subr.mxu0 %v6621_v6 }
0x14ce   :  { %v7084_v21 = vpop.xlane.xlu0 %1282 }
0x14cf   :  { %vm1294_vm12 = vcmp.eq.f32.partialorder %v7020_v52, %v7084_v21 }
0x14d0   :  { %v1295_v38 = vsel %vm1294_vm12, %v6828_v14, 16 }
0x14d1   :  { %v1296_v41 = vsel %vm753_vm8, %v1295_v38, 2147483647 }
0x14d2   :  { %v1298_v44 = vshra.s32 %v1296_v41, 16  ;;  %v1297_v47 = vand.u32 65535, %v1296_v41 }
0x14d4   :  { %v1300_v46 = vcvt.s32.f32 %v1298_v44  ;;  %v1299_v51 = vcvt.s32.f32 %v1297_v47 }
0x14d6   :  { %1301 = vmin.xlane.f32.xlu1 %v1300_v46 }
0x1563   :  { %v1302_v49 = vpop.xlane.xlu1 %1301 }
0x1564   :  { %vm1303_vm13 = vcmp.eq.f32.partialorder %v1300_v46, %v1302_v49  ;;  %v1308_v62 = vcvt.f32.s32 %v1302_v49 }
0x1565   :  { %v1304_v57 = vsel %vm1303_vm13, %v1299_v51, inf }
0x1566   :  { %1305 = vmin.xlane.f32.xlu0 %v1304_v57  ;;  %v1309_v0 = vshll.u32 %v1308_v62, 16 }
0x1573   :  { %v1619_v53 = vpop.f32.mrb[10].mxu1 }
0x1574   :  { %v5960_v54 = vpop.f32.mrb[11].mxu1  ;;  %v1625_v56 = vrot.slane %v1619_v53, 7  ;;  %v7120_v53 = vld [vmem:[%s7918_s0] sm:$0xff] }
0x1577   :  { %v1539_v59 = vpop.f32.mrb[10].mxu0 }
0x1578   :  { %v5955_v60 = vpop.f32.mrb[11].mxu0  ;;  %v1626_v5 = vsel %vm341_vm2, %v1625_v56, %v1539_v59 }
0x1579   :  { %1627 = vrot.lane.b32.xlu1 %v1626_v5, %s6624_s4 }
0x157c   :  { %1704 = vrot.lane.b32.xlu0 %v7020_v52, %s6622_s1 }
0x157d   :  { %1714 = vrot.lane.b32.xlu1 %v7020_v52, %s6627_s25 }
0x15eb   :  { %v1628_v3 = vpop.permute.xlu1 %1627 }
0x15ef   :  { %v1715_v29 = vpop.permute.xlu1 %1714 }
0x15f3   :  { %v1306_v63 = vpop.xlane.xlu0 %1305 }
0x15f4   :  { %v1307_v1 = vcvt.f32.s32 %v1306_v63 }
0x15f6   :  { %v1310_v39 = vadd.s32 %v1309_v0, %v1307_v1 }
0x15f7   :  { %v1705_v13 = vpop.permute.xlu0 %1704 }
0x15f8   :  { %vm1311_vm14 = vcmp.eq.s32.totalorder %v6828_v14, %v1310_v39 }
0x15f9   :  { %v5726_v4 = vsel %vm1311_vm14, 1.0, %v6621_v6 }
0x15fa   :  { %v1630_v9 = vsel %vm320_vm1, %v5726_v4, %v1628_v3 }
0x15fb   :  { %5974 = vmatmul.mubr.msk.f32.vlgmr.msra.gmra.mrb[12].mxu0 %vm572_vm7, %v1630_v9 }
0x15fc   :  { %5982 = vmatpush3.msra.mxu0 %v7103_v12  ;;  %5983 = vmatprep.mubr.msk.f32.mxu0 %vm6626_vm4, %v6621_v6 }
0x15fd   :  { %6228 = vmatprep.subr.bf16.mxu0 %v6719_v11 }
0x16ce   :  { %v1700_v22 = vpop.f32.mrb[12].mxu0 }
0x16cf   :  { %v1707_v23 = vadd.f32 %v1705_v13, %v1700_v22  ;;  %v5975_v24 = vpop.f32.mrb[13].mxu0 }
0x16d1   :  { %v5730_v25 = vmul.f32 -1.442695, %v1707_v23 }
0x16d3   :  { %6407 = vpow2.f32 %v5730_v25 }
0x16dd   :  { %v6408_v26 = vpop.eup %6407 }
0x16de   :  { %v1711_v27 = vadd.f32 1.0, %v6408_v26 }
0x16e0   :  { %6409 = vrcp.f32 %v1711_v27 }
0x16ea   :  { %v6410_v28 = vpop.eup %6409 }
0x16eb   :  { %v1717_v34 = vmul.f32 %v6410_v28, %v1715_v29  ;;  %v1724_v44 = vsub.f32 1.0, %v6410_v28  ;;  %v1730_v47 = vmul.f32 %v6410_v28, %v7010_v48 }
0x16ed   :  { %1719 = vrot.lane.b32.xlu1 %v1717_v34, %s6630_s17 }
0x175f   :  { %v1720_v20 = vpop.permute.xlu1 %1719 }
0x1760   :  { %v1722_v38 = vadd.f32 %v1720_v20, %v1700_v22 }
0x1762   :  { %6411 = vtanh.f32 %v1722_v38 }
0x176c   :  { %v6412_v41 = vpop.eup %6411 }
0x176d   :  { %1726 = vrot.lane.b32.xlu1 %v6412_v41, %s6631_s18 }
0x17df   :  { %v1727_v46 = vpop.permute.xlu1 %1726 }
0x17e0   :  { %v1729_v49 = vmul.f32 %v1727_v46, %v1724_v44 }
0x17e2   :  { %v7112_v51 = vadd.f32 %v1730_v47, %v1729_v49 }
0x17e4   :  { %1733 = vrot.lane.b32.xlu0 %v7112_v51, %s6631_s18 }
0x1856   :  { %v1734_v57 = vpop.permute.xlu0 %1733 }
0x1857   :  { %5731 = vmatmul.mubr.msk.f32.vlgmr.msra.gmra.mrb[12].mxu1 %vm62_vm0, %v1734_v57 }
0x1858   :  { %5977 = vmatpush3.msra.mxu1 %v7120_v53  ;;  %5978 = vmatprep.mubr.msk.f32.mxu1 %vm6626_vm4, %v6621_v6 }
0x1859   :  { %6218 = vmatprep.subr.bf16.mxu1 %v6628_v7 }
0x192a   :  { %v1803_v48 = vpop.f32.mrb[12].mxu1 }
0x192b   :  { %v7127_v54 = vadd.f32 %v1803_v48, %v6786_v35  ;;  %v1805_v56 = vpop.f32.mrb[13].mxu1 }
0x192c   :  { %v1806_v59 = vadd.f32 %v1805_v56, %v6789_v36 }
0x192e   :  { %v1843_v60 = vcombine.low %v7127_v54, %v1806_v59 }
0x1930   :  { %v1850_v5 = vrot.slane %v1843_v60, %v6797_v43 }
0x1932   :  { %v1851_v62 = vcombine.high %v1850_v5, %v1850_v5  ;;  %v1858_v63 = vrot.slane %v1850_v5, %v6797_v43 }
0x1934   :  { %v1865_v0 = vrot.slane %v1851_v62, %v6797_v43  ;;  %v1869_v1 = vrot.slane %v1858_v63, %v6777_v32  ;;  %v1873_v39 = vrot.slane %v1858_v63, %v6780_v33 }
0x1936   :  { %v1877_v3 = vrot.slane %v1865_v0, %v6777_v32  ;;  %v1881_v4 = vrot.slane %v1865_v0, %v6780_v33  ;;  %v1886_v9 = vadd.f32 %v1869_v1, %v6804_v50  ;;  %v1887_v13 = vadd.f32 %v1873_v39, %v6804_v50 }
0x1938   :  { %v1888_v22 = vadd.f32 %v1877_v3, %v6810_v55  ;;  %v1889_v23 = vadd.f32 %v1881_v4, %v6810_v55  ;;  %6413 = vtanh.f32 %v1886_v9 }
0x1939   :  { %6415 = vtanh.f32 %v1887_v13 }
0x193a   :  { %6417 = vtanh.f32 %v1888_v22 }
0x193b   :  { %6419 = vtanh.f32 %v1889_v23 }
0x1942   :  { %v6414_v24 = vpop.eup %6413 }
0x1943   :  { %v6416_v25 = vpop.eup %6415  ;;  %v1894_v26 = vmul.f32 %v6414_v24, %v6814_v58 }
0x1944   :  { %v6418_v27 = vpop.eup %6417  ;;  %v1895_v28 = vmul.f32 %v6416_v25, %v6814_v58 }
0x1945   :  { %v6420_v29 = vpop.eup %6419  ;;  %1902 = vrot.lane.b32.xlu1 %v1894_v26, %s6624_s4  ;;  %v1896_v34 = vmul.f32 %v6418_v27, %v6814_v58 }
0x1946   :  { %1904 = vrot.lane.b32.xlu0 %v1895_v28, %s6624_s4  ;;  %v1897_v20 = vmul.f32 %v6420_v29, %v6814_v58 }
0x1949   :  { %1906 = vrot.lane.b32.xlu1 %v1896_v34, %s6624_s4 }
0x194a   :  { %1908 = vrot.lane.b32.xlu0 %v1897_v20, %s6624_s4 }
0x19b7   :  { %v1903_v38 = vpop.permute.xlu1 %1902 }
0x19b8   :  { %v1905_v41 = vpop.permute.xlu0 %1904 }
0x19b9   :  { %v1910_v44 = vsel %vm320_vm1, %v1903_v38, %v1905_v41 }
0x19ba   :  { %v1914_v46 = vsel %vm62_vm0, %v1910_v44, 0.0 }
0x19bb   :  { %1915 = vadd.xlane.f32.xlu1 %v1914_v46  ;;  %v1907_v47 = vpop.permute.xlu1 %1906 }
0x19bc   :  { %v1909_v49 = vpop.permute.xlu0 %1908 }
0x19bd   :  { %v1911_v57 = vsel %vm320_vm1, %v1907_v47, %v1909_v49 }
0x19be   :  { %v1917_v48 = vsel %vm62_vm0, %v1911_v57, 0.0 }
0x19bf   :  { %1918 = vadd.xlane.f32.xlu0 %v1917_v48  ;;  %v1808_v48 = vsel %vm753_vm8, %v7127_v54, -inf }
0x1a48   :  { %v1916_v56 = vpop.xlane.xlu1 %1915 }
0x1a49   :  { %v1925_v60 = vrot.slane %v1916_v56, %v6832_v17 }
0x1a4c   :  { %v1919_v59 = vpop.xlane.xlu0 %1918 }
0x1a4d   :  { %v1929_v5 = vrot.slane %v1919_v59, %v6832_v17 }
0x1a4f   :  { %v1930_v62 = vsel %vm341_vm2, %v1929_v5, %v1925_v60 }
0x1a50   :  { %v1932_v63 = vsel %vm344_vm3, %v1930_v62, -inf }
0x1a51   :  { %1933 = vmax.xlane.f32.xlu0 %v1932_v63 }
0x1ade   :  { %v1934_v0 = vpop.xlane.xlu0 %1933 }
0x1adf   :  { %v1939_v1 = vrot.slane %v1934_v0, %v6777_v32  ;;  %v1943_v39 = vrot.slane %v1934_v0, %v6780_v33 }
0x1ae1   :  { %v1946_v3 = vsub.f32 %v1916_v56, %v1939_v1  ;;  %v1947_v4 = vsub.f32 %v1919_v59, %v1943_v39 }
0x1ae3   :  { %v1948_v9 = vmul.f32 1.442695, %v1946_v3  ;;  %v1950_v13 = vmul.f32 1.442695, %v1947_v4 }
0x1ae5   :  { %6421 = vpow2.f32 %v1948_v9 }
0x1ae6   :  { %6423 = vpow2.f32 %v1950_v13 }
0x1aef   :  { %v6422_v22 = vpop.eup %6421 }
0x1af0   :  { %v6424_v23 = vpop.eup %6423  ;;  %1955 = vperm.xlu0 %6352, %v6422_v22  }
0x1af1   :  { %1958 = vperm.xlu1 %6351, %v6424_v23  }
0x1b6f   :  { %v1956_v24 = vpop.permute.xlu0 %1955 }
0x1b70   :  { %v1959_v25 = vpop.permute.xlu1 %1958  ;;  %v1963_v26 = vrot.slane %v1956_v24, %v6832_v17 }
0x1b71   :  { %v1967_v27 = vrot.slane %v1959_v25, %v6832_v17 }
0x1b73   :  { %v1968_v28 = vsel %vm341_vm2, %v1967_v27, %v1963_v26 }
0x1b74   :  { %v1970_v29 = vsel %vm344_vm3, %v1968_v28, 0.0 }
0x1b75   :  { %1971 = vadd.xlane.f32.xlu1 %v1970_v29 }
0x1c02   :  { %v1972_v34 = vpop.xlane.xlu1 %1971 }
0x1c03   :  { %6425 = vrcp.f32 %v1972_v34 }
0x1c0d   :  { %v6426_v20 = vpop.eup %6425 }
0x1c0e   :  { %v1974_v38 = vmul.f32 %v6426_v20, %v1972_v34 }
0x1c10   :  { %v1975_v41 = vsub.f32 2.0, %v1974_v38 }
0x1c12   :  { %v1976_v44 = vmul.f32 %v6426_v20, %v1975_v41 }
0x1c14   :  { %v1985_v46 = vrot.slane %v1976_v44, %v6780_v33  ;;  %v1981_v49 = vrot.slane %v1976_v44, %v6777_v32 }
0x1c16   :  { %v1989_v47 = vmul.f32 %v6424_v23, %v1985_v46  ;;  %v1988_v57 = vmul.f32 %v6422_v22, %v1981_v49 }
0x1c18   :  { %2072 = vperm.xlu0 %6352, %v1989_v47  }
0x1c1c   :  { %1992 = vperm.xlu0 %6352, %v1988_v57  }
0x1c3b   :  { %1809 = vmax.xlane.f32.xlu0 %v1808_v48 }
0x1c97   :  { %v7168_v56 = vpop.permute.xlu0 %2072 }
0x1c98   :  { %v2077_v59 = vrot.slane %v7168_v56, %v6832_v17 }
0x1c9a   :  { %5984 = vmatmul.mubr.msk.f32.vlgmr.msra.gmra.mrb[14].mxu0 %vm411_vm5, %v2077_v59 }
0x1c9b   :  { %v7173_v60 = vpop.permute.xlu0 %1992  ;;  %6230 = vmatpush1.bf16.msra.mxu0 %v6730_v15  ;;  %2328 = vmatprep.mubr.f32.mxu0 %v6621_v6 }
0x1c9c   :  { %v1997_v5 = vrot.slane %v7173_v60, %v6832_v17  ;;  %6232 = vmatprep.subr.bf16.mxu0 %v6732_v16 }
0x1c9e   :  { %5979 = vmatmul.mubr.msk.f32.vlgmr.msra.gmra.mrb[14].mxu1 %vm411_vm5, %v1997_v5 }
0x1c9f   :  { %6220 = vmatpush3.bf16.msra.mxu1 %v6878_v8  ;;  %5998 = vmatprep.mubr.msk.f32.mxu1 %vm6626_vm4, %v6621_v6 }
0x1ca0   :  { %6221 = vmatprep.subr.bf16.mxu1 %v6628_v7  ;;  %6234 = vmatpush1.bf16.msra.mxu0 %v6742_v19 }
0x1ca1   :  { %6001 = vmatprep.subr.mxu0 %v6621_v6 }
0x1ca3   :  { %6223 = vmatpush3.bf16.msra.mxu1 %v6884_v10 }
0x1ca4   :  { %6224 = vmatprep.subr.bf16.mxu1 %v6628_v7 }
0x1ca7   :  { %6226 = vmatpush3.bf16.msra.mxu1 %v6894_v18 }
0x1ca8   :  { %6006 = vmatprep.subr.mxu1 %v6621_v6 }
0x1cc8   :  { %v7191_v62 = vpop.xlane.xlu0 %1809 }
0x1cc9   :  { %vm1821_vm15 = vcmp.eq.f32.partialorder %v7127_v54, %v7191_v62 }
0x1cca   :  { %v1822_v63 = vsel %vm1821_vm15, %v6828_v14, 16 }
0x1ccb   :  { %v1823_v0 = vsel %vm753_vm8, %v1822_v63, 2147483647 }
0x1ccc   :  { %v1825_v1 = vshra.s32 %v1823_v0, 16  ;;  %v1824_v3 = vand.u32 65535, %v1823_v0 }
0x1cce   :  { %v1827_v39 = vcvt.s32.f32 %v1825_v1  ;;  %v1826_v9 = vcvt.s32.f32 %v1824_v3 }
0x1cd0   :  { %1828 = vmin.xlane.f32.xlu1 %v1827_v39 }
0x1d5d   :  { %v1829_v4 = vpop.xlane.xlu1 %1828 }
0x1d5e   :  { %vm1830_vm6 = vcmp.eq.f32.partialorder %v1827_v39, %v1829_v4  ;;  %v1835_v28 = vcvt.f32.s32 %v1829_v4 }
0x1d5f   :  { %v1831_v13 = vsel %vm1830_vm6, %v1826_v9, inf  ;;  %vm5671_vm6 = vcmask 195584  }
0x1d60   :  { %1832 = vmin.xlane.f32.xlu1 %v1831_v13  ;;  %v1836_v34 = vshll.u32 %v1835_v28, 16 }
0x1d6d   :  { %v2146_v22 = vpop.f32.mrb[14].mxu0 }
0x1d6e   :  { %v5985_v23 = vpop.f32.mrb[15].mxu0  ;;  %v2152_v24 = vrot.slane %v2146_v22, 7 }
0x1d71   :  { %v2066_v25 = vpop.f32.mrb[14].mxu1  ;;  %2231 = vrot.lane.b32.xlu1 %v7127_v54, %s6622_s1 }
0x1d72   :  { %v5980_v26 = vpop.f32.mrb[15].mxu1  ;;  %v2153_v27 = vsel %vm341_vm2, %v2152_v24, %v2066_v25 }
0x1d73   :  { %2154 = vrot.lane.b32.xlu0 %v2153_v27, %s6624_s4 }
0x1d75   :  { %2241 = vrot.lane.b32.xlu1 %v7127_v54, %s6627_s25 }
0x1de5   :  { %v2155_v41 = vpop.permute.xlu0 %2154 }
0x1ded   :  { %v1833_v29 = vpop.xlane.xlu1 %1832 }
0x1dee   :  { %v1834_v20 = vcvt.f32.s32 %v1833_v29 }
0x1df0   :  { %v1837_v38 = vadd.s32 %v1836_v34, %v1834_v20 }
0x1df1   :  { %v2232_v47 = vpop.permute.xlu1 %2231 }
0x1df2   :  { %vm1838_vm9 = vcmp.eq.s32.totalorder %v6828_v14, %v1837_v38 }
0x1df3   :  { %v5732_v44 = vsel %vm1838_vm9, 1.0, %v6621_v6  ;;  %vm5674_vm9 = vcmask 326656  }
0x1df4   :  { %v2157_v46 = vsel %vm320_vm1, %v5732_v44, %v2155_v41 }
0x1df5   :  { %5999 = vmatmul.mubr.msk.f32.vlgmr.msra.gmra.mrb[16].mxu1 %vm572_vm7, %v2157_v46  ;;  %v2242_v1 = vpop.permute.xlu1 %2241 }
0x1df6   :  { %6007 = vmatpush3.msra.mxu1 %v7103_v12  ;;  %6008 = vmatprep.mubr.msk.f32.mxu1 %vm6626_vm4, %v6621_v6 }
0x1df7   :  { %6245 = vmatprep.subr.bf16.mxu1 %v6719_v11 }
0x1ec8   :  { %v2227_v49 = vpop.f32.mrb[16].mxu1 }
0x1ec9   :  { %v2234_v57 = vadd.f32 %v2232_v47, %v2227_v49  ;;  %v6000_v48 = vpop.f32.mrb[17].mxu1 }
0x1ecb   :  { %v5736_v59 = vmul.f32 -1.442695, %v2234_v57 }
0x1ecd   :  { %6427 = vpow2.f32 %v5736_v59 }
0x1ed7   :  { %v6428_v5 = vpop.eup %6427 }
0x1ed8   :  { %v2238_v63 = vadd.f32 1.0, %v6428_v5 }
0x1eda   :  { %6429 = vrcp.f32 %v2238_v63 }
0x1ee4   :  { %v6430_v0 = vpop.eup %6429 }
0x1ee5   :  { %v2244_v39 = vmul.f32 %v6430_v0, %v2242_v1  ;;  %v2251_v13 = vsub.f32 1.0, %v6430_v0  ;;  %v2257_v23 = vmul.f32 %v6430_v0, %v7112_v51 }
0x1ee7   :  { %2246 = vrot.lane.b32.xlu1 %v2244_v39, %s6630_s17 }
0x1f59   :  { %v2247_v3 = vpop.permute.xlu1 %2246 }
0x1f5a   :  { %v2249_v4 = vadd.f32 %v2247_v3, %v2227_v49 }
0x1f5c   :  { %6431 = vtanh.f32 %v2249_v4 }
0x1f66   :  { %v6432_v9 = vpop.eup %6431 }
0x1f67   :  { %2253 = vrot.lane.b32.xlu0 %v6432_v9, %s6631_s18 }
0x1fd9   :  { %v2254_v22 = vpop.permute.xlu0 %2253 }
0x1fda   :  { %v2256_v24 = vmul.f32 %v2254_v22, %v2251_v13 }
0x1fdc   :  { %v7214_v25 = vadd.f32 %v2257_v23, %v2256_v24 }
0x1fde   :  { %2260 = vrot.lane.b32.xlu1 %v7214_v25, %s6631_s18 }
0x2050   :  { %v2261_v26 = vpop.permute.xlu1 %2260 }
0x2051   :  { %5737 = vmatmul.mubr.msk.f32.vlgmr.msra.gmra.mrb[16].mxu0 %vm62_vm0, %v2261_v26 }
0x2052   :  { %6002 = vmatpush3.msra.mxu0 %v7120_v53  ;;  %6003 = vmatprep.mubr.msk.f32.mxu0 %vm6626_vm4, %v6621_v6 }
0x2053   :  { %6235 = vmatprep.subr.bf16.mxu0 %v6628_v7 }
0x2124   :  { %v2330_v27 = vpop.f32.mrb[16].mxu0 }
0x2125   :  { %v7224_v28 = vadd.f32 %v2330_v27, %v6786_v35  ;;  %v2332_v51 = vpop.f32.mrb[17].mxu0 }
0x2126   :  { %v2333_v29 = vadd.f32 %v2332_v51, %v6789_v36 }
0x2128   :  { %v2370_v34 = vcombine.low %v7224_v28, %v2333_v29 }
0x212a   :  { %v2377_v20 = vrot.slane %v2370_v34, %v6797_v43 }
0x212c   :  { %v2378_v38 = vcombine.high %v2377_v20, %v2377_v20  ;;  %v2385_v41 = vrot.slane %v2377_v20, %v6797_v43 }
0x212e   :  { %v2392_v44 = vrot.slane %v2378_v38, %v6797_v43  ;;  %v2396_v46 = vrot.slane %v2385_v41, %v6777_v32  ;;  %v2400_v47 = vrot.slane %v2385_v41, %v6780_v33 }
0x2130   :  { %v2404_v49 = vrot.slane %v2392_v44, %v6777_v32  ;;  %v2408_v57 = vrot.slane %v2392_v44, %v6780_v33  ;;  %v2413_v48 = vadd.f32 %v2396_v46, %v6804_v50  ;;  %v2414_v59 = vadd.f32 %v2400_v47, %v6804_v50 }
0x2132   :  { %v2415_v5 = vadd.f32 %v2404_v49, %v6810_v55  ;;  %v2416_v63 = vadd.f32 %v2408_v57, %v6810_v55  ;;  %6433 = vtanh.f32 %v2413_v48 }
0x2133   :  { %6435 = vtanh.f32 %v2414_v59 }
0x2134   :  { %6437 = vtanh.f32 %v2415_v5 }
0x2135   :  { %6439 = vtanh.f32 %v2416_v63 }
0x213c   :  { %v6434_v0 = vpop.eup %6433 }
0x213d   :  { %v6436_v1 = vpop.eup %6435  ;;  %v2421_v39 = vmul.f32 %v6434_v0, %v6814_v58 }
0x213e   :  { %v6438_v3 = vpop.eup %6437  ;;  %v2422_v4 = vmul.f32 %v6436_v1, %v6814_v58 }
0x213f   :  { %v6440_v9 = vpop.eup %6439  ;;  %2429 = vrot.lane.b32.xlu0 %v2421_v39, %s6624_s4  ;;  %v2423_v13 = vmul.f32 %v6438_v3, %v6814_v58 }
0x2140   :  { %2431 = vrot.lane.b32.xlu1 %v2422_v4, %s6624_s4  ;;  %v2424_v22 = vmul.f32 %v6440_v9, %v6814_v58 }
0x2143   :  { %2433 = vrot.lane.b32.xlu0 %v2423_v13, %s6624_s4 }
0x2144   :  { %2435 = vrot.lane.b32.xlu1 %v2424_v22, %s6624_s4 }
0x21b1   :  { %v2430_v23 = vpop.permute.xlu0 %2429 }
0x21b2   :  { %v2432_v24 = vpop.permute.xlu1 %2431 }
0x21b3   :  { %v2437_v26 = vsel %vm320_vm1, %v2430_v23, %v2432_v24 }
0x21b4   :  { %v2441_v27 = vsel %vm62_vm0, %v2437_v26, 0.0 }
0x21b5   :  { %2442 = vadd.xlane.f32.xlu0 %v2441_v27  ;;  %v2434_v51 = vpop.permute.xlu0 %2433 }
0x21b6   :  { %v2436_v29 = vpop.permute.xlu1 %2435 }
0x21b7   :  { %v2438_v34 = vsel %vm320_vm1, %v2434_v51, %v2436_v29 }
0x21b8   :  { %v2444_v20 = vsel %vm62_vm0, %v2438_v34, 0.0 }
0x21b9   :  { %2445 = vadd.xlane.f32.xlu1 %v2444_v20 }
0x2242   :  { %v2443_v38 = vpop.xlane.xlu0 %2442 }
0x2243   :  { %v2452_v44 = vrot.slane %v2443_v38, %v6832_v17 }
0x2246   :  { %v2446_v41 = vpop.xlane.xlu1 %2445 }
0x2247   :  { %v2456_v46 = vrot.slane %v2446_v41, %v6832_v17 }
0x2249   :  { %v2457_v47 = vsel %vm341_vm2, %v2456_v46, %v2452_v44  ;;  %v2335_v46 = vsel %vm753_vm8, %v7224_v28, -inf }
0x224a   :  { %v2459_v49 = vsel %vm344_vm3, %v2457_v47, -inf }
0x224b   :  { %2460 = vmax.xlane.f32.xlu0 %v2459_v49 }
0x22d8   :  { %v2461_v57 = vpop.xlane.xlu0 %2460 }
0x22d9   :  { %v2466_v48 = vrot.slane %v2461_v57, %v6777_v32  ;;  %v2470_v59 = vrot.slane %v2461_v57, %v6780_v33 }
0x22db   :  { %v2473_v5 = vsub.f32 %v2443_v38, %v2466_v48  ;;  %v2474_v63 = vsub.f32 %v2446_v41, %v2470_v59 }
0x22dd   :  { %v2475_v0 = vmul.f32 1.442695, %v2473_v5  ;;  %v2477_v1 = vmul.f32 1.442695, %v2474_v63 }
0x22df   :  { %6441 = vpow2.f32 %v2475_v0 }
0x22e0   :  { %6443 = vpow2.f32 %v2477_v1 }
0x22e9   :  { %v6442_v39 = vpop.eup %6441 }
0x22ea   :  { %v6444_v3 = vpop.eup %6443  ;;  %2482 = vperm.xlu0 %6352, %v6442_v39  }
0x22eb   :  { %2485 = vperm.xlu1 %6351, %v6444_v3  }
0x2369   :  { %v2483_v4 = vpop.permute.xlu0 %2482 }
0x236a   :  { %v2486_v9 = vpop.permute.xlu1 %2485  ;;  %v2490_v13 = vrot.slane %v2483_v4, %v6832_v17 }
0x236b   :  { %v2494_v22 = vrot.slane %v2486_v9, %v6832_v17 }
0x236d   :  { %v2495_v23 = vsel %vm341_vm2, %v2494_v22, %v2490_v13 }
0x236e   :  { %v2497_v24 = vsel %vm344_vm3, %v2495_v23, 0.0 }
0x236f   :  { %2498 = vadd.xlane.f32.xlu1 %v2497_v24 }
0x23fc   :  { %v2499_v26 = vpop.xlane.xlu1 %2498 }
0x23fd   :  { %6445 = vrcp.f32 %v2499_v26 }
0x2407   :  { %v6446_v27 = vpop.eup %6445 }
0x2408   :  { %v2501_v51 = vmul.f32 %v6446_v27, %v2499_v26 }
0x240a   :  { %v2502_v29 = vsub.f32 2.0, %v2501_v51 }
0x240c   :  { %v2503_v34 = vmul.f32 %v6446_v27, %v2502_v29 }
0x240e   :  { %v2512_v20 = vrot.slane %v2503_v34, %v6780_v33  ;;  %v2508_v38 = vrot.slane %v2503_v34, %v6777_v32 }
0x2410   :  { %v2516_v41 = vmul.f32 %v6444_v3, %v2512_v20  ;;  %v2515_v44 = vmul.f32 %v6442_v39, %v2508_v38 }
0x2412   :  { %2599 = vperm.xlu0 %6352, %v2516_v41  }
0x2416   :  { %2519 = vperm.xlu0 %6352, %v2515_v44  }
0x2435   :  { %2336 = vmax.xlane.f32.xlu0 %v2335_v46 }
0x2491   :  { %v7265_v47 = vpop.permute.xlu0 %2599 }
0x2492   :  { %v2604_v49 = vrot.slane %v7265_v47, %v6832_v17 }
0x2494   :  { %6009 = vmatmul.mubr.msk.f32.vlgmr.msra.gmra.mrb[18].mxu1 %vm411_vm5, %v2604_v49 }
0x2495   :  { %v7270_v57 = vpop.permute.xlu0 %2519  ;;  %6247 = vmatpush1.bf16.msra.mxu1 %v6730_v15  ;;  %2855 = vmatprep.mubr.f32.mxu1 %v6621_v6 }
0x2496   :  { %v2524_v48 = vrot.slane %v7270_v57, %v6832_v17  ;;  %6249 = vmatprep.subr.bf16.mxu1 %v6732_v16 }
0x2498   :  { %6004 = vmatmul.mubr.msk.f32.vlgmr.msra.gmra.mrb[18].mxu0 %vm411_vm5, %v2524_v48 }
0x2499   :  { %6237 = vmatpush3.bf16.msra.mxu0 %v6878_v8  ;;  %6023 = vmatprep.mubr.msk.f32.mxu0 %vm6626_vm4, %v6621_v6 }
0x249a   :  { %6238 = vmatprep.subr.bf16.mxu0 %v6628_v7  ;;  %6251 = vmatpush1.bf16.msra.mxu1 %v6742_v19 }
0x249b   :  { %6026 = vmatprep.subr.mxu1 %v6621_v6 }
0x249d   :  { %6240 = vmatpush3.bf16.msra.mxu0 %v6884_v10 }
0x249e   :  { %6241 = vmatprep.subr.bf16.mxu0 %v6628_v7 }
0x24a1   :  { %6243 = vmatpush3.bf16.msra.mxu0 %v6894_v18 }
0x24a2   :  { %6031 = vmatprep.subr.mxu0 %v6621_v6 }
0x24c2   :  { %v7288_v59 = vpop.xlane.xlu0 %2336 }
0x24c3   :  { %vm2348_vm10 = vcmp.eq.f32.partialorder %v7224_v28, %v7288_v59 }
0x24c4   :  { %v2349_v5 = vsel %vm2348_vm10, %v6828_v14, 16 }
0x24c5   :  { %v2350_v63 = vsel %vm753_vm8, %v2349_v5, 2147483647 }
0x24c6   :  { %v2352_v0 = vshra.s32 %v2350_v63, 16  ;;  %v2351_v39 = vand.u32 65535, %v2350_v63 }
0x24c8   :  { %v2354_v1 = vcvt.s32.f32 %v2352_v0  ;;  %v2353_v4 = vcvt.s32.f32 %v2351_v39 }
0x24ca   :  { %2355 = vmin.xlane.f32.xlu1 %v2354_v1 }
0x2557   :  { %v2356_v3 = vpop.xlane.xlu1 %2355 }
0x2558   :  { %vm2357_vm11 = vcmp.eq.f32.partialorder %v2354_v1, %v2356_v3  ;;  %v2362_v51 = vcvt.f32.s32 %v2356_v3 }
0x2559   :  { %v2358_v9 = vsel %vm2357_vm11, %v2353_v4, inf }
0x255a   :  { %2359 = vmin.xlane.f32.xlu0 %v2358_v9  ;;  %v2363_v34 = vshll.u32 %v2362_v51, 16 }
0x2567   :  { %v2673_v13 = vpop.f32.mrb[18].mxu1 }
0x2568   :  { %v6010_v22 = vpop.f32.mrb[19].mxu1  ;;  %v2679_v23 = vrot.slane %v2673_v13, 7 }
0x256b   :  { %v2593_v24 = vpop.f32.mrb[18].mxu0 }
0x256c   :  { %v6005_v26 = vpop.f32.mrb[19].mxu0  ;;  %v2680_v27 = vsel %vm341_vm2, %v2679_v23, %v2593_v24 }
0x256d   :  { %2681 = vrot.lane.b32.xlu1 %v2680_v27, %s6624_s4 }
0x2570   :  { %2758 = vrot.lane.b32.xlu0 %v7224_v28, %s6622_s1 }
0x2571   :  { %2768 = vrot.lane.b32.xlu1 %v7224_v28, %s6627_s25 }
0x25df   :  { %v2682_v41 = vpop.permute.xlu1 %2681 }
0x25e3   :  { %v2769_v4 = vpop.permute.xlu1 %2768 }
0x25e7   :  { %v2360_v29 = vpop.xlane.xlu0 %2359 }
0x25e8   :  { %v2361_v20 = vcvt.f32.s32 %v2360_v29 }
0x25ea   :  { %v2364_v38 = vadd.s32 %v2363_v34, %v2361_v20 }
0x25eb   :  { %v2759_v49 = vpop.permute.xlu0 %2758 }
0x25ec   :  { %vm2365_vm12 = vcmp.eq.s32.totalorder %v6828_v14, %v2364_v38 }
0x25ed   :  { %v5738_v44 = vsel %vm2365_vm12, 1.0, %v6621_v6 }
0x25ee   :  { %v2684_v46 = vsel %vm320_vm1, %v5738_v44, %v2682_v41 }
0x25ef   :  { %6024 = vmatmul.mubr.msk.f32.vlgmr.msra.gmra.mrb[20].mxu0 %vm572_vm7, %v2684_v46 }
0x25f0   :  { %6032 = vmatpush3.msra.mxu0 %v7103_v12  ;;  %6033 = vmatprep.mubr.msk.f32.mxu0 %vm6626_vm4, %v6621_v6 }
0x25f1   :  { %6262 = vmatprep.subr.bf16.mxu0 %v6719_v11 }
0x26c2   :  { %v2754_v48 = vpop.f32.mrb[20].mxu0 }
0x26c3   :  { %v2761_v5 = vadd.f32 %v2759_v49, %v2754_v48  ;;  %v6025_v63 = vpop.f32.mrb[21].mxu0 }
0x26c5   :  { %v5742_v0 = vmul.f32 -1.442695, %v2761_v5 }
0x26c7   :  { %6447 = vpow2.f32 %v5742_v0 }
0x26d1   :  { %v6448_v1 = vpop.eup %6447 }
0x26d2   :  { %v2765_v39 = vadd.f32 1.0, %v6448_v1 }
0x26d4   :  { %6449 = vrcp.f32 %v2765_v39 }
0x26de   :  { %v6450_v3 = vpop.eup %6449 }
0x26df   :  { %v2771_v9 = vmul.f32 %v6450_v3, %v2769_v4  ;;  %v2778_v24 = vsub.f32 1.0, %v6450_v3  ;;  %v2784_v27 = vmul.f32 %v6450_v3, %v7214_v25 }
0x26e1   :  { %2773 = vrot.lane.b32.xlu1 %v2771_v9, %s6630_s17 }
0x2753   :  { %v2774_v13 = vpop.permute.xlu1 %2773 }
0x2754   :  { %v2776_v22 = vadd.f32 %v2774_v13, %v2754_v48 }
0x2756   :  { %6451 = vtanh.f32 %v2776_v22 }
0x2760   :  { %v6452_v23 = vpop.eup %6451 }
0x2761   :  { %2780 = vrot.lane.b32.xlu1 %v6452_v23, %s6631_s18 }
0x27d3   :  { %v2781_v26 = vpop.permute.xlu1 %2780 }
0x27d4   :  { %v2783_v51 = vmul.f32 %v2781_v26, %v2778_v24 }
0x27d6   :  { %v7311_v29 = vadd.f32 %v2784_v27, %v2783_v51 }
0x27d8   :  { %2787 = vrot.lane.b32.xlu0 %v7311_v29, %s6631_s18 }
0x284a   :  { %v2788_v34 = vpop.permute.xlu0 %2787 }
0x284b   :  { %5743 = vmatmul.mubr.msk.f32.vlgmr.msra.gmra.mrb[20].mxu1 %vm62_vm0, %v2788_v34 }
0x284c   :  { %6027 = vmatpush3.msra.mxu1 %v7120_v53  ;;  %6028 = vmatprep.mubr.msk.f32.mxu1 %vm6626_vm4, %v6621_v6 }
0x284d   :  { %6252 = vmatprep.subr.bf16.mxu1 %v6628_v7 }
0x291e   :  { %v2857_v20 = vpop.f32.mrb[20].mxu1 }
0x291f   :  { %v7321_v38 = vadd.f32 %v2857_v20, %v6786_v35  ;;  %v2859_v25 = vpop.f32.mrb[21].mxu1 }
0x2920   :  { %v2860_v41 = vadd.f32 %v2859_v25, %v6789_v36 }
0x2922   :  { %v2897_v44 = vcombine.low %v7321_v38, %v2860_v41 }
0x2924   :  { %v2904_v46 = vrot.slane %v2897_v44, %v6797_v43 }
0x2926   :  { %v2905_v49 = vcombine.high %v2904_v46, %v2904_v46  ;;  %v2912_v48 = vrot.slane %v2904_v46, %v6797_v43 }
0x2928   :  { %v2919_v5 = vrot.slane %v2905_v49, %v6797_v43  ;;  %v2923_v63 = vrot.slane %v2912_v48, %v6777_v32  ;;  %v2927_v0 = vrot.slane %v2912_v48, %v6780_v33 }
0x292a   :  { %v2931_v1 = vrot.slane %v2919_v5, %v6777_v32  ;;  %v2935_v39 = vrot.slane %v2919_v5, %v6780_v33  ;;  %v2940_v3 = vadd.f32 %v2923_v63, %v6804_v50  ;;  %v2941_v4 = vadd.f32 %v2927_v0, %v6804_v50 }
0x292c   :  { %v2942_v9 = vadd.f32 %v2931_v1, %v6810_v55  ;;  %v2943_v13 = vadd.f32 %v2935_v39, %v6810_v55  ;;  %6453 = vtanh.f32 %v2940_v3 }
0x292d   :  { %6455 = vtanh.f32 %v2941_v4 }
0x292e   :  { %6457 = vtanh.f32 %v2942_v9 }
0x292f   :  { %6459 = vtanh.f32 %v2943_v13 }
0x2936   :  { %v6454_v22 = vpop.eup %6453 }
0x2937   :  { %v6456_v23 = vpop.eup %6455  ;;  %v2948_v24 = vmul.f32 %v6454_v22, %v6814_v58 }
0x2938   :  { %v6458_v26 = vpop.eup %6457  ;;  %v2949_v27 = vmul.f32 %v6456_v23, %v6814_v58 }
0x2939   :  { %v6460_v51 = vpop.eup %6459  ;;  %2956 = vrot.lane.b32.xlu1 %v2948_v24, %s6624_s4  ;;  %v2950_v34 = vmul.f32 %v6458_v26, %v6814_v58 }
0x293a   :  { %2958 = vrot.lane.b32.xlu0 %v2949_v27, %s6624_s4  ;;  %v2951_v20 = vmul.f32 %v6460_v51, %v6814_v58 }
0x293d   :  { %2960 = vrot.lane.b32.xlu1 %v2950_v34, %s6624_s4 }
0x293e   :  { %2962 = vrot.lane.b32.xlu0 %v2951_v20, %s6624_s4 }
0x29ab   :  { %v2957_v25 = vpop.permute.xlu1 %2956 }
0x29ac   :  { %v2959_v41 = vpop.permute.xlu0 %2958 }
0x29ad   :  { %v2964_v44 = vsel %vm320_vm1, %v2957_v25, %v2959_v41 }
0x29ae   :  { %v2968_v46 = vsel %vm62_vm0, %v2964_v44, 0.0 }
0x29af   :  { %2969 = vadd.xlane.f32.xlu1 %v2968_v46  ;;  %v2961_v49 = vpop.permute.xlu1 %2960 }
0x29b0   :  { %v2963_v48 = vpop.permute.xlu0 %2962 }
0x29b1   :  { %v2965_v5 = vsel %vm320_vm1, %v2961_v49, %v2963_v48 }
0x29b2   :  { %v2971_v63 = vsel %vm62_vm0, %v2965_v5, 0.0 }
0x29b3   :  { %2972 = vadd.xlane.f32.xlu0 %v2971_v63 }
0x2a3c   :  { %v2970_v0 = vpop.xlane.xlu1 %2969 }
0x2a3d   :  { %v2979_v39 = vrot.slane %v2970_v0, %v6832_v17 }
0x2a40   :  { %v2973_v1 = vpop.xlane.xlu0 %2972 }
0x2a41   :  { %v2983_v3 = vrot.slane %v2973_v1, %v6832_v17 }
0x2a43   :  { %v2984_v4 = vsel %vm341_vm2, %v2983_v3, %v2979_v39 }
0x2a44   :  { %v2986_v9 = vsel %vm344_vm3, %v2984_v4, -inf }
0x2a45   :  { %2987 = vmax.xlane.f32.xlu0 %v2986_v9 }
0x2ad2   :  { %v2988_v13 = vpop.xlane.xlu0 %2987 }
0x2ad3   :  { %v2993_v22 = vrot.slane %v2988_v13, %v6777_v32  ;;  %v2997_v23 = vrot.slane %v2988_v13, %v6780_v33 }
0x2ad5   :  { %v3000_v24 = vsub.f32 %v2970_v0, %v2993_v22  ;;  %v3001_v26 = vsub.f32 %v2973_v1, %v2997_v23  ;;  %v2862_v22 = vsel %vm753_vm8, %v7321_v38, -inf }
0x2ad7   :  { %v3002_v27 = vmul.f32 1.442695, %v3000_v24  ;;  %v3004_v51 = vmul.f32 1.442695, %v3001_v26 }
0x2ad9   :  { %6461 = vpow2.f32 %v3002_v27 }
0x2ada   :  { %6463 = vpow2.f32 %v3004_v51 }
0x2ae3   :  { %v6462_v34 = vpop.eup %6461 }
0x2ae4   :  { %v6464_v20 = vpop.eup %6463  ;;  %3009 = vperm.xlu0 %6352, %v6462_v34  }
0x2ae5   :  { %3012 = vperm.xlu1 %6351, %v6464_v20  }
0x2b63   :  { %v3010_v25 = vpop.permute.xlu0 %3009 }
0x2b64   :  { %v3013_v41 = vpop.permute.xlu1 %3012  ;;  %v3017_v44 = vrot.slane %v3010_v25, %v6832_v17 }
0x2b65   :  { %v3021_v46 = vrot.slane %v3013_v41, %v6832_v17 }
0x2b67   :  { %v3022_v49 = vsel %vm341_vm2, %v3021_v46, %v3017_v44 }
0x2b68   :  { %v3024_v48 = vsel %vm344_vm3, %v3022_v49, 0.0 }
0x2b69   :  { %3025 = vadd.xlane.f32.xlu1 %v3024_v48 }
0x2bf6   :  { %v3026_v5 = vpop.xlane.xlu1 %3025 }
0x2bf7   :  { %6465 = vrcp.f32 %v3026_v5 }
0x2c01   :  { %v6466_v63 = vpop.eup %6465 }
0x2c02   :  { %v3028_v0 = vmul.f32 %v6466_v63, %v3026_v5 }
0x2c04   :  { %v3029_v1 = vsub.f32 2.0, %v3028_v0 }
0x2c06   :  { %v3030_v39 = vmul.f32 %v6466_v63, %v3029_v1 }
0x2c08   :  { %v3039_v3 = vrot.slane %v3030_v39, %v6780_v33  ;;  %v3035_v4 = vrot.slane %v3030_v39, %v6777_v32 }
0x2c0a   :  { %v3043_v9 = vmul.f32 %v6464_v20, %v3039_v3  ;;  %v3042_v13 = vmul.f32 %v6462_v34, %v3035_v4 }
0x2c0c   :  { %3126 = vperm.xlu0 %6352, %v3043_v9  }
0x2c10   :  { %3046 = vperm.xlu0 %6352, %v3042_v13  }
0x2c2f   :  { %2863 = vmax.xlane.f32.xlu0 %v2862_v22 }
0x2c8b   :  { %v7362_v23 = vpop.permute.xlu0 %3126 }
0x2c8c   :  { %v3131_v24 = vrot.slane %v7362_v23, %v6832_v17 }
0x2c8e   :  { %6034 = vmatmul.mubr.msk.f32.vlgmr.msra.gmra.mrb[22].mxu0 %vm411_vm5, %v3131_v24 }
0x2c8f   :  { %v7367_v26 = vpop.permute.xlu0 %3046  ;;  %6264 = vmatpush1.bf16.msra.mxu0 %v6730_v15  ;;  %3382 = vmatprep.mubr.f32.mxu0 %v6621_v6 }
0x2c90   :  { %v3051_v27 = vrot.slane %v7367_v26, %v6832_v17  ;;  %6266 = vmatprep.subr.bf16.mxu0 %v6732_v16 }
0x2c92   :  { %6029 = vmatmul.mubr.msk.f32.vlgmr.msra.gmra.mrb[22].mxu1 %vm411_vm5, %v3051_v27 }
0x2c93   :  { %6254 = vmatpush3.bf16.msra.mxu1 %v6878_v8  ;;  %6048 = vmatprep.mubr.msk.f32.mxu1 %vm6626_vm4, %v6621_v6 }
0x2c94   :  { %6255 = vmatprep.subr.bf16.mxu1 %v6628_v7  ;;  %6268 = vmatpush1.bf16.msra.mxu0 %v6742_v19 }
0x2c95   :  { %6051 = vmatprep.subr.mxu0 %v6621_v6 }
0x2c97   :  { %6257 = vmatpush3.bf16.msra.mxu1 %v6884_v10 }
0x2c98   :  { %6258 = vmatprep.subr.bf16.mxu1 %v6628_v7 }
0x2c9b   :  { %6260 = vmatpush3.bf16.msra.mxu1 %v6894_v18 }
0x2c9c   :  { %6056 = vmatprep.subr.mxu1 %v6621_v6 }
0x2cbc   :  { %v7385_v51 = vpop.xlane.xlu0 %2863 }
0x2cbd   :  { %vm2875_vm13 = vcmp.eq.f32.partialorder %v7321_v38, %v7385_v51 }
0x2cbe   :  { %v2876_v34 = vsel %vm2875_vm13, %v6828_v14, 16  ;;  %vm5677_vm13 = vcmask 457728  }
0x2cbf   :  { %v2877_v20 = vsel %vm753_vm8, %v2876_v34, 2147483647 }
0x2cc0   :  { %v2879_v25 = vshra.s32 %v2877_v20, 16  ;;  %v2878_v44 = vand.u32 65535, %v2877_v20 }
0x2cc2   :  { %v2881_v41 = vcvt.s32.f32 %v2879_v25  ;;  %v2880_v49 = vcvt.s32.f32 %v2878_v44 }
0x2cc4   :  { %2882 = vmin.xlane.f32.xlu1 %v2881_v41 }
0x2d51   :  { %v2883_v46 = vpop.xlane.xlu1 %2882 }
0x2d52   :  { %vm2884_vm14 = vcmp.eq.f32.partialorder %v2881_v41, %v2883_v46  ;;  %v2889_v4 = vcvt.f32.s32 %v2883_v46 }
0x2d53   :  { %v2885_v48 = vsel %vm2884_vm14, %v2880_v49, inf }
0x2d54   :  { %2886 = vmin.xlane.f32.xlu1 %v2885_v48  ;;  %v2890_v13 = vshll.u32 %v2889_v4, 16 }
0x2d61   :  { %v3200_v5 = vpop.f32.mrb[22].mxu0 }
0x2d62   :  { %v6035_v63 = vpop.f32.mrb[23].mxu0  ;;  %v3206_v0 = vrot.slane %v3200_v5, 7 }
0x2d65   :  { %v3120_v1 = vpop.f32.mrb[22].mxu1  ;;  %3285 = vrot.lane.b32.xlu1 %v7321_v38, %s6622_s1 }
0x2d66   :  { %v3207_v39 = vsel %vm341_vm2, %v3206_v0, %v3120_v1  ;;  %v6030_v3 = vpop.f32.mrb[23].mxu1 }
0x2d67   :  { %3208 = vrot.lane.b32.xlu0 %v3207_v39, %s6624_s4 }
0x2d69   :  { %3295 = vrot.lane.b32.xlu1 %v7321_v38, %s6627_s25 }
0x2dd9   :  { %v3209_v27 = vpop.permute.xlu0 %3208 }
0x2de1   :  { %v2887_v9 = vpop.xlane.xlu1 %2886 }
0x2de2   :  { %v2888_v22 = vcvt.f32.s32 %v2887_v9 }
0x2de4   :  { %v2891_v24 = vadd.s32 %v2890_v13, %v2888_v22 }
0x2de5   :  { %v3286_v25 = vpop.permute.xlu1 %3285 }
0x2de6   :  { %vm2892_vm15 = vcmp.eq.s32.totalorder %v6828_v14, %v2891_v24 }
0x2de7   :  { %v5744_v34 = vsel %vm2892_vm15, 1.0, %v6621_v6 }
0x2de8   :  { %v3211_v20 = vsel %vm320_vm1, %v5744_v34, %v3209_v27 }
0x2de9   :  { %6049 = vmatmul.mubr.msk.f32.vlgmr.msra.gmra.mrb[24].mxu1 %vm572_vm7, %v3211_v20  ;;  %v3296_v0 = vpop.permute.xlu1 %3295 }
0x2dea   :  { %6057 = vmatpush3.msra.mxu1 %v7103_v12  ;;  %6058 = vmatprep.mubr.msk.f32.mxu1 %vm6626_vm4, %v6621_v6 }
0x2deb   :  { %6279 = vmatprep.subr.bf16.mxu1 %v6719_v11 }
0x2ebc   :  { %v3281_v41 = vpop.f32.mrb[24].mxu1 }
0x2ebd   :  { %v3288_v44 = vadd.f32 %v3286_v25, %v3281_v41  ;;  %v6050_v46 = vpop.f32.mrb[25].mxu1 }
0x2ebf   :  { %v5748_v49 = vmul.f32 -1.442695, %v3288_v44 }
0x2ec1   :  { %6467 = vpow2.f32 %v5748_v49 }
0x2ecb   :  { %v6468_v48 = vpop.eup %6467 }
0x2ecc   :  { %v3292_v5 = vadd.f32 1.0, %v6468_v48 }
0x2ece   :  { %6469 = vrcp.f32 %v3292_v5 }
0x2ed8   :  { %v6470_v63 = vpop.eup %6469 }
0x2ed9   :  { %v3298_v1 = vmul.f32 %v6470_v63, %v3296_v0  ;;  %v3305_v4 = vsub.f32 1.0, %v6470_v63  ;;  %v3311_v13 = vmul.f32 %v6470_v63, %v7311_v29 }
0x2edb   :  { %3300 = vrot.lane.b32.xlu1 %v3298_v1, %s6630_s17 }
0x2f4d   :  { %v3301_v12 = vpop.permute.xlu1 %3300 }
0x2f4e   :  { %v3303_v39 = vadd.f32 %v3301_v12, %v3281_v41 }
0x2f50   :  { %6471 = vtanh.f32 %v3303_v39 }
0x2f5a   :  { %v6472_v3 = vpop.eup %6471 }
0x2f5b   :  { %3307 = vrot.lane.b32.xlu0 %v6472_v3, %s6631_s18 }
0x2fcd   :  { %v3308_v9 = vpop.permute.xlu0 %3307 }
0x2fce   :  { %v3310_v22 = vmul.f32 %v3308_v9, %v3305_v4 }
0x2fd0   :  { %v7408_v24 = vadd.f32 %v3311_v13, %v3310_v22 }
0x2fd2   :  { %3314 = vrot.lane.b32.xlu1 %v7408_v24, %s6631_s18 }
0x3044   :  { %v3315_v27 = vpop.permute.xlu1 %3314 }
0x3045   :  { %5749 = vmatmul.mubr.msk.f32.vlgmr.msra.gmra.mrb[24].mxu0 %vm62_vm0, %v3315_v27 }
0x3046   :  { %6052 = vmatpush3.msra.mxu0 %v7120_v53  ;;  %6053 = vmatprep.mubr.msk.f32.mxu0 %vm6626_vm4, %v6621_v6 }
0x3047   :  { %6269 = vmatprep.subr.bf16.mxu0 %v6628_v7 }
0x3118   :  { %v3384_v34 = vpop.f32.mrb[24].mxu0 }
0x3119   :  { %v7418_v20 = vadd.f32 %v3384_v34, %v6786_v35  ;;  %v3386_v29 = vpop.f32.mrb[25].mxu0 }
0x311a   :  { %v3387_v25 = vadd.f32 %v3386_v29, %v6789_v36 }
0x311c   :  { %v3424_v41 = vcombine.low %v7418_v20, %v3387_v25 }
0x311e   :  { %v3431_v44 = vrot.slane %v3424_v41, %v6797_v43 }
0x3120   :  { %v3432_v46 = vcombine.high %v3431_v44, %v3431_v44  ;;  %v3439_v49 = vrot.slane %v3431_v44, %v6797_v43 }
0x3122   :  { %v3446_v53 = vrot.slane %v3432_v46, %v6797_v43  ;;  %v3450_v48 = vrot.slane %v3439_v49, %v6777_v32  ;;  %v3454_v5 = vrot.slane %v3439_v49, %v6780_v33 }
0x3124   :  { %v3458_v63 = vrot.slane %v3446_v53, %v6777_v32  ;;  %v3462_v0 = vrot.slane %v3446_v53, %v6780_v33  ;;  %v3467_v1 = vadd.f32 %v3450_v48, %v6804_v50  ;;  %v3468_v12 = vadd.f32 %v3454_v5, %v6804_v50 }
0x3126   :  { %v3469_v39 = vadd.f32 %v3458_v63, %v6810_v55  ;;  %v3470_v3 = vadd.f32 %v3462_v0, %v6810_v55  ;;  %6473 = vtanh.f32 %v3467_v1 }
0x3127   :  { %6475 = vtanh.f32 %v3468_v12 }
0x3128   :  { %6477 = vtanh.f32 %v3469_v39 }
0x3129   :  { %6479 = vtanh.f32 %v3470_v3 }
0x3130   :  { %v6474_v4 = vpop.eup %6473 }
0x3131   :  { %v6476_v9 = vpop.eup %6475  ;;  %v3475_v13 = vmul.f32 %v6474_v4, %v6814_v58 }
0x3132   :  { %v6478_v22 = vpop.eup %6477  ;;  %v3476_v27 = vmul.f32 %v6476_v9, %v6814_v58 }
0x3133   :  { %v6480_v34 = vpop.eup %6479  ;;  %3483 = vrot.lane.b32.xlu0 %v3475_v13, %s6624_s4  ;;  %v3477_v29 = vmul.f32 %v6478_v22, %v6814_v58 }
0x3134   :  { %3485 = vrot.lane.b32.xlu1 %v3476_v27, %s6624_s4  ;;  %v3478_v25 = vmul.f32 %v6480_v34, %v6814_v58 }
0x3137   :  { %3487 = vrot.lane.b32.xlu0 %v3477_v29, %s6624_s4 }
0x3138   :  { %3489 = vrot.lane.b32.xlu1 %v3478_v25, %s6624_s4 }
0x31a5   :  { %v3484_v41 = vpop.permute.xlu0 %3483 }
0x31a6   :  { %v3486_v44 = vpop.permute.xlu1 %3485 }
0x31a7   :  { %v3491_v46 = vsel %vm320_vm1, %v3484_v41, %v3486_v44 }
0x31a8   :  { %v3495_v49 = vsel %vm62_vm0, %v3491_v46, 0.0 }
0x31a9   :  { %3496 = vadd.xlane.f32.xlu0 %v3495_v49  ;;  %v3488_v53 = vpop.permute.xlu0 %3487 }
0x31aa   :  { %v3490_v48 = vpop.permute.xlu1 %3489 }
0x31ab   :  { %v3492_v5 = vsel %vm320_vm1, %v3488_v53, %v3490_v48 }
0x31ac   :  { %v3498_v63 = vsel %vm62_vm0, %v3492_v5, 0.0 }
0x31ad   :  { %3499 = vadd.xlane.f32.xlu1 %v3498_v63 }
0x3236   :  { %v3497_v0 = vpop.xlane.xlu0 %3496 }
0x3237   :  { %v3506_v12 = vrot.slane %v3497_v0, %v6832_v17 }
0x323a   :  { %v3500_v1 = vpop.xlane.xlu1 %3499 }
0x323b   :  { %v3510_v39 = vrot.slane %v3500_v1, %v6832_v17 }
0x323d   :  { %v3511_v3 = vsel %vm341_vm2, %v3510_v39, %v3506_v12 }
0x323e   :  { %v3513_v4 = vsel %vm344_vm3, %v3511_v3, -inf }
0x323f   :  { %3514 = vmax.xlane.f32.xlu0 %v3513_v4 }
0x32cc   :  { %v3515_v9 = vpop.xlane.xlu0 %3514 }
0x32cd   :  { %v3520_v13 = vrot.slane %v3515_v9, %v6777_v32  ;;  %v3524_v22 = vrot.slane %v3515_v9, %v6780_v33 }
0x32cf   :  { %v3527_v27 = vsub.f32 %v3497_v0, %v3520_v13  ;;  %v3528_v34 = vsub.f32 %v3500_v1, %v3524_v22 }
0x32d1   :  { %v3529_v29 = vmul.f32 1.442695, %v3527_v27  ;;  %v3531_v25 = vmul.f32 1.442695, %v3528_v34  ;;  %v3389_v27 = vsel %vm753_vm8, %v7418_v20, -inf  ;;  %v5570_v34 = vadd.s32 4294967288, %v6828_v14 }
0x32d3   :  { %6481 = vpow2.f32 %v3529_v29  ;;  %v5581_v29 = vadd.s32 4294967280, %v6828_v14 }
0x32d4   :  { %6483 = vpow2.f32 %v3531_v25  ;;  %v5592_v25 = vadd.s32 4294967272, %v6828_v14 }
0x32dd   :  { %v6482_v41 = vpop.eup %6481 }
0x32de   :  { %v6484_v44 = vpop.eup %6483  ;;  %3536 = vperm.xlu0 %6352, %v6482_v41  }
0x32df   :  { %3539 = vperm.xlu1 %6351, %v6484_v44  }
0x335d   :  { %v3537_v46 = vpop.permute.xlu0 %3536 }
0x335e   :  { %v3540_v49 = vpop.permute.xlu1 %3539  ;;  %v3544_v53 = vrot.slane %v3537_v46, %v6832_v17  ;;  %v5603_v46 = vadd.s32 4294967264, %v6828_v14 }
0x335f   :  { %v3548_v48 = vrot.slane %v3540_v49, %v6832_v17  ;;  %v5573_v49 = vsub.s32 %v5570_v34, %v6774_v31 }
0x3361   :  { %v3549_v5 = vsel %vm341_vm2, %v3548_v48, %v3544_v53  ;;  %v5614_v53 = vadd.s32 4294967256, %v6828_v14  ;;  %v5595_v48 = vsub.s32 %v5592_v25, %v6774_v31 }
0x3362   :  { %v3551_v63 = vsel %vm344_vm3, %v3549_v5, 0.0 }
0x3363   :  { %3552 = vadd.xlane.f32.xlu1 %v3551_v63  ;;  %v5606_v63 = vsub.s32 %v5603_v46, %v6774_v31 }
0x33f0   :  { %v3553_v0 = vpop.xlane.xlu1 %3552 }
0x33f1   :  { %6485 = vrcp.f32 %v3553_v0 }
0x33fb   :  { %v6486_v1 = vpop.eup %6485 }
0x33fc   :  { %v3555_v12 = vmul.f32 %v6486_v1, %v3553_v0  ;;  %v5625_v0 = vadd.s32 4294967248, %v6828_v14 }
0x33fe   :  { %v3556_v39 = vsub.f32 2.0, %v3555_v12  ;;  %v5596_v12 = vrot.slane %v7173_v60, %v5595_v48 }
0x3400   :  { %v3557_v3 = vmul.f32 %v6486_v1, %v3556_v39  ;;  %v5578_v1 = vrot.slane %v6964_v40, %v5573_v49  ;;  %v5617_v39 = vsub.s32 %v5614_v53, %v6774_v31  ;;  %v5628_v40 = vsub.s32 %v5625_v0, %v6774_v31 }
0x3402   :  { %v3566_v4 = vrot.slane %v3557_v3, %v6780_v33  ;;  %v3562_v9 = vrot.slane %v3557_v3, %v6777_v32 }
0x3404   :  { %v3570_v13 = vmul.f32 %v6484_v44, %v3566_v4  ;;  %v3569_v22 = vmul.f32 %v6482_v41, %v3562_v9  ;;  %v5584_v44 = vsub.s32 %v5581_v29, %v6774_v31  ;;  %v5574_v41 = vrot.slane %v6969_v42, %v5573_v49 }
0x3405   :  { %v5607_v4 = vrot.slane %v7270_v57, %v5606_v63  ;;  %v5600_v9 = vrot.slane %v7168_v56, %v5595_v48  ;;  %v5622_v57 = vrot.slane %v7362_v23, %v5617_v39 }
0x3406   :  { %3653 = vperm.xlu0 %6352, %v3570_v13   ;;  %v5585_v5 = vrot.slane %v7066_v37, %v5584_v44  ;;  %v5589_v3 = vrot.slane %v7061_v30, %v5584_v44  ;;  %v5579_v42 = vsel %vm341_vm2, %v5578_v1, %v5574_v41  ;;  %v5618_v37 = vrot.slane %v7367_v26, %v5617_v39 }
0x3407   :  { %v5601_v30 = vsel %vm341_vm2, %v5600_v9, %v5596_v12  ;;  %v5669_v34 = vsel %vm411_vm5, %v6861_v2, %v5579_v42 }
0x340a   :  { %3573 = vperm.xlu0 %6352, %v3569_v22   ;;  %v5590_v22 = vsel %vm341_vm2, %v5589_v3, %v5585_v5 }
0x340b   :  { %v5670_v26 = vsel %vm320_vm1, %v5669_v34, %v5590_v22 }
0x340c   :  { %v5672_v25 = vsel %vm5671_vm6, %v5670_v26, %v5601_v30 }
0x3429   :  { %3390 = vmax.xlane.f32.xlu0 %v3389_v27  ;;  %v5611_v27 = vrot.slane %v7265_v47, %v5606_v63  ;;  %v5623_v47 = vsel %vm341_vm2, %v5622_v57, %v5618_v37 }
0x342b   :  { %v5612_v56 = vsel %vm341_vm2, %v5611_v27, %v5607_v4 }
0x342c   :  { %v5673_v2 = vsel %vm62_vm0, %v5672_v25, %v5612_v56 }
0x342d   :  { %v5675_v53 = vsel %vm5674_vm9, %v5673_v2, %v5623_v47  ;;  %vm5544_vm9 = vcmask 523264  }
0x3485   :  { %v3654_v13 = vpop.permute.xlu0 %3653 }
0x3486   :  { %v3658_v60 = vrot.slane %v3654_v13, %v6832_v17  ;;  %v5633_v46 = vrot.slane %v3654_v13, %v5628_v40 }
0x3488   :  { %6059 = vmatmul.mubr.msk.f32.vlgmr.msra.gmra.mrb[26].mxu1 %vm411_vm5, %v3658_v60 }
0x3489   :  { %v3574_v29 = vpop.permute.xlu0 %3573  ;;  %6281 = vmatpush1.bf16.msra.mxu1 %v6730_v15  ;;  %3909 = vmatprep.mubr.f32.mxu1 %v6621_v6 }
0x348a   :  { %v3578_v23 = vrot.slane %v3574_v29, %v6832_v17  ;;  %v5629_v49 = vrot.slane %v3574_v29, %v5628_v40  ;;  %6283 = vmatprep.subr.bf16.mxu1 %v6732_v16  ;;  %v7530_v29 = vld [vmem:[%s7918_s0 + $0x8] sm:$0xff] }
0x348c   :  { %v5634_v44 = vsel %vm341_vm2, %v5633_v46, %v5629_v49  ;;  %6054 = vmatmul.mubr.msk.f32.vlgmr.msra.gmra.mrb[26].mxu0 %vm411_vm5, %v3578_v23 }
0x348d   :  { %v7499_v41 = vsel %vm572_vm7, %v5675_v53, %v5634_v44  ;;  %6271 = vmatpush3.bf16.msra.mxu0 %v6878_v8  ;;  %6073 = vmatprep.mubr.msk.f32.mxu0 %vm6626_vm4, %v6621_v6 }
0x348e   :  { %6272 = vmatprep.subr.bf16.mxu0 %v6628_v7  ;;  %6285 = vmatpush1.bf16.msra.mxu1 %v6742_v19 }
0x348f   :  { %6076 = vmatprep.subr.mxu1 %v6621_v6 }
0x3491   :  { %6274 = vmatpush3.bf16.msra.mxu0 %v6884_v10 }
0x3492   :  { %6275 = vmatprep.subr.bf16.mxu0 %v6628_v7 }
0x3495   :  { %6277 = vmatpush3.bf16.msra.mxu0 %v6894_v18 }
0x3496   :  { %6081 = vmatprep.subr.mxu0 %v6621_v6 }
0x34b6   :  { %v7511_v48 = vpop.xlane.xlu0 %3390 }
0x34b7   :  { %vm3402_vm10 = vcmp.eq.f32.partialorder %v7418_v20, %v7511_v48 }
0x34b8   :  { %v3403_v5 = vsel %vm3402_vm10, %v6828_v14, 16 }
0x34b9   :  { %v3404_v63 = vsel %vm753_vm8, %v3403_v5, 2147483647 }
0x34ba   :  { %v3406_v0 = vshra.s32 %v3404_v63, 16  ;;  %v3405_v12 = vand.u32 65535, %v3404_v63 }
0x34bc   :  { %v3408_v1 = vcvt.s32.f32 %v3406_v0  ;;  %v3407_v3 = vcvt.s32.f32 %v3405_v12 }
0x34be   :  { %3409 = vmin.xlane.f32.xlu1 %v3408_v1 }
0x354b   :  { %v3410_v39 = vpop.xlane.xlu1 %3409 }
0x354c   :  { %vm3411_vm11 = vcmp.eq.f32.partialorder %v3408_v1, %v3410_v39  ;;  %v3416_v40 = vcvt.f32.s32 %v3410_v39 }
0x354d   :  { %v3412_v4 = vsel %vm3411_vm11, %v3407_v3, inf }
0x354e   :  { %3413 = vmin.xlane.f32.xlu0 %v3412_v4  ;;  %v3417_v30 = vshll.u32 %v3416_v40, 16 }
0x355b   :  { %v3727_v42 = vpop.f32.mrb[26].mxu1 }
0x355c   :  { %v6060_v9 = vpop.f32.mrb[27].mxu1  ;;  %v3733_v37 = vrot.slane %v3727_v42, 7 }
0x355f   :  { %v3647_v13 = vpop.f32.mrb[26].mxu0 }
0x3560   :  { %v3734_v22 = vsel %vm341_vm2, %v3733_v37, %v3647_v13  ;;  %v6055_v27 = vpop.f32.mrb[27].mxu0 }
0x3561   :  { %3735 = vrot.lane.b32.xlu1 %v3734_v22, %s6624_s4  ;;  %v7547_v22 = vld [vmem:[%s7918_s0] sm:$0xff] }
0x3564   :  { %3812 = vrot.lane.b32.xlu0 %v7418_v20, %s6622_s1 }
0x3565   :  { %3822 = vrot.lane.b32.xlu1 %v7418_v20, %s6627_s25 }
0x35d3   :  { %v3736_v56 = vpop.permute.xlu1 %3735 }
0x35d7   :  { %v3823_v63 = vpop.permute.xlu1 %3822 }
0x35db   :  { %v3414_v60 = vpop.xlane.xlu0 %3413 }
0x35dc   :  { %v3415_v57 = vcvt.f32.s32 %v3414_v60 }
0x35de   :  { %v3418_v34 = vadd.s32 %v3417_v30, %v3415_v57 }
0x35df   :  { %v3813_v25 = vpop.permute.xlu0 %3812 }
0x35e0   :  { %vm3419_vm12 = vcmp.eq.s32.totalorder %v6828_v14, %v3418_v34 }
0x35e1   :  { %v5750_v26 = vsel %vm3419_vm12, 1.0, %v6621_v6 }
0x35e2   :  { %v3738_v47 = vsel %vm320_vm1, %v5750_v26, %v3736_v56 }
0x35e3   :  { %6074 = vmatmul.mubr.msk.f32.vlgmr.msra.gmra.mrb[28].mxu0 %vm572_vm7, %v3738_v47 }
0x35e4   :  { %6082 = vmatpush3.msra.mxu0 %v7530_v29  ;;  %6083 = vmatprep.mubr.msk.f32.mxu0 %vm6626_vm4, %v6621_v6 }
0x35e5   :  { %6296 = vmatprep.subr.bf16.mxu0 %v6719_v11 }
0x36b6   :  { %v3808_v46 = vpop.f32.mrb[28].mxu0 }
0x36b7   :  { %v3815_v23 = vadd.f32 %v3813_v25, %v3808_v46  ;;  %v6075_v49 = vpop.f32.mrb[29].mxu0 }
0x36b9   :  { %v5754_v2 = vmul.f32 -1.442695, %v3815_v23 }
0x36bb   :  { %6487 = vpow2.f32 %v5754_v2 }
0x36c5   :  { %v6488_v53 = vpop.eup %6487 }
0x36c6   :  { %v3819_v44 = vadd.f32 1.0, %v6488_v53 }
0x36c8   :  { %6489 = vrcp.f32 %v3819_v44 }
0x36d2   :  { %v6490_v5 = vpop.eup %6489 }
0x36d3   :  { %v3825_v0 = vmul.f32 %v6490_v5, %v3823_v63  ;;  %v3832_v3 = vsub.f32 1.0, %v6490_v5  ;;  %v3838_v42 = vmul.f32 %v6490_v5, %v7408_v24 }
0x36d5   :  { %3827 = vrot.lane.b32.xlu1 %v3825_v0, %s6630_s17 }
0x3747   :  { %v3828_v1 = vpop.permute.xlu1 %3827 }
0x3748   :  { %v3830_v12 = vadd.f32 %v3828_v1, %v3808_v46 }
0x374a   :  { %6491 = vtanh.f32 %v3830_v12 }
0x3754   :  { %v6492_v39 = vpop.eup %6491 }
0x3755   :  { %3834 = vrot.lane.b32.xlu1 %v6492_v39, %s6631_s18 }
0x37c7   :  { %v3835_v4 = vpop.permute.xlu1 %3834 }
0x37c8   :  { %v3837_v9 = vmul.f32 %v3835_v4, %v3832_v3 }
0x37ca   :  { %v7539_v37 = vadd.f32 %v3838_v42, %v3837_v9 }
0x37cc   :  { %3841 = vrot.lane.b32.xlu0 %v7539_v37, %s6631_s18 }
0x383e   :  { %v3842_v13 = vpop.permute.xlu0 %3841 }
0x383f   :  { %5755 = vmatmul.mubr.msk.f32.vlgmr.msra.gmra.mrb[28].mxu1 %vm62_vm0, %v3842_v13 }
0x3840   :  { %6077 = vmatpush3.msra.mxu1 %v7547_v22  ;;  %6078 = vmatprep.mubr.msk.f32.mxu1 %vm6626_vm4, %v6621_v6 }
0x3841   :  { %6286 = vmatprep.subr.bf16.mxu1 %v6628_v7 }
0x3912   :  { %v3911_v24 = vpop.f32.mrb[28].mxu1 }
0x3913   :  { %v7554_v27 = vadd.f32 %v3911_v24, %v6786_v35  ;;  %v3913_v40 = vpop.f32.mrb[29].mxu1 }
0x3914   :  { %v3914_v60 = vadd.f32 %v3913_v40, %v6789_v36 }
0x3916   :  { %v3951_v30 = vcombine.low %v7554_v27, %v3914_v60 }
0x3918   :  { %v3958_v57 = vrot.slane %v3951_v30, %v6797_v43 }
0x391a   :  { %v3959_v34 = vcombine.high %v3958_v57, %v3958_v57  ;;  %v3966_v56 = vrot.slane %v3958_v57, %v6797_v43 }
0x391c   :  { %v3973_v26 = vrot.slane %v3959_v34, %v6797_v43  ;;  %v3977_v47 = vrot.slane %v3966_v56, %v6777_v32  ;;  %v3981_v25 = vrot.slane %v3966_v56, %v6780_v33 }
0x391e   :  { %v3985_v46 = vrot.slane %v3973_v26, %v6777_v32  ;;  %v3989_v23 = vrot.slane %v3973_v26, %v6780_v33  ;;  %v3994_v49 = vadd.f32 %v3977_v47, %v6804_v50  ;;  %v3995_v2 = vadd.f32 %v3981_v25, %v6804_v50 }
0x3920   :  { %v3996_v53 = vadd.f32 %v3985_v46, %v6810_v55  ;;  %v3997_v44 = vadd.f32 %v3989_v23, %v6810_v55  ;;  %6493 = vtanh.f32 %v3994_v49 }
0x3921   :  { %6495 = vtanh.f32 %v3995_v2 }
0x3922   :  { %6497 = vtanh.f32 %v3996_v53 }
0x3923   :  { %6499 = vtanh.f32 %v3997_v44 }
0x392a   :  { %v6494_v5 = vpop.eup %6493 }
0x392b   :  { %v6496_v63 = vpop.eup %6495  ;;  %v4002_v0 = vmul.f32 %v6494_v5, %v6814_v58 }
0x392c   :  { %v6498_v1 = vpop.eup %6497  ;;  %v4003_v12 = vmul.f32 %v6496_v63, %v6814_v58 }
0x392d   :  { %v6500_v39 = vpop.eup %6499  ;;  %4010 = vrot.lane.b32.xlu1 %v4002_v0, %s6624_s4  ;;  %v4004_v3 = vmul.f32 %v6498_v1, %v6814_v58 }
0x392e   :  { %4012 = vrot.lane.b32.xlu0 %v4003_v12, %s6624_s4  ;;  %v4005_v4 = vmul.f32 %v6500_v39, %v6814_v58 }
0x3931   :  { %4014 = vrot.lane.b32.xlu1 %v4004_v3, %s6624_s4 }
0x3932   :  { %4016 = vrot.lane.b32.xlu0 %v4005_v4, %s6624_s4 }
0x399f   :  { %v4011_v42 = vpop.permute.xlu1 %4010 }
0x39a0   :  { %v4013_v9 = vpop.permute.xlu0 %4012 }
0x39a1   :  { %v4018_v13 = vsel %vm320_vm1, %v4011_v42, %v4013_v9 }
0x39a2   :  { %v4022_v24 = vsel %vm62_vm0, %v4018_v13, 0.0 }
0x39a3   :  { %4023 = vadd.xlane.f32.xlu1 %v4022_v24  ;;  %v4015_v40 = vpop.permute.xlu1 %4014 }
0x39a4   :  { %v4017_v60 = vpop.permute.xlu0 %4016 }
0x39a5   :  { %v4019_v30 = vsel %vm320_vm1, %v4015_v40, %v4017_v60 }
0x39a6   :  { %v4025_v57 = vsel %vm62_vm0, %v4019_v30, 0.0 }
0x39a7   :  { %4026 = vadd.xlane.f32.xlu0 %v4025_v57 }
0x3a30   :  { %v4024_v34 = vpop.xlane.xlu1 %4023 }
0x3a31   :  { %v4033_v26 = vrot.slane %v4024_v34, %v6832_v17 }
0x3a34   :  { %v4027_v56 = vpop.xlane.xlu0 %4026 }
0x3a35   :  { %v4037_v47 = vrot.slane %v4027_v56, %v6832_v17 }
0x3a37   :  { %v4038_v25 = vsel %vm341_vm2, %v4037_v47, %v4033_v26  ;;  %v3916_v47 = vsel %vm753_vm8, %v7554_v27, -inf }
0x3a38   :  { %v4040_v46 = vsel %vm344_vm3, %v4038_v25, -inf  ;;  %v5636_v25 = vadd.s32 4294967240, %v6828_v14 }
0x3a39   :  { %4041 = vmax.xlane.f32.xlu0 %v4040_v46 }
0x3ac6   :  { %v4042_v23 = vpop.xlane.xlu0 %4041 }
0x3ac7   :  { %v4047_v49 = vrot.slane %v4042_v23, %v6777_v32  ;;  %v4051_v2 = vrot.slane %v4042_v23, %v6780_v33  ;;  %v5639_v23 = vsub.s32 %v5636_v25, %v6774_v31 }
0x3ac9   :  { %v4054_v53 = vsub.f32 %v4024_v34, %v4047_v49  ;;  %v4055_v44 = vsub.f32 %v4027_v56, %v4051_v2 }
0x3acb   :  { %v4056_v5 = vmul.f32 1.442695, %v4054_v53  ;;  %v4058_v63 = vmul.f32 1.442695, %v4055_v44 }
0x3acd   :  { %6501 = vpow2.f32 %v4056_v5 }
0x3ace   :  { %6503 = vpow2.f32 %v4058_v63 }
0x3ad7   :  { %v6502_v0 = vpop.eup %6501 }
0x3ad8   :  { %v6504_v1 = vpop.eup %6503  ;;  %4063 = vperm.xlu0 %6352, %v6502_v0  }
0x3ad9   :  { %4066 = vperm.xlu1 %6351, %v6504_v1  }
0x3b57   :  { %v4064_v12 = vpop.permute.xlu0 %4063 }
0x3b58   :  { %v4067_v39 = vpop.permute.xlu1 %4066  ;;  %v4071_v3 = vrot.slane %v4064_v12, %v6832_v17 }
0x3b59   :  { %v4075_v4 = vrot.slane %v4067_v39, %v6832_v17 }
0x3b5b   :  { %v4076_v42 = vsel %vm341_vm2, %v4075_v4, %v4071_v3 }
0x3b5c   :  { %v4078_v9 = vsel %vm344_vm3, %v4076_v42, 0.0 }
0x3b5d   :  { %4079 = vadd.xlane.f32.xlu1 %v4078_v9 }
0x3bea   :  { %v4080_v13 = vpop.xlane.xlu1 %4079 }
0x3beb   :  { %6505 = vrcp.f32 %v4080_v13 }
0x3bf5   :  { %v6506_v24 = vpop.eup %6505 }
0x3bf6   :  { %v4082_v40 = vmul.f32 %v6506_v24, %v4080_v13 }
0x3bf8   :  { %v4083_v60 = vsub.f32 2.0, %v4082_v40 }
0x3bfa   :  { %v4084_v30 = vmul.f32 %v6506_v24, %v4083_v60 }
0x3bfc   :  { %v4093_v57 = vrot.slane %v4084_v30, %v6780_v33  ;;  %v4089_v34 = vrot.slane %v4084_v30, %v6777_v32 }
0x3bfe   :  { %v4097_v56 = vmul.f32 %v6504_v1, %v4093_v57  ;;  %v4096_v26 = vmul.f32 %v6502_v0, %v4089_v34 }
0x3c00   :  { %4180 = vperm.xlu0 %6352, %v4097_v56  }
0x3c04   :  { %4100 = vperm.xlu0 %6352, %v4096_v26  }
0x3c23   :  { %3917 = vmax.xlane.f32.xlu0 %v3916_v47 }
0x3c7f   :  { %v4181_v46 = vpop.permute.xlu0 %4180 }
0x3c80   :  { %v4185_v49 = vrot.slane %v4181_v46, %v6832_v17  ;;  %v5644_v53 = vrot.slane %v4181_v46, %v5639_v23 }
0x3c82   :  { %6084 = vmatmul.mubr.msk.f32.vlgmr.msra.gmra.mrb[30].mxu0 %vm411_vm5, %v4185_v49 }
0x3c83   :  { %v4101_v2 = vpop.permute.xlu0 %4100  ;;  %6298 = vmatpush1.bf16.msra.mxu0 %v6730_v15  ;;  %4436 = vmatprep.mubr.f32.mxu0 %v6621_v6 }
0x3c84   :  { %v4105_v44 = vrot.slane %v4101_v2, %v6832_v17  ;;  %v5640_v5 = vrot.slane %v4101_v2, %v5639_v23  ;;  %6300 = vmatprep.subr.bf16.mxu0 %v6732_v16 }
0x3c86   :  { %v5645_v63 = vsel %vm341_vm2, %v5644_v53, %v5640_v5  ;;  %6079 = vmatmul.mubr.msk.f32.vlgmr.msra.gmra.mrb[30].mxu1 %vm411_vm5, %v4105_v44 }
0x3c87   :  { %v7606_v0 = vsel %vm5677_vm13, %v7499_v41, %v5645_v63  ;;  %6288 = vmatpush3.bf16.msra.mxu1 %v6878_v8  ;;  %6098 = vmatprep.mubr.msk.f32.mxu1 %vm6626_vm4, %v6621_v6  ;;  %vm5682_vm13 = vcmask 648192  }
0x3c88   :  { %6289 = vmatprep.subr.bf16.mxu1 %v6628_v7  ;;  %6302 = vmatpush1.bf16.msra.mxu0 %v6742_v19 }
0x3c89   :  { %6101 = vmatprep.subr.mxu0 %v6621_v6 }
0x3c8b   :  { %6291 = vmatpush3.bf16.msra.mxu1 %v6884_v10 }
0x3c8c   :  { %6292 = vmatprep.subr.bf16.mxu1 %v6628_v7 }
0x3c8f   :  { %6294 = vmatpush3.bf16.msra.mxu1 %v6894_v18 }
0x3c90   :  { %6106 = vmatprep.subr.mxu1 %v6621_v6 }
0x3cb0   :  { %v7618_v41 = vpop.xlane.xlu0 %3917 }
0x3cb1   :  { %vm3929_vm14 = vcmp.eq.f32.partialorder %v7554_v27, %v7618_v41 }
0x3cb2   :  { %v3930_v1 = vsel %vm3929_vm14, %v6828_v14, 16 }
0x3cb3   :  { %v3931_v12 = vsel %vm753_vm8, %v3930_v1, 2147483647 }
0x3cb4   :  { %v3933_v39 = vshra.s32 %v3931_v12, 16  ;;  %v3932_v4 = vand.u32 65535, %v3931_v12 }
0x3cb6   :  { %v3935_v3 = vcvt.s32.f32 %v3933_v39  ;;  %v3934_v9 = vcvt.s32.f32 %v3932_v4 }
0x3cb8   :  { %3936 = vmin.xlane.f32.xlu1 %v3935_v3 }
0x3d45   :  { %v3937_v42 = vpop.xlane.xlu1 %3936 }
0x3d46   :  { %vm3938_vm15 = vcmp.eq.f32.partialorder %v3935_v3, %v3937_v42  ;;  %v3943_v56 = vcvt.f32.s32 %v3937_v42 }
0x3d47   :  { %v3939_v13 = vsel %vm3938_vm15, %v3934_v9, inf }
0x3d48   :  { %3940 = vmin.xlane.f32.xlu1 %v3939_v13  ;;  %v3944_v47 = vshll.u32 %v3943_v56, 16 }
0x3d55   :  { %v4254_v24 = vpop.f32.mrb[30].mxu0 }
0x3d56   :  { %v6085_v40 = vpop.f32.mrb[31].mxu0  ;;  %v4260_v60 = vrot.slane %v4254_v24, 7 }
0x3d59   :  { %v4174_v30 = vpop.f32.mrb[30].mxu1  ;;  %4339 = vrot.lane.b32.xlu1 %v7554_v27, %s6622_s1 }
0x3d5a   :  { %v4261_v57 = vsel %vm341_vm2, %v4260_v60, %v4174_v30  ;;  %v6080_v34 = vpop.f32.mrb[31].mxu1 }
0x3d5b   :  { %4262 = vrot.lane.b32.xlu0 %v4261_v57, %s6624_s4 }
0x3d5d   :  { %4349 = vrot.lane.b32.xlu1 %v7554_v27, %s6627_s25 }
0x3dcd   :  { %v4263_v23 = vpop.permute.xlu0 %4262 }
0x3dd5   :  { %v3941_v26 = vpop.xlane.xlu1 %3940 }
0x3dd6   :  { %v3942_v25 = vcvt.f32.s32 %v3941_v26 }
0x3dd8   :  { %v3945_v46 = vadd.s32 %v3944_v47, %v3942_v25 }
0x3dd9   :  { %v4340_v53 = vpop.permute.xlu1 %4339 }
0x3dda   :  { %vm3946_vm6 = vcmp.eq.s32.totalorder %v6828_v14, %v3945_v46 }
0x3ddb   :  { %v5756_v49 = vsel %vm3946_vm6, 1.0, %v6621_v6 }
0x3ddc   :  { %v4265_v2 = vsel %vm320_vm1, %v5756_v49, %v4263_v23 }
0x3ddd   :  { %6099 = vmatmul.mubr.msk.f32.vlgmr.msra.gmra.mrb[32].mxu1 %vm572_vm7, %v4265_v2  ;;  %v4350_v4 = vpop.permute.xlu1 %4349 }
0x3dde   :  { %6107 = vmatpush3.msra.mxu1 %v7530_v29  ;;  %6108 = vmatprep.mubr.msk.f32.mxu1 %vm6626_vm4, %v6621_v6 }
0x3ddf   :  { %6313 = vmatprep.subr.bf16.mxu1 %v6719_v11 }
0x3eb0   :  { %v4335_v44 = vpop.f32.mrb[32].mxu1 }
0x3eb1   :  { %v4342_v5 = vadd.f32 %v4340_v53, %v4335_v44  ;;  %v6100_v63 = vpop.f32.mrb[33].mxu1 }
0x3eb3   :  { %v5760_v1 = vmul.f32 -1.442695, %v4342_v5 }
0x3eb5   :  { %6507 = vpow2.f32 %v5760_v1 }
0x3ebf   :  { %v6508_v12 = vpop.eup %6507 }
0x3ec0   :  { %v4346_v39 = vadd.f32 1.0, %v6508_v12 }
0x3ec2   :  { %6509 = vrcp.f32 %v4346_v39 }
0x3ecc   :  { %v6510_v3 = vpop.eup %6509 }
0x3ecd   :  { %v4352_v42 = vmul.f32 %v6510_v3, %v4350_v4  ;;  %v4359_v40 = vsub.f32 1.0, %v6510_v3  ;;  %v4365_v30 = vmul.f32 %v6510_v3, %v7539_v37 }
0x3ecf   :  { %4354 = vrot.lane.b32.xlu1 %v4352_v42, %s6630_s17 }
0x3f41   :  { %v4355_v9 = vpop.permute.xlu1 %4354 }
0x3f42   :  { %v4357_v13 = vadd.f32 %v4355_v9, %v4335_v44 }
0x3f44   :  { %6511 = vtanh.f32 %v4357_v13 }
0x3f4e   :  { %v6512_v24 = vpop.eup %6511 }
0x3f4f   :  { %4361 = vrot.lane.b32.xlu0 %v6512_v24, %s6631_s18 }
0x3fc1   :  { %v4362_v60 = vpop.permute.xlu0 %4361 }
0x3fc2   :  { %v4364_v57 = vmul.f32 %v4362_v60, %v4359_v40 }
0x3fc4   :  { %v7641_v34 = vadd.f32 %v4365_v30, %v4364_v57 }
0x3fc6   :  { %4368 = vrot.lane.b32.xlu1 %v7641_v34, %s6631_s18 }
0x4038   :  { %v4369_v56 = vpop.permute.xlu1 %4368 }
0x4039   :  { %5761 = vmatmul.mubr.msk.f32.vlgmr.msra.gmra.mrb[32].mxu0 %vm62_vm0, %v4369_v56 }
0x403a   :  { %6102 = vmatpush3.msra.mxu0 %v7547_v22  ;;  %6103 = vmatprep.mubr.msk.f32.mxu0 %vm6626_vm4, %v6621_v6 }
0x403b   :  { %6303 = vmatprep.subr.bf16.mxu0 %v6628_v7 }
0x410c   :  { %v4438_v26 = vpop.f32.mrb[32].mxu0 }
0x410d   :  { %v7651_v47 = vadd.f32 %v4438_v26, %v6786_v35  ;;  %v4440_v37 = vpop.f32.mrb[33].mxu0 }
0x410e   :  { %v4441_v25 = vadd.f32 %v4440_v37, %v6789_v36 }
0x4110   :  { %v4478_v46 = vcombine.low %v7651_v47, %v4441_v25 }
0x4112   :  { %v4485_v23 = vrot.slane %v4478_v46, %v6797_v43 }
0x4114   :  { %v4486_v49 = vcombine.high %v4485_v23, %v4485_v23  ;;  %v4493_v2 = vrot.slane %v4485_v23, %v6797_v43 }
0x4116   :  { %v4500_v53 = vrot.slane %v4486_v49, %v6797_v43  ;;  %v4504_v44 = vrot.slane %v4493_v2, %v6777_v32  ;;  %v4508_v5 = vrot.slane %v4493_v2, %v6780_v33 }
0x4118   :  { %v4512_v63 = vrot.slane %v4500_v53, %v6777_v32  ;;  %v4516_v1 = vrot.slane %v4500_v53, %v6780_v33  ;;  %v4521_v12 = vadd.f32 %v4504_v44, %v6804_v50  ;;  %v4522_v39 = vadd.f32 %v4508_v5, %v6804_v50 }
0x411a   :  { %v4523_v3 = vadd.f32 %v4512_v63, %v6810_v55  ;;  %v4524_v4 = vadd.f32 %v4516_v1, %v6810_v55  ;;  %6513 = vtanh.f32 %v4521_v12 }
0x411b   :  { %6515 = vtanh.f32 %v4522_v39 }
0x411c   :  { %6517 = vtanh.f32 %v4523_v3 }
0x411d   :  { %6519 = vtanh.f32 %v4524_v4 }
0x4124   :  { %v6514_v42 = vpop.eup %6513 }
0x4125   :  { %v6516_v9 = vpop.eup %6515  ;;  %v4529_v13 = vmul.f32 %v6514_v42, %v6814_v58 }
0x4126   :  { %v6518_v24 = vpop.eup %6517  ;;  %v4530_v40 = vmul.f32 %v6516_v9, %v6814_v58 }
0x4127   :  { %v6520_v60 = vpop.eup %6519  ;;  %4537 = vrot.lane.b32.xlu0 %v4529_v13, %s6624_s4  ;;  %v4531_v30 = vmul.f32 %v6518_v24, %v6814_v58 }
0x4128   :  { %4539 = vrot.lane.b32.xlu1 %v4530_v40, %s6624_s4  ;;  %v4532_v57 = vmul.f32 %v6520_v60, %v6814_v58 }
0x412b   :  { %4541 = vrot.lane.b32.xlu0 %v4531_v30, %s6624_s4 }
0x412c   :  { %4543 = vrot.lane.b32.xlu1 %v4532_v57, %s6624_s4 }
0x4199   :  { %v4538_v56 = vpop.permute.xlu0 %4537 }
0x419a   :  { %v4540_v26 = vpop.permute.xlu1 %4539 }
0x419b   :  { %v4545_v37 = vsel %vm320_vm1, %v4538_v56, %v4540_v26 }
0x419c   :  { %v4549_v25 = vsel %vm62_vm0, %v4545_v37, 0.0 }
0x419d   :  { %4550 = vadd.xlane.f32.xlu0 %v4549_v25  ;;  %v4542_v46 = vpop.permute.xlu0 %4541 }
0x419e   :  { %v4544_v23 = vpop.permute.xlu1 %4543 }
0x419f   :  { %v4546_v49 = vsel %vm320_vm1, %v4542_v46, %v4544_v23 }
0x41a0   :  { %v4552_v2 = vsel %vm62_vm0, %v4546_v49, 0.0 }
0x41a1   :  { %4553 = vadd.xlane.f32.xlu1 %v4552_v2 }
0x422a   :  { %v4551_v53 = vpop.xlane.xlu0 %4550 }
0x422b   :  { %v4560_v5 = vrot.slane %v4551_v53, %v6832_v17 }
0x422e   :  { %v4554_v44 = vpop.xlane.xlu1 %4553 }
0x422f   :  { %v4564_v63 = vrot.slane %v4554_v44, %v6832_v17 }
0x4231   :  { %v4565_v1 = vsel %vm341_vm2, %v4564_v63, %v4560_v5 }
0x4232   :  { %v4567_v12 = vsel %vm344_vm3, %v4565_v1, -inf }
0x4233   :  { %4568 = vmax.xlane.f32.xlu0 %v4567_v12  ;;  %v4443_v12 = vsel %vm753_vm8, %v7651_v47, -inf }
0x42c0   :  { %v4569_v39 = vpop.xlane.xlu0 %4568 }
0x42c1   :  { %v4574_v3 = vrot.slane %v4569_v39, %v6777_v32  ;;  %v4578_v4 = vrot.slane %v4569_v39, %v6780_v33  ;;  %v5647_v39 = vadd.s32 4294967232, %v6828_v14 }
0x42c3   :  { %v4581_v42 = vsub.f32 %v4551_v53, %v4574_v3  ;;  %v4582_v9 = vsub.f32 %v4554_v44, %v4578_v4  ;;  %v5650_v4 = vsub.s32 %v5647_v39, %v6774_v31 }
0x42c5   :  { %v4583_v13 = vmul.f32 1.442695, %v4581_v42  ;;  %v4585_v24 = vmul.f32 1.442695, %v4582_v9 }
0x42c7   :  { %6521 = vpow2.f32 %v4583_v13 }
0x42c8   :  { %6523 = vpow2.f32 %v4585_v24 }
0x42d1   :  { %v6522_v40 = vpop.eup %6521 }
0x42d2   :  { %v6524_v60 = vpop.eup %6523  ;;  %4590 = vperm.xlu0 %6352, %v6522_v40  }
0x42d3   :  { %4593 = vperm.xlu1 %6351, %v6524_v60  }
0x4351   :  { %v4591_v30 = vpop.permute.xlu0 %4590 }
0x4352   :  { %v4594_v57 = vpop.permute.xlu1 %4593  ;;  %v4598_v56 = vrot.slane %v4591_v30, %v6832_v17 }
0x4353   :  { %v4602_v26 = vrot.slane %v4594_v57, %v6832_v17 }
0x4355   :  { %v4603_v37 = vsel %vm341_vm2, %v4602_v26, %v4598_v56 }
0x4356   :  { %v4605_v25 = vsel %vm344_vm3, %v4603_v37, 0.0 }
0x4357   :  { %4606 = vadd.xlane.f32.xlu1 %v4605_v25 }
0x43e4   :  { %v4607_v46 = vpop.xlane.xlu1 %4606 }
0x43e5   :  { %6525 = vrcp.f32 %v4607_v46 }
0x43ef   :  { %v6526_v23 = vpop.eup %6525 }
0x43f0   :  { %v4609_v49 = vmul.f32 %v6526_v23, %v4607_v46 }
0x43f2   :  { %v4610_v2 = vsub.f32 2.0, %v4609_v49 }
0x43f4   :  { %v4611_v53 = vmul.f32 %v6526_v23, %v4610_v2 }
0x43f6   :  { %v4620_v44 = vrot.slane %v4611_v53, %v6780_v33  ;;  %v4616_v5 = vrot.slane %v4611_v53, %v6777_v32 }
0x43f8   :  { %v4624_v63 = vmul.f32 %v6524_v60, %v4620_v44  ;;  %v4623_v1 = vmul.f32 %v6522_v40, %v4616_v5 }
0x43fa   :  { %4707 = vperm.xlu0 %6352, %v4624_v63  }
0x43fe   :  { %4627 = vperm.xlu0 %6352, %v4623_v1  }
0x441d   :  { %4444 = vmax.xlane.f32.xlu0 %v4443_v12 }
0x4479   :  { %v4708_v3 = vpop.permute.xlu0 %4707 }
0x447a   :  { %v4712_v42 = vrot.slane %v4708_v3, %v6832_v17  ;;  %v5655_v13 = vrot.slane %v4708_v3, %v5650_v4 }
0x447c   :  { %6109 = vmatmul.mubr.msk.f32.vlgmr.msra.gmra.mrb[34].mxu1 %vm411_vm5, %v4712_v42 }
0x447d   :  { %v4628_v9 = vpop.permute.xlu0 %4627  ;;  %6315 = vmatpush1.bf16.msra.mxu1 %v6730_v15  ;;  %4963 = vmatprep.mubr.f32.mxu1 %v6621_v6 }
0x447e   :  { %v4632_v24 = vrot.slane %v4628_v9, %v6832_v17  ;;  %v5651_v40 = vrot.slane %v4628_v9, %v5650_v4  ;;  %6317 = vmatprep.subr.bf16.mxu1 %v6732_v16 }
0x4480   :  { %v5656_v60 = vsel %vm341_vm2, %v5655_v13, %v5651_v40  ;;  %6104 = vmatmul.mubr.msk.f32.vlgmr.msra.gmra.mrb[34].mxu0 %vm411_vm5, %v4632_v24 }
0x4481   :  { %v7704_v30 = vsel %vm5544_vm9, %v7606_v0, %v5656_v60  ;;  %6305 = vmatpush3.bf16.msra.mxu0 %v6878_v8  ;;  %6123 = vmatprep.mubr.msk.f32.mxu0 %vm6626_vm4, %v6621_v6 }
0x4482   :  { %6306 = vmatprep.subr.bf16.mxu0 %v6628_v7  ;;  %6319 = vmatpush1.bf16.msra.mxu1 %v6742_v19 }
0x4483   :  { %6126 = vmatprep.subr.mxu1 %v6621_v6 }
0x4485   :  { %6308 = vmatpush3.bf16.msra.mxu0 %v6884_v10 }
0x4486   :  { %6309 = vmatprep.subr.bf16.mxu0 %v6628_v7 }
0x4489   :  { %6311 = vmatpush3.bf16.msra.mxu0 %v6894_v18 }
0x448a   :  { %6131 = vmatprep.subr.mxu0 %v6621_v6 }
0x44aa   :  { %v7716_v0 = vpop.xlane.xlu0 %4444 }
0x44ab   :  { %vm4456_vm10 = vcmp.eq.f32.partialorder %v7651_v47, %v7716_v0 }
0x44ac   :  { %v4457_v57 = vsel %vm4456_vm10, %v6828_v14, 16 }
0x44ad   :  { %v4458_v56 = vsel %vm753_vm8, %v4457_v57, 2147483647 }
0x44ae   :  { %v4460_v26 = vshra.s32 %v4458_v56, 16  ;;  %v4459_v25 = vand.u32 65535, %v4458_v56 }
0x44b0   :  { %v4462_v37 = vcvt.s32.f32 %v4460_v26  ;;  %v4461_v23 = vcvt.s32.f32 %v4459_v25 }
0x44b2   :  { %4463 = vmin.xlane.f32.xlu1 %v4462_v37 }
0x453f   :  { %v4464_v46 = vpop.xlane.xlu1 %4463 }
0x4540   :  { %vm4465_vm11 = vcmp.eq.f32.partialorder %v4462_v37, %v4464_v46  ;;  %v4470_v12 = vcvt.f32.s32 %v4464_v46 }
0x4541   :  { %v4466_v49 = vsel %vm4465_vm11, %v4461_v23, inf }
0x4542   :  { %4467 = vmin.xlane.f32.xlu0 %v4466_v49  ;;  %v4471_v3 = vshll.u32 %v4470_v12, 16 }
0x454f   :  { %v4781_v2 = vpop.f32.mrb[34].mxu1 }
0x4550   :  { %v6110_v53 = vpop.f32.mrb[35].mxu1  ;;  %v4787_v44 = vrot.slane %v4781_v2, 7 }
0x4553   :  { %v4701_v5 = vpop.f32.mrb[34].mxu0 }
0x4554   :  { %v4788_v63 = vsel %vm341_vm2, %v4787_v44, %v4701_v5  ;;  %v6105_v1 = vpop.f32.mrb[35].mxu0 }
0x4555   :  { %4789 = vrot.lane.b32.xlu1 %v4788_v63, %s6624_s4 }
0x4558   :  { %4866 = vrot.lane.b32.xlu0 %v7651_v47, %s6622_s1 }
0x4559   :  { %4876 = vrot.lane.b32.xlu1 %v7651_v47, %s6627_s25 }
0x45c7   :  { %v4790_v9 = vpop.permute.xlu1 %4789 }
0x45cb   :  { %v4877_v23 = vpop.permute.xlu1 %4876 }
0x45cf   :  { %v4468_v39 = vpop.xlane.xlu0 %4467 }
0x45d0   :  { %v4469_v4 = vcvt.f32.s32 %v4468_v39 }
0x45d2   :  { %v4472_v42 = vadd.s32 %v4471_v3, %v4469_v4 }
0x45d3   :  { %v4867_v40 = vpop.permute.xlu0 %4866 }
0x45d4   :  { %vm4473_vm12 = vcmp.eq.s32.totalorder %v6828_v14, %v4472_v42 }
0x45d5   :  { %v5762_v13 = vsel %vm4473_vm12, 1.0, %v6621_v6 }
0x45d6   :  { %v4792_v24 = vsel %vm320_vm1, %v5762_v13, %v4790_v9 }
0x45d7   :  { %6124 = vmatmul.mubr.msk.f32.vlgmr.msra.gmra.mrb[36].mxu0 %vm572_vm7, %v4792_v24 }
0x45d8   :  { %6132 = vmatpush3.msra.mxu0 %v7530_v29  ;;  %6133 = vmatprep.mubr.msk.f32.mxu0 %vm6626_vm4, %v6621_v6 }
0x45d9   :  { %6330 = vmatprep.subr.bf16.mxu0 %v6719_v11 }
0x46aa   :  { %v4862_v60 = vpop.f32.mrb[36].mxu0 }
0x46ab   :  { %v4869_v57 = vadd.f32 %v4867_v40, %v4862_v60  ;;  %v6125_v56 = vpop.f32.mrb[37].mxu0 }
0x46ad   :  { %v5766_v26 = vmul.f32 -1.442695, %v4869_v57 }
0x46af   :  { %6527 = vpow2.f32 %v5766_v26 }
0x46b9   :  { %v6528_v37 = vpop.eup %6527 }
0x46ba   :  { %v4873_v25 = vadd.f32 1.0, %v6528_v37 }
0x46bc   :  { %6529 = vrcp.f32 %v4873_v25 }
0x46c6   :  { %v6530_v46 = vpop.eup %6529 }
0x46c7   :  { %v4879_v49 = vmul.f32 %v6530_v46, %v4877_v23  ;;  %v4886_v11 = vsub.f32 1.0, %v6530_v46  ;;  %v4892_v5 = vmul.f32 %v6530_v46, %v7641_v34 }
0x46c9   :  { %4881 = vrot.lane.b32.xlu1 %v4879_v49, %s6630_s17 }
0x473b   :  { %v4882_v29 = vpop.permute.xlu1 %4881 }
0x473c   :  { %v4884_v2 = vadd.f32 %v4882_v29, %v4862_v60 }
0x473e   :  { %6531 = vtanh.f32 %v4884_v2 }
0x4748   :  { %v6532_v53 = vpop.eup %6531 }
0x4749   :  { %4888 = vrot.lane.b32.xlu1 %v6532_v53, %s6631_s18 }
0x47bb   :  { %v4889_v44 = vpop.permute.xlu1 %4888 }
0x47bc   :  { %v4891_v63 = vmul.f32 %v4889_v44, %v4886_v11 }
0x47be   :  { %v7739_v1 = vadd.f32 %v4892_v5, %v4891_v63 }
0x47c0   :  { %4895 = vrot.lane.b32.xlu0 %v7739_v1, %s6631_s18 }
0x4832   :  { %v4896_v12 = vpop.permute.xlu0 %4895 }
0x4833   :  { %5767 = vmatmul.mubr.msk.f32.vlgmr.msra.gmra.mrb[36].mxu1 %vm62_vm0, %v4896_v12 }
0x4834   :  { %6127 = vmatpush3.msra.mxu1 %v7547_v22  ;;  %6128 = vmatprep.mubr.msk.f32.mxu1 %vm6626_vm4, %v6621_v6 }
0x4835   :  { %6320 = vmatprep.subr.bf16.mxu1 %v6628_v7 }
0x4906   :  { %v4965_v39 = vpop.f32.mrb[36].mxu1 }
0x4907   :  { %v7749_v3 = vadd.f32 %v4965_v39, %v6786_v35  ;;  %v4967_v34 = vpop.f32.mrb[37].mxu1 }
0x4908   :  { %v4968_v4 = vadd.f32 %v4967_v34, %v6789_v36 }
0x490a   :  { %v5005_v42 = vcombine.low %v7749_v3, %v4968_v4 }
0x490c   :  { %v5012_v9 = vrot.slane %v5005_v42, %v6797_v43 }
0x490e   :  { %v5013_v13 = vcombine.high %v5012_v9, %v5012_v9  ;;  %v5020_v24 = vrot.slane %v5012_v9, %v6797_v43 }
0x4910   :  { %v5027_v22 = vrot.slane %v5013_v13, %v6797_v43  ;;  %v5031_v40 = vrot.slane %v5020_v24, %v6777_v32  ;;  %v5035_v60 = vrot.slane %v5020_v24, %v6780_v33 }
0x4912   :  { %v5039_v57 = vrot.slane %v5027_v22, %v6777_v32  ;;  %v5043_v56 = vrot.slane %v5027_v22, %v6780_v33  ;;  %v5048_v26 = vadd.f32 %v5031_v40, %v6804_v50  ;;  %v5049_v36 = vadd.f32 %v5035_v60, %v6804_v50 }
0x4914   :  { %v5050_v37 = vadd.f32 %v5039_v57, %v6810_v55  ;;  %v5051_v25 = vadd.f32 %v5043_v56, %v6810_v55  ;;  %6533 = vtanh.f32 %v5048_v26 }
0x4915   :  { %6535 = vtanh.f32 %v5049_v36 }
0x4916   :  { %6537 = vtanh.f32 %v5050_v37 }
0x4917   :  { %6539 = vtanh.f32 %v5051_v25 }
0x491e   :  { %v6534_v43 = vpop.eup %6533 }
0x491f   :  { %v6536_v46 = vpop.eup %6535  ;;  %v5056_v23 = vmul.f32 %v6534_v43, %v6814_v58 }
0x4920   :  { %v6538_v49 = vpop.eup %6537  ;;  %v5057_v29 = vmul.f32 %v6536_v46, %v6814_v58 }
0x4921   :  { %v6540_v2 = vpop.eup %6539  ;;  %5064 = vrot.lane.b32.xlu1 %v5056_v23, %s6624_s4  ;;  %v5058_v50 = vmul.f32 %v6538_v49, %v6814_v58 }
0x4922   :  { %5066 = vrot.lane.b32.xlu0 %v5057_v29, %s6624_s4  ;;  %v5059_v55 = vmul.f32 %v6540_v2, %v6814_v58 }
0x4925   :  { %5068 = vrot.lane.b32.xlu1 %v5058_v50, %s6624_s4 }
0x4926   :  { %5070 = vrot.lane.b32.xlu0 %v5059_v55, %s6624_s4 }
0x4993   :  { %v5065_v53 = vpop.permute.xlu1 %5064 }
0x4994   :  { %v5067_v11 = vpop.permute.xlu0 %5066 }
0x4995   :  { %v5072_v44 = vsel %vm320_vm1, %v5065_v53, %v5067_v11 }
0x4996   :  { %v5076_v5 = vsel %vm62_vm0, %v5072_v44, 0.0 }
0x4997   :  { %5077 = vadd.xlane.f32.xlu1 %v5076_v5  ;;  %v5069_v63 = vpop.permute.xlu1 %5068 }
0x4998   :  { %v5071_v12 = vpop.permute.xlu0 %5070 }
0x4999   :  { %v5073_v39 = vsel %vm320_vm1, %v5069_v63, %v5071_v12 }
0x499a   :  { %v5079_v34 = vsel %vm62_vm0, %v5073_v39, 0.0 }
0x499b   :  { %5080 = vadd.xlane.f32.xlu0 %v5079_v34  ;;  %v4970_v34 = vsel %vm753_vm8, %v7749_v3, -inf }
0x4a24   :  { %v5078_v4 = vpop.xlane.xlu1 %5077 }
0x4a25   :  { %v5087_v42 = vrot.slane %v5078_v4, %v6832_v17 }
0x4a28   :  { %v5081_v58 = vpop.xlane.xlu0 %5080 }
0x4a29   :  { %v5091_v9 = vrot.slane %v5081_v58, %v6832_v17 }
0x4a2b   :  { %v5092_v13 = vsel %vm341_vm2, %v5091_v9, %v5087_v42 }
0x4a2c   :  { %v5094_v24 = vsel %vm344_vm3, %v5092_v13, -inf }
0x4a2d   :  { %5095 = vmax.xlane.f32.xlu0 %v5094_v24 }
0x4aba   :  { %v5096_v22 = vpop.xlane.xlu0 %5095 }
0x4abb   :  { %v5101_v40 = vrot.slane %v5096_v22, %v6777_v32  ;;  %v5105_v60 = vrot.slane %v5096_v22, %v6780_v33 }
0x4abd   :  { %v5108_v57 = vsub.f32 %v5078_v4, %v5101_v40  ;;  %v5109_v56 = vsub.f32 %v5081_v58, %v5105_v60  ;;  %v5658_v4 = vadd.s32 4294967224, %v6828_v14 }
0x4abf   :  { %v5110_v26 = vmul.f32 1.442695, %v5108_v57  ;;  %v5112_v36 = vmul.f32 1.442695, %v5109_v56  ;;  %v5661_v42 = vsub.s32 %v5658_v4, %v6774_v31 }
0x4ac1   :  { %6541 = vpow2.f32 %v5110_v26 }
0x4ac2   :  { %6543 = vpow2.f32 %v5112_v36 }
0x4acb   :  { %v6542_v37 = vpop.eup %6541 }
0x4acc   :  { %v6544_v25 = vpop.eup %6543  ;;  %5117 = vperm.xlu0 %6352, %v6542_v37  }
0x4acd   :  { %5120 = vperm.xlu1 %6351, %v6544_v25  }
0x4b4b   :  { %v5118_v43 = vpop.permute.xlu0 %5117 }
0x4b4c   :  { %v5121_v46 = vpop.permute.xlu1 %5120  ;;  %v5125_v23 = vrot.slane %v5118_v43, %v6832_v17 }
0x4b4d   :  { %v5129_v49 = vrot.slane %v5121_v46, %v6832_v17 }
0x4b4f   :  { %v5130_v29 = vsel %vm341_vm2, %v5129_v49, %v5125_v23 }
0x4b50   :  { %v5132_v2 = vsel %vm344_vm3, %v5130_v29, 0.0  ;;  %vm5680_vm3 = vcmask 588800  }
0x4b51   :  { %5133 = vadd.xlane.f32.xlu1 %v5132_v2 }
0x4bde   :  { %v5134_v50 = vpop.xlane.xlu1 %5133 }
0x4bdf   :  { %6545 = vrcp.f32 %v5134_v50 }
0x4be9   :  { %v6546_v55 = vpop.eup %6545 }
0x4bea   :  { %v5136_v53 = vmul.f32 %v6546_v55, %v5134_v50 }
0x4bec   :  { %v5137_v11 = vsub.f32 2.0, %v5136_v53 }
0x4bee   :  { %v5138_v44 = vmul.f32 %v6546_v55, %v5137_v11 }
0x4bf0   :  { %v5147_v5 = vrot.slane %v5138_v44, %v6780_v33  ;;  %v5143_v63 = vrot.slane %v5138_v44, %v6777_v32 }
0x4bf2   :  { %v5151_v12 = vmul.f32 %v6544_v25, %v5147_v5  ;;  %v5150_v39 = vmul.f32 %v6542_v37, %v5143_v63 }
0x4bf4   :  { %5234 = vperm.xlu0 %6352, %v5151_v12  }
0x4bf8   :  { %5154 = vperm.xlu0 %6352, %v5150_v39  }
0x4c17   :  { %4971 = vmax.xlane.f32.xlu0 %v4970_v34 }
0x4c73   :  { %v5235_v58 = vpop.permute.xlu0 %5234 }
0x4c74   :  { %v5239_v9 = vrot.slane %v5235_v58, %v6832_v17  ;;  %v5666_v32 = vrot.slane %v5235_v58, %v5661_v42 }
0x4c76   :  { %6134 = vmatmul.mubr.msk.f32.vlgmr.msra.gmra.mrb[38].mxu0 %vm411_vm5, %v5239_v9 }
0x4c77   :  { %v5155_v33 = vpop.permute.xlu0 %5154  ;;  %6332 = vmatpush1.bf16.msra.mxu0 %v6730_v15  ;;  %5490 = vmatprep.mubr.f32.mxu0 %v6621_v6 }
0x4c78   :  { %v5159_v13 = vrot.slane %v5155_v33, %v6832_v17  ;;  %v5662_v24 = vrot.slane %v5155_v33, %v5661_v42  ;;  %6334 = vmatprep.subr.bf16.mxu0 %v6732_v16 }
0x4c7a   :  { %v5667_v22 = vsel %vm341_vm2, %v5666_v32, %v5662_v24  ;;  %6129 = vmatmul.mubr.msk.f32.vlgmr.msra.gmra.mrb[38].mxu1 %vm411_vm5, %v5159_v13  ;;  %v1284_v24 = vsub.f32 %v7020_v52, %v7084_v21 }
0x4c7b   :  { %v5681_v40 = vsel %vm5680_vm3, %v7704_v30, %v5667_v22  ;;  %6322 = vmatpush3.bf16.msra.mxu1 %v6878_v8  ;;  %6148 = vmatprep.mubr.msk.f32.mxu1 %vm6626_vm4, %v6621_v6 }
0x4c7c   :  { %5683 = vst.msk [vmem:[%s7928_s10] sm:$0x3] %vm5682_vm13, %v5681_v40  ;;  %6323 = vmatprep.subr.bf16.mxu1 %v6628_v7  ;;  %6336 = vmatpush1.bf16.msra.mxu0 %v6742_v19  ;;  %v1285_v22 = vmul.f32 1.442695, %v1284_v24  ;;  %v3392_v40 = vsub.f32 %v7418_v20, %v7511_v48  ;;  %s6632_s10 = smov 80  }
0x4c7f   :  { %6325 = vmatpush3.bf16.msra.mxu1 %v6884_v10 }
0x4c80   :  { %6326 = vmatprep.subr.bf16.mxu1 %v6628_v7 }
0x4c83   :  { %6328 = vmatpush3.bf16.msra.mxu1 %v6894_v18 }
0x4ca4   :  { %v7812_v15 = vpop.xlane.xlu0 %4971 }
0x4ca5   :  { %vm4983_vm5 = vcmp.eq.f32.partialorder %v7749_v3, %v7812_v15 }
0x4ca6   :  { %v4984_v16 = vsel %vm4983_vm5, %v6828_v14, 16 }
0x4ca7   :  { %v4985_v17 = vsel %vm753_vm8, %v4984_v16, 2147483647  ;;  %v3393_v16 = vmul.f32 1.442695, %v3392_v40 }
0x4ca8   :  { %v4987_v8 = vshra.s32 %v4985_v17, 16  ;;  %v4986_v60 = vand.u32 65535, %v4985_v17  ;;  %v4446_v17 = vsub.f32 %v7651_v47, %v7716_v0 }
0x4caa   :  { %v4989_v30 = vcvt.s32.f32 %v4987_v8  ;;  %v4988_v57 = vcvt.s32.f32 %v4986_v60  ;;  %v757_v8 = vsub.f32 %v6923_v61, %v6987_v45 }
0x4cac   :  { %4990 = vmin.xlane.f32.xlu1 %v4989_v30 }
0x4d39   :  { %v4991_v19 = vpop.xlane.xlu1 %4990 }
0x4d3a   :  { %vm4992_vm4 = vcmp.eq.f32.partialorder %v4989_v30, %v4991_v19  ;;  %v4997_v25 = vcvt.f32.s32 %v4991_v19  ;;  %v758_v30 = vmul.f32 1.442695, %v757_v8 }
0x4d3b   :  { %v4993_v10 = vsel %vm4992_vm4, %v4988_v57, inf }
0x4d3c   :  { %4994 = vmin.xlane.f32.xlu1 %v4993_v10  ;;  %v4998_v46 = vshll.u32 %v4997_v25, 16 }
0x4d49   :  { %v5308_v7 = vpop.f32.mrb[38].mxu0 }
0x4d4a   :  { %v6135_v18 = vpop.f32.mrb[39].mxu0  ;;  %v5314_v56 = vrot.slane %v5308_v7, 7 }
0x4d4d   :  { %v5228_v26 = vpop.f32.mrb[38].mxu1  ;;  %5393 = vrot.lane.b32.xlu1 %v7749_v3, %s6622_s1 }
0x4d4e   :  { %v5315_v36 = vsel %vm341_vm2, %v5314_v56, %v5228_v26  ;;  %v6130_v37 = vpop.f32.mrb[39].mxu1  ;;  %vm5685_vm2 = vcmask 254976  }
0x4d4f   :  { %5316 = vrot.lane.b32.xlu0 %v5315_v36, %s6624_s4 }
0x4d51   :  { %5403 = vrot.lane.b32.xlu1 %v7749_v3, %s6627_s25 }
0x4dc1   :  { %v5317_v29 = vpop.permute.xlu0 %5316 }
0x4dc9   :  { %v4995_v43 = vpop.xlane.xlu1 %4994 }
0x4dca   :  { %v4996_v23 = vcvt.f32.s32 %v4995_v43 }
0x4dcc   :  { %v4999_v49 = vadd.s32 %v4998_v46, %v4996_v23 }
0x4dcd   :  { %v5394_v55 = vpop.permute.xlu1 %5393 }
0x4dce   :  { %vm5000_vm14 = vcmp.eq.s32.totalorder %v6828_v14, %v4999_v49  ;;  %v1811_v49 = vsub.f32 %v7127_v54, %v7191_v62 }
0x4dcf   :  { %v5768_v2 = vsel %vm5000_vm14, 1.0, %v6621_v6 }
0x4dd0   :  { %v5319_v50 = vsel %vm320_vm1, %v5768_v2, %v5317_v29  ;;  %v1812_v29 = vmul.f32 1.442695, %v1811_v49  ;;  %v2338_v2 = vsub.f32 %v7224_v28, %v7288_v59 }
0x4dd1   :  { %6149 = vmatmul.mubr.msk.f32.vlgmr.msra.gmra.mrb[40].mxu1 %vm572_vm7, %v5319_v50  ;;  %v5404_v34 = vpop.permute.xlu1 %5403 }
0x4dd2   :  { %v2339_v50 = vmul.f32 1.442695, %v2338_v2 }
0x4ea4   :  { %v5389_v53 = vpop.f32.mrb[40].mxu1 }
0x4ea5   :  { %v5396_v11 = vadd.f32 %v5394_v55, %v5389_v53  ;;  %v6150_v44 = vpop.f32.mrb[41].mxu1  ;;  %v2865_v55 = vsub.f32 %v7321_v38, %v7385_v51 }
0x4ea7   :  { %v5772_v5 = vmul.f32 -1.442695, %v5396_v11 }
0x4ea9   :  { %6547 = vpow2.f32 %v5772_v5 }
0x4eb3   :  { %v6548_v63 = vpop.eup %6547 }
0x4eb4   :  { %v5400_v12 = vadd.f32 1.0, %v6548_v63 }
0x4eb6   :  { %6549 = vrcp.f32 %v5400_v12 }
0x4ec0   :  { %v6550_v39 = vpop.eup %6549 }
0x4ec1   :  { %v5406_v4 = vmul.f32 %v6550_v39, %v5404_v34  ;;  %v5413_v42 = vsub.f32 1.0, %v6550_v39  ;;  %v5419_v33 = vmul.f32 %v6550_v39, %v7739_v1  ;;  %v4447_v1 = vmul.f32 1.442695, %v4446_v17 }
0x4ec3   :  { %5408 = vrot.lane.b32.xlu1 %v5406_v4, %s6630_s17 }
0x4f35   :  { %v5409_v14 = vpop.permute.xlu1 %5408 }
0x4f36   :  { %v5411_v6 = vadd.f32 %v5409_v14, %v5389_v53  ;;  %v2866_v53 = vmul.f32 1.442695, %v2865_v55 }
0x4f38   :  { %6551 = vtanh.f32 %v5411_v6 }
0x4f39   :  { %6553 = vpow2.f32 %v1285_v22 }
0x4f3a   :  { %6555 = vpow2.f32 %v3393_v16 }
0x4f3b   :  { %6557 = vpow2.f32 %v4447_v1 }
0x4f3c   :  { %6559 = vpow2.f32 %v758_v30 }
0x4f42   :  { %v6552_v58 = vpop.eup %6551 }
0x4f43   :  { %5415 = vrot.lane.b32.xlu0 %v6552_v58, %s6631_s18  ;;  %v6554_v60 = vpop.eup %6553 }
0x4f44   :  { %v1287_v19 = vsel %vm753_vm8, %v6554_v60, 0.0  ;;  %v6556_v57 = vpop.eup %6555 }
0x4f45   :  { %v3395_v10 = vsel %vm753_vm8, %v6556_v57, 0.0  ;;  %v6558_v7 = vpop.eup %6557 }
0x4f46   :  { %v4449_v18 = vsel %vm753_vm8, %v6558_v7, 0.0  ;;  %v6560_v56 = vpop.eup %6559 }
0x4f47   :  { %v760_v26 = vsel %vm753_vm8, %v6560_v56, 0.0 }
0x4fb5   :  { %v5416_v9 = vpop.permute.xlu0 %5415 }
0x4fb6   :  { %v5418_v32 = vmul.f32 %v5416_v9, %v5413_v42  ;;  %v4973_v42 = vsub.f32 %v7749_v3, %v7812_v15 }
0x4fb8   :  { %v5420_v13 = vadd.f32 %v5419_v33, %v5418_v32  ;;  %v4974_v32 = vmul.f32 1.442695, %v4973_v42 }
0x4fba   :  { %5422 = vrot.lane.b32.xlu1 %v5420_v13, %s6631_s18 }
0x4fde   :  { %1288 = vadd.xlane.f32.xlu1 %v1287_v19 }
0x4fe2   :  { %3396 = vadd.xlane.f32.xlu1 %v3395_v10 }
0x4fe6   :  { %4450 = vadd.xlane.f32.xlu1 %v4449_v18 }
0x4fea   :  { %761 = vadd.xlane.f32.xlu1 %v760_v26 }
0x502c   :  { %v5423_v36 = vpop.permute.xlu1 %5422 }
0x502d   :  { %5773 = vmatmul.mubr.msk.f32.vlgmr.msra.gmra.mrb[40].mxu0 %vm62_vm0, %v5423_v36  ;;  %5686 = vst.msk [vmem:[#allocation2] sm:$0x3] %vm5685_vm2, %v5423_v36 }
0x506b   :  { %v1289_v37 = vpop.xlane.xlu1 %1288 }
0x506c   :  { %6561 = vlog2.f32 %v1289_v37 }
0x506d   :  { %6563 = vpow2.f32 %v1812_v29 }
0x506e   :  { %6565 = vpow2.f32 %v2339_v50 }
0x506f   :  { %6567 = vpow2.f32 %v2866_v53  ;;  %v3397_v22 = vpop.xlane.xlu1 %3396 }
0x5073   :  { %v4451_v16 = vpop.xlane.xlu1 %4450 }
0x5076   :  { %v6562_v25 = vpop.eup %6561 }
0x5077   :  { %v1291_v43 = vmul.f32 0.6931472, %v6562_v25  ;;  %v6564_v12 = vpop.eup %6563 }
0x5078   :  { %v1814_v39 = vsel %vm753_vm8, %v6564_v12, 0.0  ;;  %v6566_v34 = vpop.eup %6565 }
0x5079   :  { %v1292_v46 = vadd.f32 %v1291_v43, %v7084_v21  ;;  %v3919_v21 = vsub.f32 %v7554_v27, %v7618_v41  ;;  %v2341_v4 = vsel %vm753_vm8, %v6566_v34, 0.0  ;;  %v6568_v14 = vpop.eup %6567 }
0x507b   :  { %v1293_v23 = vsub.f32 %v7020_v52, %v1292_v46  ;;  %v3920_v5 = vmul.f32 1.442695, %v3919_v21 }
0x507d   :  { %5510 = vrot.lane.b32.xlu1 %v1293_v23, %s6624_s4  ;;  %6569 = vpow2.f32 %v3920_v5 }
0x5087   :  { %v6570_v6 = vpop.eup %6569 }
0x5088   :  { %v3922_v58 = vsel %vm753_vm8, %v6570_v6, 0.0 }
0x5100   :  { %v5492_v52 = vpop.f32.mrb[40].mxu0 }
0x5101   :  { %v7857_v11 = vadd.f32 %v5492_v52, %v6786_v35  ;;  %v5494_v44 = vpop.f32.mrb[41].mxu0  ;;  %v2868_v35 = vsel %vm753_vm8, %v6568_v14, 0.0 }
0x5103   :  { %v5496_v63 = vsel %vm753_vm8, %v7857_v11, -inf }
0x5104   :  { %5497 = vmax.xlane.f32.xlu0 %v5496_v63 }
0x5108   :  { %1815 = vadd.xlane.f32.xlu0 %v1814_v39 }
0x510c   :  { %2342 = vadd.xlane.f32.xlu0 %v2341_v4 }
0x5110   :  { %2869 = vadd.xlane.f32.xlu0 %v2868_v35 }
0x5114   :  { %3923 = vadd.xlane.f32.xlu0 %v3922_v58 }
0x5191   :  { %v7867_v9 = vpop.xlane.xlu0 %5497 }
0x5192   :  { %v5499_v33 = vsub.f32 %v7857_v11, %v7867_v9 }
0x5194   :  { %v5500_v13 = vmul.f32 1.442695, %v5499_v33 }
0x5195   :  { %v1816_v24 = vpop.xlane.xlu0 %1815 }
0x5196   :  { %6571 = vpow2.f32 %v5500_v13 }
0x5197   :  { %6573 = vpow2.f32 %v4974_v32 }
0x5199   :  { %v2343_v40 = vpop.xlane.xlu0 %2342 }
0x519a   :  { %6575 = vlog2.f32 %v2343_v40 }
0x519b   :  { %6577 = vlog2.f32 %v3397_v22 }
0x519d   :  { %v2870_v17 = vpop.xlane.xlu0 %2869 }
0x519e   :  { %6579 = vlog2.f32 %v2870_v17 }
0x519f   :  { %6581 = vlog2.f32 %v4451_v16 }
0x51a0   :  { %v6572_v8 = vpop.eup %6571  ;;  %6583 = vlog2.f32 %v1816_v24 }
0x51a1   :  { %v5502_v1 = vsel %vm753_vm8, %v6572_v8, 0.0  ;;  %v6574_v30 = vpop.eup %6573  ;;  %v3924_v7 = vpop.xlane.xlu0 %3923 }
0x51a2   :  { %5503 = vadd.xlane.f32.xlu0 %v5502_v1  ;;  %v4976_v57 = vsel %vm753_vm8, %v6574_v30, 0.0  ;;  %6585 = vlog2.f32 %v3924_v7 }
0x51a4   :  { %v6576_v60 = vpop.eup %6575 }
0x51a5   :  { %v2345_v19 = vmul.f32 0.6931472, %v6576_v60  ;;  %v6578_v10 = vpop.eup %6577 }
0x51a6   :  { %4977 = vadd.xlane.f32.xlu0 %v4976_v57  ;;  %v3399_v26 = vmul.f32 0.6931472, %v6578_v10 }
0x51a7   :  { %v2346_v18 = vadd.f32 %v2345_v19, %v7288_v59 }
0x51a8   :  { %v6580_v56 = vpop.eup %6579  ;;  %v3400_v46 = vadd.f32 %v3399_v26, %v7511_v48 }
0x51a9   :  { %v2347_v36 = vsub.f32 %v7224_v28, %v2346_v18  ;;  %v2872_v37 = vmul.f32 0.6931472, %v6580_v56  ;;  %v6582_v25 = vpop.eup %6581 }
0x51aa   :  { %v4453_v23 = vmul.f32 0.6931472, %v6582_v25  ;;  %v6584_v29 = vpop.eup %6583  ;;  %v3401_v59 = vsub.f32 %v7418_v20, %v3400_v46 }
0x51ab   :  { %v2873_v43 = vadd.f32 %v2872_v37, %v7385_v51  ;;  %5518 = vrot.lane.b32.xlu1 %v2347_v36, %s6627_s25  ;;  %v1818_v28 = vmul.f32 0.6931472, %v6584_v29  ;;  %s6633_s25 = smov [#allocation2]  }
0x51ac   :  { %v4454_v2 = vadd.f32 %v4453_v23, %v7716_v0  ;;  %v6586_v50 = vpop.eup %6585  ;;  %s5695_s26 = sshll.u32 %s6633_s25, 4  ;;  %s5696_s26 = int_to_ptr.vmem [resolvable:$true] %s5695_s26 }
0x51ad   :  { %v2874_v49 = vsub.f32 %v7321_v38, %v2873_v43  ;;  %v1819_v55 = vadd.f32 %v1818_v28, %v7191_v62  ;;  %v3926_v53 = vmul.f32 0.6931472, %v6586_v50  ;;  %s6597_s5 = scalar_lea.vmem %s5696_s26, 32  ;;  %p6602_p1 = scmp.lt.s32.totalorder %s5696_s26, %s5696_s26 }
0x51ae   :  { %v4455_v51 = vsub.f32 %v7651_v47, %v4454_v2  ;;  %p6598_p0 = scmp.ne.s32.totalorder %s5696_s26, %s6597_s5  ;;  %p6603_p2 = scmp.lt.s32.totalorder %s6597_s5, %s6597_s5 }
0x51af   :  { %5522 = vrot.lane.b32.xlu1 %v2874_v49, %s6630_s17  ;;  %v1820_v38 = vsub.f32 %v7127_v54, %v1819_v55  ;;  %v3927_v48 = vadd.f32 %v3926_v53, %v7618_v41 }
0x51b0   :  { %p6604_p3 = por %p6603_p2, %p6602_p1 }
0x51b1   :  { %v3928_v20 = vsub.f32 %v7554_v27, %v3927_v48 }
0x51b2   :  { %p6605_p4 = pnand %p6604_p3, %p6598_p0 }
0x51b3   :  { %5526 = vrot.lane.b32.xlu1 %v3401_v59, %s6632_s10 }
0x51b7   :  { %5534 = vrot.lane.b32.xlu1 %v4455_v51, %s6622_s1 }
0x51bc   :  { %5514 = vrot.lane.b32.xlu0 %v1820_v38, %s6629_s2 }
0x51c0   :  { %5530 = vrot.lane.b32.xlu0 %v3928_v20, %s6631_s18 }
0x522f   :  { %v5504_v0 = vpop.xlane.xlu0 %5503 }
0x5230   :  { %6587 = vlog2.f32 %v5504_v0 }
0x523a   :  { %v6588_v47 = vpop.eup %6587 }
0x523b   :  { %6608 = shalt.err (!%p6605_p4)
}
0x523c   :  { %s6609_s28 = scalar_lea.hbm %s7927_s9, 32 }
0x523d   :  { %p6610_p5 = scmp.ne.s32.totalorder %s7927_s9, %s6609_s28  ;;  %p6613_p6 = scmp.lt.u32.totalorder %s6609_s28, %s7927_s9 }
0x523f   :  { %p6615_p7 = pnand %p6613_p6, %p6610_p5 }
0x5241   :  { %6618 = shalt.err (!%p6615_p7)
}
0x5242   :  { %5698 = dma.vmem_to_hbm [thread:$0]  %s5696_s26, 32, %s7927_s9, [#allocation3]   ;;  %v5506_v54 = vmul.f32 0.6931472, %v6588_v47  ;;  %v762_v41 = vpop.xlane.xlu1 %761  ;;  %v4978_v44 = vpop.xlane.xlu0 %4977  ;;  %vm5546_vm8 = vcmask 654336   ;;  %vm5548_vm15 = vcmask 785408  }
0x5243   :  { %6589 = vlog2.f32 %v762_v41  ;;  %vm5550_vm6 = vcmask 916480  }
0x5244   :  { %v5507_v62 = vadd.f32 %v5506_v54, %v7867_v9  ;;  %6591 = vlog2.f32 %v4978_v44  ;;  %v6634_v9 = vmov 1983009808  }
0x5245   :  { %v5557_v33 = vunpack.c.l.s4 %v6634_v9 }
0x5246   :  { %v5508_v27 = vsub.f32 %v7857_v11, %v5507_v62  ;;  %v5511_v5 = vpop.permute.xlu1 %5510  ;;  %v5515_v34 = vpop.permute.xlu0 %5514 }
0x5247   :  { %v5558_v24 = vunpack.c.0.s8 %v5557_v33 }
0x5248   :  { %5538 = vrot.lane.b32.xlu0 %v5508_v27, %s6624_s4 }
0x5249   :  { %v5561_v17 = vsub.s32 %v5558_v24, %v6774_v31 }
0x524a   :  { %v5519_v12 = vpop.permute.xlu1 %5518 }
0x524d   :  { %v6590_v21 = vpop.eup %6589 }
0x524e   :  { %v764_v52 = vmul.f32 0.6931472, %v6590_v21  ;;  %v6592_v11 = vpop.eup %6591  ;;  %v5523_v35 = vpop.permute.xlu1 %5522 }
0x524f   :  { %v4980_v58 = vmul.f32 0.6931472, %v6592_v11 }
0x5250   :  { %v765_v63 = vadd.f32 %v764_v52, %v6987_v45 }
0x5251   :  { %v4981_v45 = vadd.f32 %v4980_v58, %v7812_v15 }
0x5252   :  { %v766_v39 = vsub.f32 %v6923_v61, %v765_v63  ;;  %v5527_v32 = vpop.permute.xlu1 %5526  ;;  %v5531_v61 = vpop.permute.xlu0 %5530 }
0x5253   :  { %v4982_v40 = vsub.f32 %v7749_v3, %v4981_v45 }
0x5254   :  { %v5541_v4 = vsel %vm320_vm1, %v766_v39, %v5511_v5 }
0x5255   :  { %v5542_v14 = vsel %vm62_vm0, %v5541_v4, %v5515_v34  ;;  %vm5564_vm0 = vcmask 1041408  }
0x5256   :  { %v5543_v6 = vsel %vm572_vm7, %v5542_v14, %v5519_v12  ;;  %v5535_v16 = vpop.permute.xlu1 %5534  ;;  %vm5565_vm7 = vcmask 257026  }
0x5257   :  { %v5545_v42 = vsel %vm5544_vm9, %v5543_v6, %v5523_v35  ;;  %vm5566_vm9 = vmor %vm5565_vm7, %vm5564_vm0 }
0x5258   :  { %v5547_v13 = vsel %vm5546_vm8, %v5545_v42, %v5527_v32 }
0x5259   :  { %v5549_v22 = vsel %vm5548_vm15, %v5547_v13, %v5531_v61 }
0x525a   :  { %v5551_v1 = vsel %vm5550_vm6, %v5549_v22, %v5535_v16 }
0x52ba   :  { %v5539_v8 = vpop.permute.xlu0 %5538 }
0x52bb   :  { %v5552_v30 = vsel %vm320_vm1, %v4982_v40, %v5539_v8 }
0x52bc   :  { %v5555_v60 = vcombine.low %v5551_v1, %v5552_v30 }
0x52be   :  { %v5562_v15 = vrot.slane %v5555_v60, %v5561_v17 }
0x52c0   :  { %5567 = vst.msk [vmem:[%s7926_s8] sm:$0xf] %vm5566_vm9, %v5562_v15 }
0x52c1   :  { %6619 = dma.done.wait [#allocation3], 32  }
0x52c2   :  { %6620 = vsyncadd [#allocation3], 4294967264 }
0x52c3   :  { %5708 = vsyncpa [#allocation3], 1 }

</bundles_post_ra>
